<compile_context>
chip_gen: v6e
topology: v6e:2x2x1
jax: 0.10.0
libtpu: 0.0.40
codegen_flags: <defaults>
</compile_context>

<pallas_src>
import math

import numpy as np
import jax
import jax.numpy as jnp
from jax import lax
from jax.experimental import pallas as pl
from jax.experimental.pallas import tpu as pltpu


_CONVS = ('c0', 'c1', 'b1c1', 'b1r', 'b1c2', 'b2c1', 'b2c2')
_SH_FOR = {'c0': 'sh_c0', 'c1': 'sh_c1', 'b1c1': 'sh_b1', 'b1r': 'sh_b1',
           'b1c2': 'sh_b2', 'b2c1': 'sh_b2', 'b2c2': 'sh_b2'}


# --------------------------------------------------------------------------
# One-time parameter packing (outside the per-forward path)
# --------------------------------------------------------------------------
def _shift_stack(n, h, kh, stride, pad):
    """SH[ki] @ A picks input row (stride*ho + ki - pad) for every output row,
    per image, with zero rows at the padded borders.  Shape (kh, n*Ho, n*H)."""
    ho = (h + 2 * pad - kh) // stride + 1
    s = np.zeros((kh, n * ho, n * h), np.float32)
    for ki in range(kh):
        for b in range(n):
            for o in range(ho):
                hin = stride * o + ki - pad
                if 0 <= hin < h:
                    s[ki, b * ho + o, b * h + hin] = 1.0
    return jnp.asarray(s)


def _fold_weight(w_oihw, w_dim, stride, pad):
    """Fold the horizontal kernel offset / stride / padding and the Cin->Cout
    map into a dense matrix per vertical tap: shape (KH, W*Cin, Wo*Cout)."""
    w = np.asarray(jax.device_get(w_oihw), np.float32)
    cout, cin, kh, kw = w.shape
    wo = (w_dim + 2 * pad - kw) // stride + 1
    k = np.zeros((kh, w_dim * cin, wo * cout), np.float32)
    for ki in range(kh):
        for o in range(wo):
            for kj in range(kw):
                win = stride * o + kj - pad
                if 0 <= win < w_dim:
                    # K[win*Cin + ci, o*Cout + co] = w[co, ci, ki, kj]
                    k[ki, win * cin:(win + 1) * cin,
                      o * cout:(o + 1) * cout] = w[:, :, ki, kj].T
    return jnp.asarray(k)


def pack_resnet_params(p, *, n, h, w):
    """Pre-pack weights / biases / shift matrices once.  Depends on the input
    geometry (n, h, w); re-pack if batch or spatial size changes."""
    packed = {
        'sh_c0': _shift_stack(n, h, kh=7, stride=1, pad=3),        # stem 7x7
        'sh_c1': _shift_stack(n, h, kh=3, stride=1, pad=1),        # stem 3x3
        'sh_b1': _shift_stack(n, h, kh=3, stride=2, pad=1),        # block1 s2
        'sh_b2': _shift_stack(n, h // 2, kh=3, stride=1, pad=1),   # 8x8 s1
    }

    def fold(name, wkey, bkey, w_dim, stride, pad):
        wt = p[wkey]
        packed['k_' + name] = _fold_weight(wt, w_dim, stride, pad)
        cout, kw = wt.shape[0], wt.shape[3]
        wo = (w_dim + 2 * pad - kw) // stride + 1
        bias = np.asarray(jax.device_get(p[bkey]), np.float32)
        packed['b_' + name] = jnp.asarray(np.tile(bias, wo).reshape(1, wo * cout))

    fold('c0',   'c0_w',    'c0_b',    w,      1, 3)
    fold('c1',   'c1_w',    'c1_b',    w,      1, 1)
    fold('b1c1', 'b1_c1_w', 'b1_c1_b', w,      2, 1)
    fold('b1r',  'b1_r_w',  'b1_r_b',  w,      2, 1)
    fold('b1c2', 'b1_c2_w', 'b1_c2_b', w // 2, 1, 1)
    fold('b2c1', 'b2_c1_w', 'b2_c1_b', w // 2, 1, 1)
    fold('b2c2', 'b2_c2_w', 'b2_c2_b', w // 2, 1, 1)
    return packed


# --------------------------------------------------------------------------
# The fused whole-network kernel
# --------------------------------------------------------------------------
def _resnet_fused_kernel(
        x_ref,
        sh_c0, sh_c1, sh_b1, sh_b2,
        k_c0, b_c0,
        k_c1, b_c1,
        k_b1c1, b_b1c1,
        k_b1r, b_b1r,
        k_b1c2, b_b1c2,
        k_b2c1, b_b2c1,
        k_b2c2, b_b2c2,
        out_ref):
    f32 = jnp.float32

    def shift_rows(a, sh_ref):
        # Row shift / stride / vertical-pad selection as tiny MXU matmuls.
        return [jnp.dot(sh_ref[ki], a, preferred_element_type=f32)
                for ki in range(sh_ref.shape[0])]

    def conv_from_rows(rows, k_ref, b_ref, relu=False, res=None):
        acc = jnp.dot(rows[0], k_ref[0], preferred_element_type=f32)
        for ki in range(1, len(rows)):
            acc = acc + jnp.dot(rows[ki], k_ref[ki], preferred_element_type=f32)
        acc = acc + b_ref[...]
        if relu:
            acc = jnp.maximum(acc, 0.0)
        if res is not None:
            acc = acc + res
        return acc

    def conv(a, sh_ref, k_ref, b_ref, **kw):
        return conv_from_rows(shift_rows(a, sh_ref), k_ref, b_ref, **kw)

    x = x_ref[...].astype(f32)                            # (N*H, W*Cin)
    y = conv(x, sh_c0, k_c0, b_c0)                        # stem conv 7x7
    y = conv(y, sh_c1, k_c1, b_c1)                        # stem conv 3x3
    rows = shift_rows(y, sh_b1)                           # shared by both s2 convs
    t = conv_from_rows(rows, k_b1c1, b_b1c1, relu=True)   # block1 conv1 (s2) + ReLU
    r = conv_from_rows(rows, k_b1r, b_b1r)                # block1 residual conv (s2)
    y = conv(t, sh_b2, k_b1c2, b_b1c2, res=r)             # block1 conv2 + add
    t = conv(y, sh_b2, k_b2c1, b_b2c1, relu=True)         # block2 conv1 + ReLU
    y = conv(t, sh_b2, k_b2c2, b_b2c2, res=y)             # block2 conv2 + identity add
    out_ref[...] = y.astype(out_ref.dtype)                # (N*Ho, Wo*Cout), lane-dense


@jax.jit
def resnet_forward_pallas(x_nchw, packed):
    n, c, h, w = x_nchw.shape
    # Layout plumbing only: NCHW -> lane-dense (N*H, W*Cin) slab.
    x2d = jnp.transpose(x_nchw, (0, 2, 3, 1)).reshape(n * h, w * c)

    operands = [x2d, packed['sh_c0'], packed['sh_c1'], packed['sh_b1'], packed['sh_b2']]
    for name in _CONVS:
        operands += [packed['k_' + name], packed['b_' + name]]

    ho, wo = h // 2, w // 2
    cout = packed['k_b2c2'].shape[2] // wo

    # Advisory cost estimate from the actual matmuls performed.
    flops = 0
    for name in _CONVS:
        kh, mo, mi = packed[_SH_FOR[name]].shape
        _, li, lo = packed['k_' + name].shape
        flops += kh * 2 * mo * (mi * li + li * lo)
    bytes_accessed = sum(int(np.prod(op.shape)) * op.dtype.itemsize for op in operands)
    bytes_accessed += (n * ho) * (wo * cout) * x_nchw.dtype.itemsize

    out2d = pl.pallas_call(
        _resnet_fused_kernel,
        out_shape=jax.ShapeDtypeStruct((n * ho, wo * cout), x_nchw.dtype),
        in_specs=[pl.BlockSpec(memory_space=pltpu.MemorySpace.VMEM) for _ in operands],
        out_specs=pl.BlockSpec(memory_space=pltpu.MemorySpace.VMEM),
        cost_estimate=pl.CostEstimate(flops=int(flops), transcendentals=0,
                                      bytes_accessed=int(bytes_accessed)),
    )(*operands)

    return out2d.reshape(n, ho, wo, cout).transpose(0, 3, 1, 2)   # NCHW


# --------------------------------------------------------------------------
# Pure-JAX reference mirroring the PyTorch module exactly
# --------------------------------------------------------------------------
def _conv2d_ref(x_nchw, w, b, stride, pad):
    y = lax.conv_general_dilated(
        x_nchw, w, window_strides=(stride, stride),
        padding=((pad, pad), (pad, pad)),
        dimension_numbers=('NCHW', 'OIHW', 'NCHW'),
        precision=lax.Precision.HIGHEST)
    return y + b.reshape(1, -1, 1, 1)


def resnet_forward_ref(x, p):
    x = _conv2d_ref(x, p['c0_w'], p['c0_b'], 1, 3)
    x = _conv2d_ref(x, p['c1_w'], p['c1_b'], 1, 1)
    r = _conv2d_ref(x, p['b1_r_w'], p['b1_r_b'], 2, 1)
    t = jax.nn.relu(_conv2d_ref(x, p['b1_c1_w'], p['b1_c1_b'], 2, 1))
    x = _conv2d_ref(t, p['b1_c2_w'], p['b1_c2_b'], 1, 1) + r
    t = jax.nn.relu(_conv2d_ref(x, p['b2_c1_w'], p['b2_c1_b'], 1, 1))
    x = _conv2d_ref(t, p['b2_c2_w'], p['b2_c2_b'], 1, 1) + x
    return x


def _init_conv(key, cout, cin, kh, kw):
    kw_key, kb_key = jax.random.split(key)
    fan_in = cin * kh * kw
    w = jax.random.normal(kw_key, (cout, cin, kh, kw), jnp.float32) / math.sqrt(fan_in)
    b = 0.1 * jax.random.normal(kb_key, (cout,), jnp.float32)
    return w, b


if __name__ == "__main__":
    key = jax.random.PRNGKey(0)
    ks = jax.random.split(key, 8)
    input_nc, nf = 4, 8          # n_filter_base=8; block1 doubles it to 16

    params = {}
    params['c0_w'], params['c0_b'] = _init_conv(ks[0], nf, input_nc, 7, 7)
    params['c1_w'], params['c1_b'] = _init_conv(ks[1], nf, nf, 3, 3)
    params['b1_c1_w'], params['b1_c1_b'] = _init_conv(ks[2], 2 * nf, nf, 3, 3)
    params['b1_c2_w'], params['b1_c2_b'] = _init_conv(ks[3], 2 * nf, 2 * nf, 3, 3)
    params['b1_r_w'], params['b1_r_b'] = _init_conv(ks[4], 2 * nf, nf, 3, 3)
    params['b2_c1_w'], params['b2_c1_b'] = _init_conv(ks[5], 2 * nf, 2 * nf, 3, 3)
    params['b2_c2_w'], params['b2_c2_b'] = _init_conv(ks[6], 2 * nf, 2 * nf, 3, 3)

    x = jax.random.normal(ks[7], (2, input_nc, 16, 16), jnp.float32)

    packed = pack_resnet_params(params, n=2, h=16, w=16)   # one-time pre-packing

    out = jax.block_until_ready(resnet_forward_pallas(x, packed))
    ref = jax.block_until_ready(resnet_forward_ref(x, params))

    assert out.shape == (2, 2 * nf, 8, 8), out.shape
    max_err = float(jnp.max(jnp.abs(out - ref)))
    assert jnp.allclose(out, ref, rtol=2e-3, atol=2e-3), max_err
    print("KERNEL_OK")
</pallas_src>

<mosaic_0001>
module attributes {stable_mosaic.version = 11 : i64} {
  func.func @_resnet_fused_kernel(%arg0: memref<32x64xf32, #tpu.memory_space<vmem>>, %arg1: memref<7x32x32xf32, #tpu.memory_space<vmem>>, %arg2: memref<3x32x32xf32, #tpu.memory_space<vmem>>, %arg3: memref<3x16x32xf32, #tpu.memory_space<vmem>>, %arg4: memref<3x16x16xf32, #tpu.memory_space<vmem>>, %arg5: memref<7x64x128xf32, #tpu.memory_space<vmem>>, %arg6: memref<1x128xf32, #tpu.memory_space<vmem>>, %arg7: memref<3x128x128xf32, #tpu.memory_space<vmem>>, %arg8: memref<1x128xf32, #tpu.memory_space<vmem>>, %arg9: memref<3x128x128xf32, #tpu.memory_space<vmem>>, %arg10: memref<1x128xf32, #tpu.memory_space<vmem>>, %arg11: memref<3x128x128xf32, #tpu.memory_space<vmem>>, %arg12: memref<1x128xf32, #tpu.memory_space<vmem>>, %arg13: memref<3x128x128xf32, #tpu.memory_space<vmem>>, %arg14: memref<1x128xf32, #tpu.memory_space<vmem>>, %arg15: memref<3x128x128xf32, #tpu.memory_space<vmem>>, %arg16: memref<1x128xf32, #tpu.memory_space<vmem>>, %arg17: memref<3x128x128xf32, #tpu.memory_space<vmem>>, %arg18: memref<1x128xf32, #tpu.memory_space<vmem>>, %arg19: memref<16x128xf32, #tpu.memory_space<vmem>>) attributes {dimension_semantics = [], scalar_prefetch = 0 : i64, scratch_operands = 0 : i64, tpu.core_type = #tpu.core_type<tc>} {
    %c0 = arith.constant 0 : index
    %c0_0 = arith.constant 0 : index
    %0 = vector.load %arg0[%c0, %c0_0] : memref<32x64xf32, #tpu.memory_space<vmem>>, vector<32x64xf32>
    %c0_1 = arith.constant 0 : index
    %c0_2 = arith.constant 0 : index
    %c0_3 = arith.constant 0 : index
    %1 = vector.load %arg1[%c0_1, %c0_2, %c0_3] : memref<7x32x32xf32, #tpu.memory_space<vmem>>, vector<1x32x32xf32>
    %2 = vector.shape_cast %1 : vector<1x32x32xf32> to vector<32x32xf32>
    %cst = arith.constant dense<0.000000e+00> : vector<32x64xf32>
    %3 = tpu.matmul %2, %0, %cst {dimension_numbers = #tpu.dot_dimension_numbers<[1], [0], [0], [1], [0, 0, 1, 1], [], []>} : vector<32x32xf32>, vector<32x64xf32>, vector<32x64xf32> -> vector<32x64xf32>
    %c1 = arith.constant 1 : index
    %c0_4 = arith.constant 0 : index
    %c0_5 = arith.constant 0 : index
    %4 = vector.load %arg1[%c1, %c0_4, %c0_5] : memref<7x32x32xf32, #tpu.memory_space<vmem>>, vector<1x32x32xf32>
    %5 = vector.shape_cast %4 : vector<1x32x32xf32> to vector<32x32xf32>
    %cst_6 = arith.constant dense<0.000000e+00> : vector<32x64xf32>
    %6 = tpu.matmul %5, %0, %cst_6 {dimension_numbers = #tpu.dot_dimension_numbers<[1], [0], [0], [1], [0, 0, 1, 1], [], []>} : vector<32x32xf32>, vector<32x64xf32>, vector<32x64xf32> -> vector<32x64xf32>
    %c2 = arith.constant 2 : index
    %c0_7 = arith.constant 0 : index
    %c0_8 = arith.constant 0 : index
    %7 = vector.load %arg1[%c2, %c0_7, %c0_8] : memref<7x32x32xf32, #tpu.memory_space<vmem>>, vector<1x32x32xf32>
    %8 = vector.shape_cast %7 : vector<1x32x32xf32> to vector<32x32xf32>
    %cst_9 = arith.constant dense<0.000000e+00> : vector<32x64xf32>
    %9 = tpu.matmul %8, %0, %cst_9 {dimension_numbers = #tpu.dot_dimension_numbers<[1], [0], [0], [1], [0, 0, 1, 1], [], []>} : vector<32x32xf32>, vector<32x64xf32>, vector<32x64xf32> -> vector<32x64xf32>
    %c3 = arith.constant 3 : index
    %c0_10 = arith.constant 0 : index
    %c0_11 = arith.constant 0 : index
    %10 = vector.load %arg1[%c3, %c0_10, %c0_11] : memref<7x32x32xf32, #tpu.memory_space<vmem>>, vector<1x32x32xf32>
    %11 = vector.shape_cast %10 : vector<1x32x32xf32> to vector<32x32xf32>
    %cst_12 = arith.constant dense<0.000000e+00> : vector<32x64xf32>
    %12 = tpu.matmul %11, %0, %cst_12 {dimension_numbers = #tpu.dot_dimension_numbers<[1], [0], [0], [1], [0, 0, 1, 1], [], []>} : vector<32x32xf32>, vector<32x64xf32>, vector<32x64xf32> -> vector<32x64xf32>
    %c4 = arith.constant 4 : index
    %c0_13 = arith.constant 0 : index
    %c0_14 = arith.constant 0 : index
    %13 = vector.load %arg1[%c4, %c0_13, %c0_14] : memref<7x32x32xf32, #tpu.memory_space<vmem>>, vector<1x32x32xf32>
    %14 = vector.shape_cast %13 : vector<1x32x32xf32> to vector<32x32xf32>
    %cst_15 = arith.constant dense<0.000000e+00> : vector<32x64xf32>
    %15 = tpu.matmul %14, %0, %cst_15 {dimension_numbers = #tpu.dot_dimension_numbers<[1], [0], [0], [1], [0, 0, 1, 1], [], []>} : vector<32x32xf32>, vector<32x64xf32>, vector<32x64xf32> -> vector<32x64xf32>
    %c5 = arith.constant 5 : index
    %c0_16 = arith.constant 0 : index
    %c0_17 = arith.constant 0 : index
    %16 = vector.load %arg1[%c5, %c0_16, %c0_17] : memref<7x32x32xf32, #tpu.memory_space<vmem>>, vector<1x32x32xf32>
    %17 = vector.shape_cast %16 : vector<1x32x32xf32> to vector<32x32xf32>
    %cst_18 = arith.constant dense<0.000000e+00> : vector<32x64xf32>
    %18 = tpu.matmul %17, %0, %cst_18 {dimension_numbers = #tpu.dot_dimension_numbers<[1], [0], [0], [1], [0, 0, 1, 1], [], []>} : vector<32x32xf32>, vector<32x64xf32>, vector<32x64xf32> -> vector<32x64xf32>
    %c6 = arith.constant 6 : index
    %c0_19 = arith.constant 0 : index
    %c0_20 = arith.constant 0 : index
    %19 = vector.load %arg1[%c6, %c0_19, %c0_20] : memref<7x32x32xf32, #tpu.memory_space<vmem>>, vector<1x32x32xf32>
    %20 = vector.shape_cast %19 : vector<1x32x32xf32> to vector<32x32xf32>
    %cst_21 = arith.constant dense<0.000000e+00> : vector<32x64xf32>
    %21 = tpu.matmul %20, %0, %cst_21 {dimension_numbers = #tpu.dot_dimension_numbers<[1], [0], [0], [1], [0, 0, 1, 1], [], []>} : vector<32x32xf32>, vector<32x64xf32>, vector<32x64xf32> -> vector<32x64xf32>
    %c0_22 = arith.constant 0 : index
    %c0_23 = arith.constant 0 : index
    %c0_24 = arith.constant 0 : index
    %22 = vector.load %arg5[%c0_22, %c0_23, %c0_24] : memref<7x64x128xf32, #tpu.memory_space<vmem>>, vector<1x64x128xf32>
    %23 = vector.shape_cast %22 : vector<1x64x128xf32> to vector<64x128xf32>
    %cst_25 = arith.constant dense<0.000000e+00> : vector<32x128xf32>
    %24 = tpu.matmul %3, %23, %cst_25 {dimension_numbers = #tpu.dot_dimension_numbers<[1], [0], [0], [1], [0, 0, 1, 1], [], []>} : vector<32x64xf32>, vector<64x128xf32>, vector<32x128xf32> -> vector<32x128xf32>
    %c1_26 = arith.constant 1 : index
    %c0_27 = arith.constant 0 : index
    %c0_28 = arith.constant 0 : index
    %25 = vector.load %arg5[%c1_26, %c0_27, %c0_28] : memref<7x64x128xf32, #tpu.memory_space<vmem>>, vector<1x64x128xf32>
    %26 = vector.shape_cast %25 : vector<1x64x128xf32> to vector<64x128xf32>
    %cst_29 = arith.constant dense<0.000000e+00> : vector<32x128xf32>
    %27 = tpu.matmul %6, %26, %cst_29 {dimension_numbers = #tpu.dot_dimension_numbers<[1], [0], [0], [1], [0, 0, 1, 1], [], []>} : vector<32x64xf32>, vector<64x128xf32>, vector<32x128xf32> -> vector<32x128xf32>
    %28 = arith.addf %24, %27 : vector<32x128xf32>
    %c2_30 = arith.constant 2 : index
    %c0_31 = arith.constant 0 : index
    %c0_32 = arith.constant 0 : index
    %29 = vector.load %arg5[%c2_30, %c0_31, %c0_32] : memref<7x64x128xf32, #tpu.memory_space<vmem>>, vector<1x64x128xf32>
    %30 = vector.shape_cast %29 : vector<1x64x128xf32> to vector<64x128xf32>
    %cst_33 = arith.constant dense<0.000000e+00> : vector<32x128xf32>
    %31 = tpu.matmul %9, %30, %cst_33 {dimension_numbers = #tpu.dot_dimension_numbers<[1], [0], [0], [1], [0, 0, 1, 1], [], []>} : vector<32x64xf32>, vector<64x128xf32>, vector<32x128xf32> -> vector<32x128xf32>
    %32 = arith.addf %28, %31 : vector<32x128xf32>
    %c3_34 = arith.constant 3 : index
    %c0_35 = arith.constant 0 : index
    %c0_36 = arith.constant 0 : index
    %33 = vector.load %arg5[%c3_34, %c0_35, %c0_36] : memref<7x64x128xf32, #tpu.memory_space<vmem>>, vector<1x64x128xf32>
    %34 = vector.shape_cast %33 : vector<1x64x128xf32> to vector<64x128xf32>
    %cst_37 = arith.constant dense<0.000000e+00> : vector<32x128xf32>
    %35 = tpu.matmul %12, %34, %cst_37 {dimension_numbers = #tpu.dot_dimension_numbers<[1], [0], [0], [1], [0, 0, 1, 1], [], []>} : vector<32x64xf32>, vector<64x128xf32>, vector<32x128xf32> -> vector<32x128xf32>
    %36 = arith.addf %32, %35 : vector<32x128xf32>
    %c4_38 = arith.constant 4 : index
    %c0_39 = arith.constant 0 : index
    %c0_40 = arith.constant 0 : index
    %37 = vector.load %arg5[%c4_38, %c0_39, %c0_40] : memref<7x64x128xf32, #tpu.memory_space<vmem>>, vector<1x64x128xf32>
    %38 = vector.shape_cast %37 : vector<1x64x128xf32> to vector<64x128xf32>
    %cst_41 = arith.constant dense<0.000000e+00> : vector<32x128xf32>
    %39 = tpu.matmul %15, %38, %cst_41 {dimension_numbers = #tpu.dot_dimension_numbers<[1], [0], [0], [1], [0, 0, 1, 1], [], []>} : vector<32x64xf32>, vector<64x128xf32>, vector<32x128xf32> -> vector<32x128xf32>
    %40 = arith.addf %36, %39 : vector<32x128xf32>
    %c5_42 = arith.constant 5 : index
    %c0_43 = arith.constant 0 : index
    %c0_44 = arith.constant 0 : index
    %41 = vector.load %arg5[%c5_42, %c0_43, %c0_44] : memref<7x64x128xf32, #tpu.memory_space<vmem>>, vector<1x64x128xf32>
    %42 = vector.shape_cast %41 : vector<1x64x128xf32> to vector<64x128xf32>
    %cst_45 = arith.constant dense<0.000000e+00> : vector<32x128xf32>
    %43 = tpu.matmul %18, %42, %cst_45 {dimension_numbers = #tpu.dot_dimension_numbers<[1], [0], [0], [1], [0, 0, 1, 1], [], []>} : vector<32x64xf32>, vector<64x128xf32>, vector<32x128xf32> -> vector<32x128xf32>
    %44 = arith.addf %40, %43 : vector<32x128xf32>
    %c6_46 = arith.constant 6 : index
    %c0_47 = arith.constant 0 : index
    %c0_48 = arith.constant 0 : index
    %45 = vector.load %arg5[%c6_46, %c0_47, %c0_48] : memref<7x64x128xf32, #tpu.memory_space<vmem>>, vector<1x64x128xf32>
    %46 = vector.shape_cast %45 : vector<1x64x128xf32> to vector<64x128xf32>
    %cst_49 = arith.constant dense<0.000000e+00> : vector<32x128xf32>
    %47 = tpu.matmul %21, %46, %cst_49 {dimension_numbers = #tpu.dot_dimension_numbers<[1], [0], [0], [1], [0, 0, 1, 1], [], []>} : vector<32x64xf32>, vector<64x128xf32>, vector<32x128xf32> -> vector<32x128xf32>
    %48 = arith.addf %44, %47 : vector<32x128xf32>
    %c0_50 = arith.constant 0 : index
    %c0_51 = arith.constant 0 : index
    %49 = vector.load %arg6[%c0_50, %c0_51] : memref<1x128xf32, #tpu.memory_space<vmem>>, vector<1x128xf32>
    %50 = vector.broadcast %49 : vector<1x128xf32> to vector<32x128xf32>
    %51 = arith.addf %48, %50 : vector<32x128xf32>
    %c0_52 = arith.constant 0 : index
    %c0_53 = arith.constant 0 : index
    %c0_54 = arith.constant 0 : index
    %52 = vector.load %arg2[%c0_52, %c0_53, %c0_54] : memref<3x32x32xf32, #tpu.memory_space<vmem>>, vector<1x32x32xf32>
    %53 = vector.shape_cast %52 : vector<1x32x32xf32> to vector<32x32xf32>
    %cst_55 = arith.constant dense<0.000000e+00> : vector<32x128xf32>
    %54 = tpu.matmul %53, %51, %cst_55 {dimension_numbers = #tpu.dot_dimension_numbers<[1], [0], [0], [1], [0, 0, 1, 1], [], []>} : vector<32x32xf32>, vector<32x128xf32>, vector<32x128xf32> -> vector<32x128xf32>
    %c1_56 = arith.constant 1 : index
    %c0_57 = arith.constant 0 : index
    %c0_58 = arith.constant 0 : index
    %55 = vector.load %arg2[%c1_56, %c0_57, %c0_58] : memref<3x32x32xf32, #tpu.memory_space<vmem>>, vector<1x32x32xf32>
    %56 = vector.shape_cast %55 : vector<1x32x32xf32> to vector<32x32xf32>
    %cst_59 = arith.constant dense<0.000000e+00> : vector<32x128xf32>
    %57 = tpu.matmul %56, %51, %cst_59 {dimension_numbers = #tpu.dot_dimension_numbers<[1], [0], [0], [1], [0, 0, 1, 1], [], []>} : vector<32x32xf32>, vector<32x128xf32>, vector<32x128xf32> -> vector<32x128xf32>
    %c2_60 = arith.constant 2 : index
    %c0_61 = arith.constant 0 : index
    %c0_62 = arith.constant 0 : index
    %58 = vector.load %arg2[%c2_60, %c0_61, %c0_62] : memref<3x32x32xf32, #tpu.memory_space<vmem>>, vector<1x32x32xf32>
    %59 = vector.shape_cast %58 : vector<1x32x32xf32> to vector<32x32xf32>
    %cst_63 = arith.constant dense<0.000000e+00> : vector<32x128xf32>
    %60 = tpu.matmul %59, %51, %cst_63 {dimension_numbers = #tpu.dot_dimension_numbers<[1], [0], [0], [1], [0, 0, 1, 1], [], []>} : vector<32x32xf32>, vector<32x128xf32>, vector<32x128xf32> -> vector<32x128xf32>
    %c0_64 = arith.constant 0 : index
    %c0_65 = arith.constant 0 : index
    %c0_66 = arith.constant 0 : index
    %61 = vector.load %arg7[%c0_64, %c0_65, %c0_66] : memref<3x128x128xf32, #tpu.memory_space<vmem>>, vector<1x128x128xf32>
    %62 = vector.shape_cast %61 : vector<1x128x128xf32> to vector<128x128xf32>
    %cst_67 = arith.constant dense<0.000000e+00> : vector<32x128xf32>
    %63 = tpu.matmul %54, %62, %cst_67 {dimension_numbers = #tpu.dot_dimension_numbers<[1], [0], [0], [1], [0, 0, 1, 1], [], []>} : vector<32x128xf32>, vector<128x128xf32>, vector<32x128xf32> -> vector<32x128xf32>
    %c1_68 = arith.constant 1 : index
    %c0_69 = arith.constant 0 : index
    %c0_70 = arith.constant 0 : index
    %64 = vector.load %arg7[%c1_68, %c0_69, %c0_70] : memref<3x128x128xf32, #tpu.memory_space<vmem>>, vector<1x128x128xf32>
    %65 = vector.shape_cast %64 : vector<1x128x128xf32> to vector<128x128xf32>
    %cst_71 = arith.constant dense<0.000000e+00> : vector<32x128xf32>
    %66 = tpu.matmul %57, %65, %cst_71 {dimension_numbers = #tpu.dot_dimension_numbers<[1], [0], [0], [1], [0, 0, 1, 1], [], []>} : vector<32x128xf32>, vector<128x128xf32>, vector<32x128xf32> -> vector<32x128xf32>
    %67 = arith.addf %63, %66 : vector<32x128xf32>
    %c2_72 = arith.constant 2 : index
    %c0_73 = arith.constant 0 : index
    %c0_74 = arith.constant 0 : index
    %68 = vector.load %arg7[%c2_72, %c0_73, %c0_74] : memref<3x128x128xf32, #tpu.memory_space<vmem>>, vector<1x128x128xf32>
    %69 = vector.shape_cast %68 : vector<1x128x128xf32> to vector<128x128xf32>
    %cst_75 = arith.constant dense<0.000000e+00> : vector<32x128xf32>
    %70 = tpu.matmul %60, %69, %cst_75 {dimension_numbers = #tpu.dot_dimension_numbers<[1], [0], [0], [1], [0, 0, 1, 1], [], []>} : vector<32x128xf32>, vector<128x128xf32>, vector<32x128xf32> -> vector<32x128xf32>
    %71 = arith.addf %67, %70 : vector<32x128xf32>
    %c0_76 = arith.constant 0 : index
    %c0_77 = arith.constant 0 : index
    %72 = vector.load %arg8[%c0_76, %c0_77] : memref<1x128xf32, #tpu.memory_space<vmem>>, vector<1x128xf32>
    %73 = vector.broadcast %72 : vector<1x128xf32> to vector<32x128xf32>
    %74 = arith.addf %71, %73 : vector<32x128xf32>
    %c0_78 = arith.constant 0 : index
    %c0_79 = arith.constant 0 : index
    %c0_80 = arith.constant 0 : index
    %75 = vector.load %arg3[%c0_78, %c0_79, %c0_80] : memref<3x16x32xf32, #tpu.memory_space<vmem>>, vector<1x16x32xf32>
    %76 = vector.shape_cast %75 : vector<1x16x32xf32> to vector<16x32xf32>
    %cst_81 = arith.constant dense<0.000000e+00> : vector<16x128xf32>
    %77 = tpu.matmul %76, %74, %cst_81 {dimension_numbers = #tpu.dot_dimension_numbers<[1], [0], [0], [1], [0, 0, 1, 1], [], []>} : vector<16x32xf32>, vector<32x128xf32>, vector<16x128xf32> -> vector<16x128xf32>
    %c1_82 = arith.constant 1 : index
    %c0_83 = arith.constant 0 : index
    %c0_84 = arith.constant 0 : index
    %78 = vector.load %arg3[%c1_82, %c0_83, %c0_84] : memref<3x16x32xf32, #tpu.memory_space<vmem>>, vector<1x16x32xf32>
    %79 = vector.shape_cast %78 : vector<1x16x32xf32> to vector<16x32xf32>
    %cst_85 = arith.constant dense<0.000000e+00> : vector<16x128xf32>
    %80 = tpu.matmul %79, %74, %cst_85 {dimension_numbers = #tpu.dot_dimension_numbers<[1], [0], [0], [1], [0, 0, 1, 1], [], []>} : vector<16x32xf32>, vector<32x128xf32>, vector<16x128xf32> -> vector<16x128xf32>
    %c2_86 = arith.constant 2 : index
    %c0_87 = arith.constant 0 : index
    %c0_88 = arith.constant 0 : index
    %81 = vector.load %arg3[%c2_86, %c0_87, %c0_88] : memref<3x16x32xf32, #tpu.memory_space<vmem>>, vector<1x16x32xf32>
    %82 = vector.shape_cast %81 : vector<1x16x32xf32> to vector<16x32xf32>
    %cst_89 = arith.constant dense<0.000000e+00> : vector<16x128xf32>
    %83 = tpu.matmul %82, %74, %cst_89 {dimension_numbers = #tpu.dot_dimension_numbers<[1], [0], [0], [1], [0, 0, 1, 1], [], []>} : vector<16x32xf32>, vector<32x128xf32>, vector<16x128xf32> -> vector<16x128xf32>
    %c0_90 = arith.constant 0 : index
    %c0_91 = arith.constant 0 : index
    %c0_92 = arith.constant 0 : index
    %84 = vector.load %arg9[%c0_90, %c0_91, %c0_92] : memref<3x128x128xf32, #tpu.memory_space<vmem>>, vector<1x128x128xf32>
    %85 = vector.shape_cast %84 : vector<1x128x128xf32> to vector<128x128xf32>
    %cst_93 = arith.constant dense<0.000000e+00> : vector<16x128xf32>
    %86 = tpu.matmul %77, %85, %cst_93 {dimension_numbers = #tpu.dot_dimension_numbers<[1], [0], [0], [1], [0, 0, 1, 1], [], []>} : vector<16x128xf32>, vector<128x128xf32>, vector<16x128xf32> -> vector<16x128xf32>
    %c1_94 = arith.constant 1 : index
    %c0_95 = arith.constant 0 : index
    %c0_96 = arith.constant 0 : index
    %87 = vector.load %arg9[%c1_94, %c0_95, %c0_96] : memref<3x128x128xf32, #tpu.memory_space<vmem>>, vector<1x128x128xf32>
    %88 = vector.shape_cast %87 : vector<1x128x128xf32> to vector<128x128xf32>
    %cst_97 = arith.constant dense<0.000000e+00> : vector<16x128xf32>
    %89 = tpu.matmul %80, %88, %cst_97 {dimension_numbers = #tpu.dot_dimension_numbers<[1], [0], [0], [1], [0, 0, 1, 1], [], []>} : vector<16x128xf32>, vector<128x128xf32>, vector<16x128xf32> -> vector<16x128xf32>
    %90 = arith.addf %86, %89 : vector<16x128xf32>
    %c2_98 = arith.constant 2 : index
    %c0_99 = arith.constant 0 : index
    %c0_100 = arith.constant 0 : index
    %91 = vector.load %arg9[%c2_98, %c0_99, %c0_100] : memref<3x128x128xf32, #tpu.memory_space<vmem>>, vector<1x128x128xf32>
    %92 = vector.shape_cast %91 : vector<1x128x128xf32> to vector<128x128xf32>
    %cst_101 = arith.constant dense<0.000000e+00> : vector<16x128xf32>
    %93 = tpu.matmul %83, %92, %cst_101 {dimension_numbers = #tpu.dot_dimension_numbers<[1], [0], [0], [1], [0, 0, 1, 1], [], []>} : vector<16x128xf32>, vector<128x128xf32>, vector<16x128xf32> -> vector<16x128xf32>
    %94 = arith.addf %90, %93 : vector<16x128xf32>
    %c0_102 = arith.constant 0 : index
    %c0_103 = arith.constant 0 : index
    %95 = vector.load %arg10[%c0_102, %c0_103] : memref<1x128xf32, #tpu.memory_space<vmem>>, vector<1x128xf32>
    %96 = vector.broadcast %95 : vector<1x128xf32> to vector<16x128xf32>
    %97 = arith.addf %94, %96 : vector<16x128xf32>
    %cst_104 = arith.constant 0.000000e+00 : f32
    %98 = vector.broadcast %cst_104 : f32 to vector<16x128xf32>
    %99 = arith.maximumf %97, %98 : vector<16x128xf32>
    %c0_105 = arith.constant 0 : index
    %c0_106 = arith.constant 0 : index
    %c0_107 = arith.constant 0 : index
    %100 = vector.load %arg11[%c0_105, %c0_106, %c0_107] : memref<3x128x128xf32, #tpu.memory_space<vmem>>, vector<1x128x128xf32>
    %101 = vector.shape_cast %100 : vector<1x128x128xf32> to vector<128x128xf32>
    %cst_108 = arith.constant dense<0.000000e+00> : vector<16x128xf32>
    %102 = tpu.matmul %77, %101, %cst_108 {dimension_numbers = #tpu.dot_dimension_numbers<[1], [0], [0], [1], [0, 0, 1, 1], [], []>} : vector<16x128xf32>, vector<128x128xf32>, vector<16x128xf32> -> vector<16x128xf32>
    %c1_109 = arith.constant 1 : index
    %c0_110 = arith.constant 0 : index
    %c0_111 = arith.constant 0 : index
    %103 = vector.load %arg11[%c1_109, %c0_110, %c0_111] : memref<3x128x128xf32, #tpu.memory_space<vmem>>, vector<1x128x128xf32>
    %104 = vector.shape_cast %103 : vector<1x128x128xf32> to vector<128x128xf32>
    %cst_112 = arith.constant dense<0.000000e+00> : vector<16x128xf32>
    %105 = tpu.matmul %80, %104, %cst_112 {dimension_numbers = #tpu.dot_dimension_numbers<[1], [0], [0], [1], [0, 0, 1, 1], [], []>} : vector<16x128xf32>, vector<128x128xf32>, vector<16x128xf32> -> vector<16x128xf32>
    %106 = arith.addf %102, %105 : vector<16x128xf32>
    %c2_113 = arith.constant 2 : index
    %c0_114 = arith.constant 0 : index
    %c0_115 = arith.constant 0 : index
    %107 = vector.load %arg11[%c2_113, %c0_114, %c0_115] : memref<3x128x128xf32, #tpu.memory_space<vmem>>, vector<1x128x128xf32>
    %108 = vector.shape_cast %107 : vector<1x128x128xf32> to vector<128x128xf32>
    %cst_116 = arith.constant dense<0.000000e+00> : vector<16x128xf32>
    %109 = tpu.matmul %83, %108, %cst_116 {dimension_numbers = #tpu.dot_dimension_numbers<[1], [0], [0], [1], [0, 0, 1, 1], [], []>} : vector<16x128xf32>, vector<128x128xf32>, vector<16x128xf32> -> vector<16x128xf32>
    %110 = arith.addf %106, %109 : vector<16x128xf32>
    %c0_117 = arith.constant 0 : index
    %c0_118 = arith.constant 0 : index
    %111 = vector.load %arg12[%c0_117, %c0_118] : memref<1x128xf32, #tpu.memory_space<vmem>>, vector<1x128xf32>
    %112 = vector.broadcast %111 : vector<1x128xf32> to vector<16x128xf32>
    %113 = arith.addf %110, %112 : vector<16x128xf32>
    %c0_119 = arith.constant 0 : index
    %c0_120 = arith.constant 0 : index
    %c0_121 = arith.constant 0 : index
    %114 = vector.load %arg4[%c0_119, %c0_120, %c0_121] : memref<3x16x16xf32, #tpu.memory_space<vmem>>, vector<1x16x16xf32>
    %115 = vector.shape_cast %114 : vector<1x16x16xf32> to vector<16x16xf32>
    %cst_122 = arith.constant dense<0.000000e+00> : vector<16x128xf32>
    %116 = tpu.matmul %115, %99, %cst_122 {dimension_numbers = #tpu.dot_dimension_numbers<[1], [0], [0], [1], [0, 0, 1, 1], [], []>} : vector<16x16xf32>, vector<16x128xf32>, vector<16x128xf32> -> vector<16x128xf32>
    %c1_123 = arith.constant 1 : index
    %c0_124 = arith.constant 0 : index
    %c0_125 = arith.constant 0 : index
    %117 = vector.load %arg4[%c1_123, %c0_124, %c0_125] : memref<3x16x16xf32, #tpu.memory_space<vmem>>, vector<1x16x16xf32>
    %118 = vector.shape_cast %117 : vector<1x16x16xf32> to vector<16x16xf32>
    %cst_126 = arith.constant dense<0.000000e+00> : vector<16x128xf32>
    %119 = tpu.matmul %118, %99, %cst_126 {dimension_numbers = #tpu.dot_dimension_numbers<[1], [0], [0], [1], [0, 0, 1, 1], [], []>} : vector<16x16xf32>, vector<16x128xf32>, vector<16x128xf32> -> vector<16x128xf32>
    %c2_127 = arith.constant 2 : index
    %c0_128 = arith.constant 0 : index
    %c0_129 = arith.constant 0 : index
    %120 = vector.load %arg4[%c2_127, %c0_128, %c0_129] : memref<3x16x16xf32, #tpu.memory_space<vmem>>, vector<1x16x16xf32>
    %121 = vector.shape_cast %120 : vector<1x16x16xf32> to vector<16x16xf32>
    %cst_130 = arith.constant dense<0.000000e+00> : vector<16x128xf32>
    %122 = tpu.matmul %121, %99, %cst_130 {dimension_numbers = #tpu.dot_dimension_numbers<[1], [0], [0], [1], [0, 0, 1, 1], [], []>} : vector<16x16xf32>, vector<16x128xf32>, vector<16x128xf32> -> vector<16x128xf32>
    %c0_131 = arith.constant 0 : index
    %c0_132 = arith.constant 0 : index
    %c0_133 = arith.constant 0 : index
    %123 = vector.load %arg13[%c0_131, %c0_132, %c0_133] : memref<3x128x128xf32, #tpu.memory_space<vmem>>, vector<1x128x128xf32>
    %124 = vector.shape_cast %123 : vector<1x128x128xf32> to vector<128x128xf32>
    %cst_134 = arith.constant dense<0.000000e+00> : vector<16x128xf32>
    %125 = tpu.matmul %116, %124, %cst_134 {dimension_numbers = #tpu.dot_dimension_numbers<[1], [0], [0], [1], [0, 0, 1, 1], [], []>} : vector<16x128xf32>, vector<128x128xf32>, vector<16x128xf32> -> vector<16x128xf32>
    %c1_135 = arith.constant 1 : index
    %c0_136 = arith.constant 0 : index
    %c0_137 = arith.constant 0 : index
    %126 = vector.load %arg13[%c1_135, %c0_136, %c0_137] : memref<3x128x128xf32, #tpu.memory_space<vmem>>, vector<1x128x128xf32>
    %127 = vector.shape_cast %126 : vector<1x128x128xf32> to vector<128x128xf32>
    %cst_138 = arith.constant dense<0.000000e+00> : vector<16x128xf32>
    %128 = tpu.matmul %119, %127, %cst_138 {dimension_numbers = #tpu.dot_dimension_numbers<[1], [0], [0], [1], [0, 0, 1, 1], [], []>} : vector<16x128xf32>, vector<128x128xf32>, vector<16x128xf32> -> vector<16x128xf32>
    %129 = arith.addf %125, %128 : vector<16x128xf32>
    %c2_139 = arith.constant 2 : index
    %c0_140 = arith.constant 0 : index
    %c0_141 = arith.constant 0 : index
    %130 = vector.load %arg13[%c2_139, %c0_140, %c0_141] : memref<3x128x128xf32, #tpu.memory_space<vmem>>, vector<1x128x128xf32>
    %131 = vector.shape_cast %130 : vector<1x128x128xf32> to vector<128x128xf32>
    %cst_142 = arith.constant dense<0.000000e+00> : vector<16x128xf32>
    %132 = tpu.matmul %122, %131, %cst_142 {dimension_numbers = #tpu.dot_dimension_numbers<[1], [0], [0], [1], [0, 0, 1, 1], [], []>} : vector<16x128xf32>, vector<128x128xf32>, vector<16x128xf32> -> vector<16x128xf32>
    %133 = arith.addf %129, %132 : vector<16x128xf32>
    %c0_143 = arith.constant 0 : index
    %c0_144 = arith.constant 0 : index
    %134 = vector.load %arg14[%c0_143, %c0_144] : memref<1x128xf32, #tpu.memory_space<vmem>>, vector<1x128xf32>
    %135 = vector.broadcast %134 : vector<1x128xf32> to vector<16x128xf32>
    %136 = arith.addf %133, %135 : vector<16x128xf32>
    %137 = arith.addf %136, %113 : vector<16x128xf32>
    %c0_145 = arith.constant 0 : index
    %c0_146 = arith.constant 0 : index
    %c0_147 = arith.constant 0 : index
    %138 = vector.load %arg4[%c0_145, %c0_146, %c0_147] : memref<3x16x16xf32, #tpu.memory_space<vmem>>, vector<1x16x16xf32>
    %139 = vector.shape_cast %138 : vector<1x16x16xf32> to vector<16x16xf32>
    %cst_148 = arith.constant dense<0.000000e+00> : vector<16x128xf32>
    %140 = tpu.matmul %139, %137, %cst_148 {dimension_numbers = #tpu.dot_dimension_numbers<[1], [0], [0], [1], [0, 0, 1, 1], [], []>} : vector<16x16xf32>, vector<16x128xf32>, vector<16x128xf32> -> vector<16x128xf32>
    %c1_149 = arith.constant 1 : index
    %c0_150 = arith.constant 0 : index
    %c0_151 = arith.constant 0 : index
    %141 = vector.load %arg4[%c1_149, %c0_150, %c0_151] : memref<3x16x16xf32, #tpu.memory_space<vmem>>, vector<1x16x16xf32>
    %142 = vector.shape_cast %141 : vector<1x16x16xf32> to vector<16x16xf32>
    %cst_152 = arith.constant dense<0.000000e+00> : vector<16x128xf32>
    %143 = tpu.matmul %142, %137, %cst_152 {dimension_numbers = #tpu.dot_dimension_numbers<[1], [0], [0], [1], [0, 0, 1, 1], [], []>} : vector<16x16xf32>, vector<16x128xf32>, vector<16x128xf32> -> vector<16x128xf32>
    %c2_153 = arith.constant 2 : index
    %c0_154 = arith.constant 0 : index
    %c0_155 = arith.constant 0 : index
    %144 = vector.load %arg4[%c2_153, %c0_154, %c0_155] : memref<3x16x16xf32, #tpu.memory_space<vmem>>, vector<1x16x16xf32>
    %145 = vector.shape_cast %144 : vector<1x16x16xf32> to vector<16x16xf32>
    %cst_156 = arith.constant dense<0.000000e+00> : vector<16x128xf32>
    %146 = tpu.matmul %145, %137, %cst_156 {dimension_numbers = #tpu.dot_dimension_numbers<[1], [0], [0], [1], [0, 0, 1, 1], [], []>} : vector<16x16xf32>, vector<16x128xf32>, vector<16x128xf32> -> vector<16x128xf32>
    %c0_157 = arith.constant 0 : index
    %c0_158 = arith.constant 0 : index
    %c0_159 = arith.constant 0 : index
    %147 = vector.load %arg15[%c0_157, %c0_158, %c0_159] : memref<3x128x128xf32, #tpu.memory_space<vmem>>, vector<1x128x128xf32>
    %148 = vector.shape_cast %147 : vector<1x128x128xf32> to vector<128x128xf32>
    %cst_160 = arith.constant dense<0.000000e+00> : vector<16x128xf32>
    %149 = tpu.matmul %140, %148, %cst_160 {dimension_numbers = #tpu.dot_dimension_numbers<[1], [0], [0], [1], [0, 0, 1, 1], [], []>} : vector<16x128xf32>, vector<128x128xf32>, vector<16x128xf32> -> vector<16x128xf32>
    %c1_161 = arith.constant 1 : index
    %c0_162 = arith.constant 0 : index
    %c0_163 = arith.constant 0 : index
    %150 = vector.load %arg15[%c1_161, %c0_162, %c0_163] : memref<3x128x128xf32, #tpu.memory_space<vmem>>, vector<1x128x128xf32>
    %151 = vector.shape_cast %150 : vector<1x128x128xf32> to vector<128x128xf32>
    %cst_164 = arith.constant dense<0.000000e+00> : vector<16x128xf32>
    %152 = tpu.matmul %143, %151, %cst_164 {dimension_numbers = #tpu.dot_dimension_numbers<[1], [0], [0], [1], [0, 0, 1, 1], [], []>} : vector<16x128xf32>, vector<128x128xf32>, vector<16x128xf32> -> vector<16x128xf32>
    %153 = arith.addf %149, %152 : vector<16x128xf32>
    %c2_165 = arith.constant 2 : index
    %c0_166 = arith.constant 0 : index
    %c0_167 = arith.constant 0 : index
    %154 = vector.load %arg15[%c2_165, %c0_166, %c0_167] : memref<3x128x128xf32, #tpu.memory_space<vmem>>, vector<1x128x128xf32>
    %155 = vector.shape_cast %154 : vector<1x128x128xf32> to vector<128x128xf32>
    %cst_168 = arith.constant dense<0.000000e+00> : vector<16x128xf32>
    %156 = tpu.matmul %146, %155, %cst_168 {dimension_numbers = #tpu.dot_dimension_numbers<[1], [0], [0], [1], [0, 0, 1, 1], [], []>} : vector<16x128xf32>, vector<128x128xf32>, vector<16x128xf32> -> vector<16x128xf32>
    %157 = arith.addf %153, %156 : vector<16x128xf32>
    %c0_169 = arith.constant 0 : index
    %c0_170 = arith.constant 0 : index
    %158 = vector.load %arg16[%c0_169, %c0_170] : memref<1x128xf32, #tpu.memory_space<vmem>>, vector<1x128xf32>
    %159 = vector.broadcast %158 : vector<1x128xf32> to vector<16x128xf32>
    %160 = arith.addf %157, %159 : vector<16x128xf32>
    %cst_171 = arith.constant 0.000000e+00 : f32
    %161 = vector.broadcast %cst_171 : f32 to vector<16x128xf32>
    %162 = arith.maximumf %160, %161 : vector<16x128xf32>
    %c0_172 = arith.constant 0 : index
    %c0_173 = arith.constant 0 : index
    %c0_174 = arith.constant 0 : index
    %163 = vector.load %arg4[%c0_172, %c0_173, %c0_174] : memref<3x16x16xf32, #tpu.memory_space<vmem>>, vector<1x16x16xf32>
    %164 = vector.shape_cast %163 : vector<1x16x16xf32> to vector<16x16xf32>
    %cst_175 = arith.constant dense<0.000000e+00> : vector<16x128xf32>
    %165 = tpu.matmul %164, %162, %cst_175 {dimension_numbers = #tpu.dot_dimension_numbers<[1], [0], [0], [1], [0, 0, 1, 1], [], []>} : vector<16x16xf32>, vector<16x128xf32>, vector<16x128xf32> -> vector<16x128xf32>
    %c1_176 = arith.constant 1 : index
    %c0_177 = arith.constant 0 : index
    %c0_178 = arith.constant 0 : index
    %166 = vector.load %arg4[%c1_176, %c0_177, %c0_178] : memref<3x16x16xf32, #tpu.memory_space<vmem>>, vector<1x16x16xf32>
    %167 = vector.shape_cast %166 : vector<1x16x16xf32> to vector<16x16xf32>
    %cst_179 = arith.constant dense<0.000000e+00> : vector<16x128xf32>
    %168 = tpu.matmul %167, %162, %cst_179 {dimension_numbers = #tpu.dot_dimension_numbers<[1], [0], [0], [1], [0, 0, 1, 1], [], []>} : vector<16x16xf32>, vector<16x128xf32>, vector<16x128xf32> -> vector<16x128xf32>
    %c2_180 = arith.constant 2 : index
    %c0_181 = arith.constant 0 : index
    %c0_182 = arith.constant 0 : index
    %169 = vector.load %arg4[%c2_180, %c0_181, %c0_182] : memref<3x16x16xf32, #tpu.memory_space<vmem>>, vector<1x16x16xf32>
    %170 = vector.shape_cast %169 : vector<1x16x16xf32> to vector<16x16xf32>
    %cst_183 = arith.constant dense<0.000000e+00> : vector<16x128xf32>
    %171 = tpu.matmul %170, %162, %cst_183 {dimension_numbers = #tpu.dot_dimension_numbers<[1], [0], [0], [1], [0, 0, 1, 1], [], []>} : vector<16x16xf32>, vector<16x128xf32>, vector<16x128xf32> -> vector<16x128xf32>
    %c0_184 = arith.constant 0 : index
    %c0_185 = arith.constant 0 : index
    %c0_186 = arith.constant 0 : index
    %172 = vector.load %arg17[%c0_184, %c0_185, %c0_186] : memref<3x128x128xf32, #tpu.memory_space<vmem>>, vector<1x128x128xf32>
    %173 = vector.shape_cast %172 : vector<1x128x128xf32> to vector<128x128xf32>
    %cst_187 = arith.constant dense<0.000000e+00> : vector<16x128xf32>
    %174 = tpu.matmul %165, %173, %cst_187 {dimension_numbers = #tpu.dot_dimension_numbers<[1], [0], [0], [1], [0, 0, 1, 1], [], []>} : vector<16x128xf32>, vector<128x128xf32>, vector<16x128xf32> -> vector<16x128xf32>
    %c1_188 = arith.constant 1 : index
    %c0_189 = arith.constant 0 : index
    %c0_190 = arith.constant 0 : index
    %175 = vector.load %arg17[%c1_188, %c0_189, %c0_190] : memref<3x128x128xf32, #tpu.memory_space<vmem>>, vector<1x128x128xf32>
    %176 = vector.shape_cast %175 : vector<1x128x128xf32> to vector<128x128xf32>
    %cst_191 = arith.constant dense<0.000000e+00> : vector<16x128xf32>
    %177 = tpu.matmul %168, %176, %cst_191 {dimension_numbers = #tpu.dot_dimension_numbers<[1], [0], [0], [1], [0, 0, 1, 1], [], []>} : vector<16x128xf32>, vector<128x128xf32>, vector<16x128xf32> -> vector<16x128xf32>
    %178 = arith.addf %174, %177 : vector<16x128xf32>
    %c2_192 = arith.constant 2 : index
    %c0_193 = arith.constant 0 : index
    %c0_194 = arith.constant 0 : index
    %179 = vector.load %arg17[%c2_192, %c0_193, %c0_194] : memref<3x128x128xf32, #tpu.memory_space<vmem>>, vector<1x128x128xf32>
    %180 = vector.shape_cast %179 : vector<1x128x128xf32> to vector<128x128xf32>
    %cst_195 = arith.constant dense<0.000000e+00> : vector<16x128xf32>
    %181 = tpu.matmul %171, %180, %cst_195 {dimension_numbers = #tpu.dot_dimension_numbers<[1], [0], [0], [1], [0, 0, 1, 1], [], []>} : vector<16x128xf32>, vector<128x128xf32>, vector<16x128xf32> -> vector<16x128xf32>
    %182 = arith.addf %178, %181 : vector<16x128xf32>
    %c0_196 = arith.constant 0 : index
    %c0_197 = arith.constant 0 : index
    %183 = vector.load %arg18[%c0_196, %c0_197] : memref<1x128xf32, #tpu.memory_space<vmem>>, vector<1x128xf32>
    %184 = vector.broadcast %183 : vector<1x128xf32> to vector<16x128xf32>
    %185 = arith.addf %182, %184 : vector<16x128xf32>
    %186 = arith.addf %185, %137 : vector<16x128xf32>
    %c0_198 = arith.constant 0 : index
    %c0_199 = arith.constant 0 : index
    %187 = vector.load %arg19[%c0_198, %c0_199] : memref<16x128xf32, #tpu.memory_space<vmem>>, vector<16x128xf32>
    tpu.vector_store %arg19[%c0_198, %c0_199], %186 {strides = array<i32>} : memref<16x128xf32, #tpu.memory_space<vmem>>, vector<16x128xf32>,
    return
  }
}

</mosaic_0001>

<bundles_post_ra>
// kernel: resnet_forward_pallas.1
= control target key start
LH: loop header
LB: loop body
LE: loop exit
PB: predicated region body
PF: predicated region fallthrough
CT: control target
= control target key end

     0   :  { %s7275_s0 = inlined_call_operand.vmem [shape: f32[32,64], index: 0, kind: input, shape index: {}]   ;;  %s7276_s1 = inlined_call_operand.hbm [shape: f32[7,32,32], index: 1, kind: input, shape index: {}]   ;;  %s7277_s2 = inlined_call_operand.vmem [shape: f32[3,32,32], index: 2, kind: input, shape index: {}]   ;;  %s7278_s3 = inlined_call_operand.hbm [shape: f32[3,16,32], index: 3, kind: input, shape index: {}]   ;;  %s7279_s4 = inlined_call_operand.hbm [shape: f32[3,16,16], index: 4, kind: input, shape index: {}]   ;;  %s7280_s5 = inlined_call_operand.vmem [shape: f32[7,64,128], index: 5, kind: input, shape index: {}]   ;;  %s7281_s6 = inlined_call_operand.vmem [shape: f32[1,128], index: 6, kind: input, shape index: {}]   ;;  %s7282_s7 = inlined_call_operand.hbm [shape: f32[3,128,128], index: 7, kind: input, shape index: {}]   ;;  %s7283_s8 = inlined_call_operand.vmem [shape: f32[1,128], index: 8, kind: input, shape index: {}]   ;;  %s7284_s9 = inlined_call_operand.hbm [shape: f32[3,128,128], index: 9, kind: input, shape index: {}]   ;;  %s7285_s10 = inlined_call_operand.vmem [shape: f32[1,128], index: 10, kind: input, shape index: {}]   ;;  %s7286_s11 = inlined_call_operand.hbm [shape: f32[3,128,128], index: 11, kind: input, shape index: {}]   ;;  %s7287_s12 = inlined_call_operand.vmem [shape: f32[1,128], index: 12, kind: input, shape index: {}]   ;;  %s7288_s13 = inlined_call_operand.hbm [shape: f32[3,128,128], index: 13, kind: input, shape index: {}]   ;;  %s7289_s14 = inlined_call_operand.vmem [shape: f32[1,128], index: 14, kind: input, shape index: {}]   ;;  %s7290_s15 = inlined_call_operand.hbm [shape: f32[3,128,128], index: 15, kind: input, shape index: {}]   ;;  %s7291_s16 = inlined_call_operand.vmem [shape: f32[1,128], index: 16, kind: input, shape index: {}]   ;;  %s7292_s17 = inlined_call_operand.hbm [shape: f32[3,128,128], index: 17, kind: input, shape index: {}]   ;;  %s7293_s18 = inlined_call_operand.vmem [shape: f32[1,128], index: 18, kind: input, shape index: {}]   ;;  %s7294_s19 = inlined_call_operand.vmem [shape: f32[16,128], index: 19, kind: output, shape index: {}]  }
   0x1   :  { %7297 = sst [smem:[#allocation21_spill]] %s7275_s0 }
   0x2   :  { %7298 = sst [smem:[#allocation22_spill]] %s7276_s1 }
   0x3   :  { %7299 = sst [smem:[#allocation23_spill]] %s7277_s2 }
   0x4   :  { %7300 = sst [smem:[#allocation24_spill]] %s7278_s3 }
   0x5   :  { %24 = vsyncpa [#allocation3], 0 }
   0x6   :  { %25 = vsyncpa [#allocation5], 0 }
   0x7   :  { %26 = vsyncpa [#allocation8], 0 }
   0x8   :  { %27 = vsyncpa [#allocation11], 0 }
   0x9   :  { %28 = vsyncpa [#allocation14], 0  ;;  %s6635_s0 = smov [#allocation4]   ;;  %s6636_s20 = smov [#allocation7]  }
   0xa   :  { %s50_s30 = sshll.u32 %s6635_s0, 4  ;;  %s78_s21 = sshll.u32 %s6636_s20, 4  ;;  %s51_s30 = int_to_ptr.vmem [resolvable:$true] %s50_s30  ;;  %s79_s21 = int_to_ptr.vmem [resolvable:$true] %s78_s21 }
   0xb   :  { %s6453_s1 = scalar_lea.vmem %s51_s30, 768  ;;  %p6458_p1 = scmp.lt.s32.totalorder %s51_s30, %s51_s30 }
   0xc   :  { %p6454_p0 = scmp.ne.s32.totalorder %s51_s30, %s6453_s1  ;;  %p6459_p2 = scmp.lt.s32.totalorder %s6453_s1, %s6453_s1 }
   0xe   :  { %p6460_p3 = por %p6459_p2, %p6458_p1 }
  0x10   :  { %p6461_p4 = pnand %p6460_p3, %p6454_p0 }
  0x12   :  { %6464 = shalt.err (!%p6461_p4)
}
  0x13   :  { %s6637_s22 = smov 128   ;;  %s6638_s2 = smov 8  }
  0x14   :  { %s7301_s25 = sld [smem:[#allocation24_spill]]  ;;  %s6473_s3 = scalar_lea.vmem %s79_s21, 6144 }
  0x15   :  { %p6474_p5 = scmp.ne.s32.totalorder %s79_s21, %s6473_s3  ;;  %p6478_p6 = scmp.lt.s32.totalorder %s79_s21, %s79_s21 }
  0x16   :  { %p6479_p7 = scmp.lt.s32.totalorder %s6473_s3, %s6473_s3 }
  0x18   :  { %p6480_p8 = por %p6479_p7, %p6478_p6 }
  0x1a   :  { %56 = dma.hbm_to_vmem [thread:$0]  %s7301_s25, 768, %s51_s30, [#allocation5], %s6637_s22, %s6637_s22, %s6638_s2  }
  0x1b   :  { %p6481_p9 = pnand %p6480_p8, %p6474_p5 }
  0x1d   :  { %6484 = shalt.err (!%p6481_p9)
}
  0x1e   :  { %84 = dma.hbm_to_vmem [thread:$0]  %s7282_s7, 6144, %s79_s21, [#allocation8], %s6637_s22, %s6637_s22, %s6638_s2  }
  0x1f   :  { %s6639_s28 = smov [#allocation10]   ;;  %s6640_s0 = smov [#allocation13]  }
  0x20   :  { %s106_s29 = sshll.u32 %s6639_s28, 4  ;;  %s134_s20 = sshll.u32 %s6640_s0, 4  ;;  %s107_s29 = int_to_ptr.vmem [resolvable:$true] %s106_s29  ;;  %s135_s20 = int_to_ptr.vmem [resolvable:$true] %s134_s20 }
  0x21   :  { %s6493_s30 = scalar_lea.vmem %s107_s29, 6144  ;;  %p6498_p11 = scmp.lt.s32.totalorder %s107_s29, %s107_s29 }
  0x22   :  { %p6494_p10 = scmp.ne.s32.totalorder %s107_s29, %s6493_s30  ;;  %p6499_p12 = scmp.lt.s32.totalorder %s6493_s30, %s6493_s30 }
  0x24   :  { %p6500_p13 = por %p6499_p12, %p6498_p11 }
  0x26   :  { %p6501_p0 = pnand %p6500_p13, %p6494_p10 }
  0x28   :  { %6504 = shalt.err (!%p6501_p0)
}
  0x29   :  { %112 = dma.hbm_to_vmem [thread:$0]  %s7286_s11, 6144, %s107_s29, [#allocation11], %s6637_s22, %s6637_s22, %s6638_s2  }
  0x2a   :  { %s6513_s7 = scalar_lea.vmem %s135_s20, 6144  ;;  %p6518_p2 = scmp.lt.s32.totalorder %s135_s20, %s135_s20 }
  0x2b   :  { %p6514_p1 = scmp.ne.s32.totalorder %s135_s20, %s6513_s7  ;;  %p6519_p3 = scmp.lt.s32.totalorder %s6513_s7, %s6513_s7 }
  0x2d   :  { %p6520_p4 = por %p6519_p3, %p6518_p2 }
  0x2f   :  { %p6521_p5 = pnand %p6520_p4, %p6514_p1 }
  0x31   :  { %6524 = shalt.err (!%p6521_p5)
}
  0x32   :  { %140 = dma.hbm_to_vmem [thread:$0]  %s7290_s15, 6144, %s135_s20, [#allocation14], %s6637_s22, %s6637_s22, %s6638_s2  }
  0x33   :  { %s6641_s25 = smov [#allocation2]   ;;  %s6642_s26 = smov [#allocation6]  }
  0x34   :  { %s36_s3 = sshll.u32 %s6641_s25, 4  ;;  %s62_s27 = sshll.u32 %s6642_s26, 4  ;;  %s37_s3 = int_to_ptr.vmem [resolvable:$true] %s36_s3  ;;  %s63_s27 = int_to_ptr.vmem [resolvable:$true] %s62_s27 }
  0x35   :  { %s6533_s11 = scalar_lea.vmem %s37_s3, 3584  ;;  %p6538_p7 = scmp.lt.s32.totalorder %s37_s3, %s37_s3 }
  0x36   :  { %p6534_p6 = scmp.ne.s32.totalorder %s37_s3, %s6533_s11  ;;  %p6539_p8 = scmp.lt.s32.totalorder %s6533_s11, %s6533_s11 }
  0x38   :  { %p6540_p9 = por %p6539_p8, %p6538_p7 }
  0x3a   :  { %p6541_p10 = pnand %p6540_p9, %p6534_p6 }
  0x3c   :  { %6544 = shalt.err (!%p6541_p10)
}
  0x3d   :  { %s7302_s0 = sld [smem:[#allocation22_spill]]  ;;  %s6553_s15 = scalar_lea.vmem %s63_s27, 768 }
  0x3e   :  { %p6554_p11 = scmp.ne.s32.totalorder %s63_s27, %s6553_s15  ;;  %p6558_p12 = scmp.lt.s32.totalorder %s63_s27, %s63_s27 }
  0x3f   :  { %p6559_p13 = scmp.lt.s32.totalorder %s6553_s15, %s6553_s15 }
  0x41   :  { %p6560_p0 = por %p6559_p13, %p6558_p12 }
  0x43   :  { %42 = dma.hbm_to_vmem [thread:$0]  %s7302_s0, 3584, %s37_s3, [#allocation3], %s6637_s22, %s6637_s22, %s6638_s2  }
  0x44   :  { %p6561_p1 = pnand %p6560_p0, %p6554_p11 }
  0x46   :  { %6564 = shalt.err (!%p6561_p1)
}
  0x47   :  { %68 = dma.hbm_to_vmem [thread:$0]  %s7279_s4, 768, %s63_s27, [#allocation5], %s6637_s22, %s6637_s22, %s6638_s2  }
  0x48   :  { %s6643_s1 = smov [#allocation9]   ;;  %s6644_s7 = smov [#allocation12]  }
  0x49   :  { %s92_s23 = sshll.u32 %s6643_s1, 4  ;;  %s120_s21 = sshll.u32 %s6644_s7, 4  ;;  %s93_s23 = int_to_ptr.vmem [resolvable:$true] %s92_s23  ;;  %s121_s21 = int_to_ptr.vmem [resolvable:$true] %s120_s21 }
  0x4a   :  { %s6573_s24 = scalar_lea.vmem %s93_s23, 6144  ;;  %p6578_p3 = scmp.lt.s32.totalorder %s93_s23, %s93_s23 }
  0x4b   :  { %p6574_p2 = scmp.ne.s32.totalorder %s93_s23, %s6573_s24  ;;  %p6579_p4 = scmp.lt.s32.totalorder %s6573_s24, %s6573_s24 }
  0x4d   :  { %p6580_p5 = por %p6579_p4, %p6578_p3 }
  0x4f   :  { %p6581_p6 = pnand %p6580_p5, %p6574_p2 }
  0x51   :  { %6584 = shalt.err (!%p6581_p6)
}
  0x52   :  { %98 = dma.hbm_to_vmem [thread:$0]  %s7284_s9, 6144, %s93_s23, [#allocation8], %s6637_s22, %s6637_s22, %s6638_s2  }
  0x53   :  { %s6593_s4 = scalar_lea.vmem %s121_s21, 6144  ;;  %p6598_p8 = scmp.lt.s32.totalorder %s121_s21, %s121_s21 }
  0x54   :  { %p6594_p7 = scmp.ne.s32.totalorder %s121_s21, %s6593_s4  ;;  %p6599_p9 = scmp.lt.s32.totalorder %s6593_s4, %s6593_s4 }
  0x56   :  { %p6600_p10 = por %p6599_p9, %p6598_p8 }
  0x58   :  { %p6601_p11 = pnand %p6600_p10, %p6594_p7 }
  0x5a   :  { %6604 = shalt.err (!%p6601_p11)
}
  0x5b   :  { %126 = dma.hbm_to_vmem [thread:$0]  %s7288_s13, 6144, %s121_s21, [#allocation11], %s6637_s22, %s6637_s22, %s6638_s2  }
  0x5c   :  { %s6645_s11 = smov [#allocation15]  }
  0x5d   :  { %s148_s28 = sshll.u32 %s6645_s11, 4  ;;  %s149_s28 = int_to_ptr.vmem [resolvable:$true] %s148_s28 }
  0x5e   :  { %s6613_s29 = scalar_lea.vmem %s149_s28, 6144  ;;  %p6618_p13 = scmp.lt.s32.totalorder %s149_s28, %s149_s28 }
  0x5f   :  { %p6614_p12 = scmp.ne.s32.totalorder %s149_s28, %s6613_s29  ;;  %p6619_p0 = scmp.lt.s32.totalorder %s6613_s29, %s6613_s29 }
  0x61   :  { %p6620_p1 = por %p6619_p0, %p6618_p13 }
  0x63   :  { %p6621_p2 = pnand %p6620_p1, %p6614_p12 }
  0x65   :  { %6624 = shalt.err (!%p6621_p2)
}
  0x66   :  { %154 = dma.hbm_to_vmem [thread:$0]  %s7292_s17, 6144, %s149_s28, [#allocation14], %s6637_s22, %s6637_s22, %s6638_s2  }
  0x67   :  { %6625 = dma.done.wait [#allocation3], 3584  }
  0x68   :  { %6626 = vsyncadd [#allocation3], 4294963712 }
  0x69   :  { %6627 = dma.done.wait [#allocation5], 1536  }
  0x6a   :  { %6628 = vsyncadd [#allocation5], 4294965760 }
  0x6b   :  { %6629 = dma.done.wait [#allocation8], 12288  }
  0x6c   :  { %6630 = vsyncadd [#allocation8], 4294955008 }
  0x6d   :  { %6631 = dma.done.wait [#allocation11], 12288  }
  0x6e   :  { %6632 = vsyncadd [#allocation11], 4294955008 }
  0x6f   :  { %6633 = dma.done.wait [#allocation14], 12288  }
  0x70   :  { %6634 = vsyncadd [#allocation14], 4294955008  ;;  %s7303_s20 = sld [smem:[#allocation21_spill]]  ;;  %vm192_vm0 = vcmask 261120   ;;  %v291_v2 = vld [vmem:[#allocation2 + $0x20] sm:$0xff]  ;;  %v292_v5 = vld [vmem:[#allocation2 + $0x28] sm:$0xff] }
  0x71   :  { %5427 = vmatprep.mubr.msk.f32.mxu1 %vm192_vm0, %v291_v2  ;;  %v188_v6 = vld [vmem:[#allocation2] sm:$0xff]  ;;  %v293_v7 = vld [vmem:[#allocation2 + $0x30] sm:$0xff]  ;;  %v189_v8 = vld [vmem:[#allocation2 + $0x8] sm:$0xff]  ;;  %vm919_vm1 = vcmask 523264   ;;  %s7304_s25 = sld [smem:[#allocation23_spill]]  ;;  %vm3127_vm2 = vcmask 130048  }
  0x72   :  { %v190_v9 = vld [vmem:[#allocation2 + $0x10] sm:$0xff]  ;;  %5413 = vmatprep.mubr.msk.f32.mxu0 %vm192_vm0, %v188_v6  ;;  %v294_v10 = vld [vmem:[#allocation2 + $0x38] sm:$0xff]  ;;  %v393_v12 = vld [vmem:[#allocation2 + $0x40] sm:$0xff] }
  0x73   :  { %v191_v11 = vld [vmem:[#allocation2 + $0x18] sm:$0xff]  ;;  %v394_v13 = vld [vmem:[#allocation2 + $0x48] sm:$0xff]  ;;  %v395_v14 = vld [vmem:[#allocation2 + $0x50] sm:$0xff] }
  0x74   :  { %v396_v15 = vld [vmem:[#allocation2 + $0x58] sm:$0xff]  ;;  %v597_v16 = vld [vmem:[#allocation2 + $0x80] sm:$0xff]  ;;  %v598_v18 = vld [vmem:[#allocation2 + $0x88] sm:$0xff] }
  0x75   :  { %v495_v17 = vld [vmem:[#allocation2 + $0x60] sm:$0xff]  ;;  %v496_v19 = vld [vmem:[#allocation2 + $0x68] sm:$0xff]  ;;  %v497_v20 = vld [vmem:[#allocation2 + $0x70] sm:$0xff] }
  0x76   :  { %v6803_v0 = vld [vmem:[%s7303_s20 + $0x18] sm:$0xff]  ;;  %v6808_v1 = vld [vmem:[%s7303_s20 + $0x10] sm:$0xff]  ;;  %v6816_v3 = vld [vmem:[%s7303_s20 + $0x8] sm:$0xff] }
  0x77   :  { %5419 = vmatprep.subr.mxu1 %v6803_v0  ;;  %5405 = vmatprep.subr.mxu0 %v6803_v0  ;;  %v6825_v4 = vld [vmem:[%s7303_s20] sm:$0xff]  ;;  %v599_v21 = vld [vmem:[#allocation2 + $0x90] sm:$0xff]  ;;  %v498_v22 = vld [vmem:[#allocation2 + $0x78] sm:$0xff] }
  0x78   :  { %5420 = vmatpush3.msra.mxu1 %v6803_v0  ;;  %5406 = vmatpush3.msra.mxu0 %v6803_v0  ;;  %v600_v23 = vld [vmem:[#allocation2 + $0x98] sm:$0xff]  ;;  %v801_v24 = vld [vmem:[#allocation2 + $0xc0] sm:$0xff]  ;;  %v802_v26 = vld [vmem:[#allocation2 + $0xc8] sm:$0xff] }
  0x79   :  { %5421 = vmatprep.subr.mxu1 %v6808_v1  ;;  %5407 = vmatprep.subr.mxu0 %v6808_v1  ;;  %v699_v25 = vld [vmem:[#allocation2 + $0xa0] sm:$0xff]  ;;  %v700_v27 = vld [vmem:[#allocation2 + $0xa8] sm:$0xff]  ;;  %v803_v28 = vld [vmem:[#allocation2 + $0xd0] sm:$0xff] }
  0x7a   :  { %5422 = vmatpush3.msra.mxu1 %v6808_v1  ;;  %5408 = vmatpush3.msra.mxu0 %v6808_v1  ;;  %v701_v29 = vld [vmem:[#allocation2 + $0xb0] sm:$0xff]  ;;  %v4737_v30 = vld [vmem:[%s7280_s5 + $0x78] sm:$0xff]  ;;  %v4735_v34 = vld [vmem:[%s7280_s5 + $0x68] sm:$0xff] }
  0x7b   :  { %5423 = vmatprep.subr.mxu1 %v6816_v3  ;;  %5409 = vmatprep.subr.mxu0 %v6816_v3  ;;  %v804_v31 = vld [vmem:[#allocation2 + $0xd8] sm:$0xff]  ;;  %v4736_v33 = vld [vmem:[%s7280_s5 + $0x70] sm:$0xff]  ;;  %v4734_v35 = vld [vmem:[%s7280_s5 + $0x60] sm:$0xff] }
  0x7c   :  { %5424 = vmatpush3.msra.mxu1 %v6816_v3  ;;  %5410 = vmatpush3.msra.mxu0 %v6816_v3  ;;  %v702_v32 = vld [vmem:[#allocation2 + $0xb8] sm:$0xff]  ;;  %v4732_v37 = vld [vmem:[%s7280_s5 + $0x50] sm:$0xff]  ;;  %v4731_v38 = vld [vmem:[%s7280_s5 + $0x48] sm:$0xff] }
  0x7d   :  { %5425 = vmatprep.subr.mxu1 %v6825_v4  ;;  %5411 = vmatprep.subr.mxu0 %v6825_v4  ;;  %v4733_v36 = vld [vmem:[%s7280_s5 + $0x58] sm:$0xff]  ;;  %v4730_v40 = vld [vmem:[%s7280_s5 + $0x40] sm:$0xff]  ;;  %v4752_v41 = vld [vmem:[%s7280_s5 + $0xb0] sm:$0xff] }
  0x7e   :  { %5426 = vmatpush3.msra.mxu1 %v6825_v4  ;;  %5412 = vmatpush3.msra.mxu0 %v6825_v4  ;;  %v4753_v39 = vld [vmem:[%s7280_s5 + $0xb8] sm:$0xff]  ;;  %v4751_v43 = vld [vmem:[%s7280_s5 + $0xa8] sm:$0xff]  ;;  %v4750_v44 = vld [vmem:[%s7280_s5 + $0xa0] sm:$0xff] }
  0x7f   :  { %5428 = vmatmul.mubr.msk.f32.vlgmr.msra.gmra.mxu1 %vm192_vm0, %v292_v5  ;;  %5414 = vmatmul.mubr.msk.f32.vlgmr.msra.gmra.mxu0 %vm192_vm0, %v189_v8  ;;  %v909_v42 = vld [vmem:[%s7280_s5 + $0x38] sm:$0xff]  ;;  %v4748_v46 = vld [vmem:[%s7280_s5 + $0x90] sm:$0xff]  ;;  %v4747_v47 = vld [vmem:[%s7280_s5 + $0x88] sm:$0xff] }
  0x80   :  { %5430 = vmatprep.mubr.msk.f32.mxu1 %vm192_vm0, %v293_v7  ;;  %5433 = vmatprep.subr.mxu0 %v6803_v0  ;;  %v4749_v45 = vld [vmem:[%s7280_s5 + $0x98] sm:$0xff]  ;;  %v4746_v48 = vld [vmem:[%s7280_s5 + $0x80] sm:$0xff]  ;;  %v908_v53 = vld [vmem:[%s7280_s5 + $0x30] sm:$0xff] }
  0x81   :  { %5434 = vmatpush3.msra.mxu0 %v6803_v0  ;;  %5416 = vmatprep.mubr.msk.f32.mxu0 %vm192_vm0, %v190_v9  ;;  %v4777_v49 = vld [vmem:[%s7280_s5 + $0x138] sm:$0xff]  ;;  %v907_v56 = vld [vmem:[%s7280_s5 + $0x28] sm:$0xff]  ;;  %v906_v59 = vld [vmem:[%s7280_s5 + $0x20] sm:$0xff] }
  0x82   :  { %5435 = vmatprep.subr.mxu0 %v6808_v1  ;;  %5447 = vmatprep.subr.mxu1 %v6803_v0  ;;  %v905_v61 = vld [vmem:[%s7280_s5 + $0x18] sm:$0xff]  ;;  %v904_v63 = vld [vmem:[%s7280_s5 + $0x10] sm:$0xff]  ;;  %v4774_v8 = vld [vmem:[%s7280_s5 + $0x120] sm:$0xff] }
  0x83   :  { %5431 = vmatmul.mubr.msk.f32.gmra.mxu1 %vm192_vm0, %v294_v10  ;;  %5436 = vmatpush3.msra.mxu0 %v6808_v1  ;;  %v4776_v2 = vld [vmem:[%s7280_s5 + $0x130] sm:$0xff]  ;;  %v4765_v5 = vld [vmem:[%s7280_s5 + $0xf8] sm:$0xff]  ;;  %v4763_v9 = vld [vmem:[%s7280_s5 + $0xe8] sm:$0xff] }
  0x84   :  { %5417 = vmatmul.mubr.msk.f32.gmra.mxu0 %vm192_vm0, %v191_v11  ;;  %5437 = vmatprep.subr.mxu0 %v6816_v3  ;;  %v4764_v7 = vld [vmem:[%s7280_s5 + $0xf0] sm:$0xff]  ;;  %v4773_v11 = vld [vmem:[%s7280_s5 + $0x118] sm:$0xff] }
  0x85   :  { %5438 = vmatpush3.msra.mxu0 %v6816_v3  ;;  %5441 = vmatprep.mubr.msk.f32.mxu0 %vm192_vm0, %v393_v12  ;;  %v4762_v12 = vld [vmem:[%s7280_s5 + $0xe0] sm:$0xff] }
  0x86   :  { %5439 = vmatprep.subr.mxu0 %v6825_v4  ;;  %5448 = vmatpush3.msra.mxu1 %v6803_v0 }
  0x87   :  { %5440 = vmatpush3.msra.mxu0 %v6825_v4  ;;  %5449 = vmatprep.subr.mxu1 %v6808_v1 }
  0x88   :  { %5442 = vmatmul.mubr.msk.f32.vlgmr.msra.gmra.mxu0 %vm192_vm0, %v394_v13  ;;  %5461 = vmatprep.subr.mxu0 %v6803_v0  ;;  %v4772_v13 = vld [vmem:[%s7280_s5 + $0x110] sm:$0xff] }
  0x89   :  { %5444 = vmatprep.mubr.msk.f32.mxu0 %vm192_vm0, %v395_v14  ;;  %5462 = vmatpush3.msra.mxu0 %v6803_v0  ;;  %v4761_v14 = vld [vmem:[%s7280_s5 + $0xd8] sm:$0xff] }
  0x8a   :  { %5463 = vmatprep.subr.mxu0 %v6808_v1  ;;  %5450 = vmatpush3.msra.mxu1 %v6808_v1 }
  0x8b   :  { %5464 = vmatpush3.msra.mxu0 %v6808_v1  ;;  %5451 = vmatprep.subr.mxu1 %v6816_v3 }
  0x8c   :  { %5445 = vmatmul.mubr.msk.f32.gmra.mxu0 %vm192_vm0, %v396_v15  ;;  %5465 = vmatprep.subr.mxu0 %v6816_v3  ;;  %v4771_v15 = vld [vmem:[%s7280_s5 + $0x108] sm:$0xff] }
  0x8d   :  { %5466 = vmatpush3.msra.mxu0 %v6816_v3  ;;  %5452 = vmatpush3.msra.mxu1 %v6816_v3 }
  0x8e   :  { %5467 = vmatprep.subr.mxu0 %v6825_v4  ;;  %5453 = vmatprep.subr.mxu1 %v6825_v4 }
  0x8f   :  { %5468 = vmatpush3.msra.mxu0 %v6825_v4  ;;  %5469 = vmatprep.mubr.msk.f32.mxu0 %vm192_vm0, %v597_v16 }
  0x90   :  { %5454 = vmatpush3.msra.mxu1 %v6825_v4  ;;  %5455 = vmatprep.mubr.msk.f32.mxu1 %vm192_vm0, %v495_v17 }
  0x91   :  { %5470 = vmatmul.mubr.msk.f32.vlgmr.msra.gmra.mxu0 %vm192_vm0, %v598_v18  ;;  %5456 = vmatmul.mubr.msk.f32.vlgmr.msra.gmra.mxu1 %vm192_vm0, %v496_v19  ;;  %v4760_v18 = vld [vmem:[%s7280_s5 + $0xd0] sm:$0xff]  ;;  %v4770_v19 = vld [vmem:[%s7280_s5 + $0x100] sm:$0xff] }
  0x92   :  { %5458 = vmatprep.mubr.msk.f32.mxu1 %vm192_vm0, %v497_v20  ;;  %5472 = vmatprep.mubr.msk.f32.mxu0 %vm192_vm0, %v599_v21  ;;  %v4759_v20 = vld [vmem:[%s7280_s5 + $0xc8] sm:$0xff] }
  0x93   :  { %5489 = vmatprep.subr.mxu0 %v6803_v0  ;;  %5475 = vmatprep.subr.mxu1 %v6803_v0 }
  0x94   :  { %5490 = vmatpush3.msra.mxu0 %v6803_v0  ;;  %5476 = vmatpush3.msra.mxu1 %v6803_v0 }
  0x95   :  { %5459 = vmatmul.mubr.msk.f32.gmra.mxu1 %vm192_vm0, %v498_v22  ;;  %5473 = vmatmul.mubr.msk.f32.gmra.mxu0 %vm192_vm0, %v600_v23  ;;  %v4801_v23 = vld [vmem:[%s7280_s5 + $0x1b8] sm:$0xff] }
  0x96   :  { %5491 = vmatprep.subr.mxu0 %v6808_v1  ;;  %5477 = vmatprep.subr.mxu1 %v6808_v1 }
  0x97   :  { %5492 = vmatpush3.msra.mxu0 %v6808_v1  ;;  %5478 = vmatpush3.msra.mxu1 %v6808_v1  ;;  %v903_v1 = vld [vmem:[%s7280_s5 + $0x8] sm:$0xff] }
  0x98   :  { %5493 = vmatprep.subr.mxu0 %v6816_v3  ;;  %5479 = vmatprep.subr.mxu1 %v6816_v3 }
  0x99   :  { %5494 = vmatpush3.msra.mxu0 %v6816_v3  ;;  %5480 = vmatpush3.msra.mxu1 %v6816_v3  ;;  %v902_v3 = vld [vmem:[%s7280_s5] sm:$0xff] }
  0x9a   :  { %5495 = vmatprep.subr.mxu0 %v6825_v4  ;;  %5481 = vmatprep.subr.mxu1 %v6825_v4 }
  0x9b   :  { %5496 = vmatpush3.msra.mxu0 %v6825_v4  ;;  %5497 = vmatprep.mubr.msk.f32.mxu0 %vm192_vm0, %v801_v24  ;;  %v4758_v24 = vld [vmem:[%s7280_s5 + $0xc0] sm:$0xff] }
  0x9c   :  { %5482 = vmatpush3.msra.mxu1 %v6825_v4  ;;  %5483 = vmatprep.mubr.msk.f32.mxu1 %vm192_vm0, %v699_v25  ;;  %v4775_v4 = vld [vmem:[%s7280_s5 + $0x128] sm:$0xff]  ;;  %v4800_v25 = vld [vmem:[%s7280_s5 + $0x1b0] sm:$0xff] }
  0x9d   :  { %5498 = vmatmul.mubr.msk.f32.vlgmr.msra.gmra.mxu0 %vm192_vm0, %v802_v26  ;;  %5484 = vmatmul.mubr.msk.f32.vlgmr.msra.gmra.mxu1 %vm192_vm0, %v700_v27 }
  0x9e   :  { %5500 = vmatprep.mubr.msk.f32.mxu0 %vm192_vm0, %v803_v28  ;;  %5486 = vmatprep.mubr.msk.f32.mxu1 %vm192_vm0, %v701_v29  ;;  %v4789_v28 = vld [vmem:[%s7280_s5 + $0x178] sm:$0xff]  ;;  %v4799_v29 = vld [vmem:[%s7280_s5 + $0x1a8] sm:$0xff] }
  0x9f   :  { %5503 = vmatprep.subr.mxu0 %v4737_v30  ;;  %5547 = vmatprep.subr.mxu1 %v4753_v39 }
  0xa0   :  { %5504 = vmatpush3.msra.mxu0 %v4737_v30  ;;  %5548 = vmatpush3.msra.mxu1 %v4753_v39  ;;  %v4788_v30 = vld [vmem:[%s7280_s5 + $0x170] sm:$0xff] }
  0xa1   :  { %5501 = vmatmul.mubr.msk.f32.gmra.mxu0 %vm192_vm0, %v804_v31  ;;  %5487 = vmatmul.mubr.msk.f32.gmra.mxu1 %vm192_vm0, %v702_v32  ;;  %v4796_v39 = vld [vmem:[%s7280_s5 + $0x190] sm:$0xff] }
  0xa2   :  { %5505 = vmatprep.subr.mxu0 %v4736_v33  ;;  %5549 = vmatprep.subr.mxu1 %v4752_v41 }
  0xa3   :  { %5506 = vmatpush3.msra.mxu0 %v4736_v33  ;;  %5550 = vmatpush3.msra.mxu1 %v4752_v41  ;;  %v4798_v33 = vld [vmem:[%s7280_s5 + $0x1a0] sm:$0xff]  ;;  %v4785_v41 = vld [vmem:[%s7280_s5 + $0x158] sm:$0xff] }
  0xa4   :  { %5507 = vmatprep.subr.mxu0 %v4735_v34  ;;  %5551 = vmatprep.subr.mxu1 %v4751_v43 }
  0xa5   :  { %5508 = vmatpush3.msra.mxu0 %v4735_v34  ;;  %5552 = vmatpush3.msra.mxu1 %v4751_v43  ;;  %v4787_v34 = vld [vmem:[%s7280_s5 + $0x168] sm:$0xff]  ;;  %v4784_v43 = vld [vmem:[%s7280_s5 + $0x150] sm:$0xff] }
  0xa6   :  { %5509 = vmatprep.subr.mxu0 %v4734_v35  ;;  %5553 = vmatprep.subr.mxu1 %v4750_v44 }
  0xa7   :  { %5510 = vmatpush3.msra.mxu0 %v4734_v35  ;;  %5554 = vmatpush3.msra.mxu1 %v4750_v44 }
  0xa8   :  { %5511 = vmatprep.subr.mxu0 %v4733_v36  ;;  %5555 = vmatprep.subr.mxu1 %v4749_v45 }
  0xa9   :  { %5512 = vmatpush3.msra.mxu0 %v4733_v36  ;;  %5556 = vmatpush3.msra.mxu1 %v4749_v45  ;;  %v4797_v36 = vld [vmem:[%s7280_s5 + $0x198] sm:$0xff]  ;;  %v4794_v45 = vld [vmem:[%s7280_s5 + $0x180] sm:$0xff] }
  0xaa   :  { %5513 = vmatprep.subr.mxu0 %v4732_v37  ;;  %5557 = vmatprep.subr.mxu1 %v4748_v46 }
  0xab   :  { %5514 = vmatpush3.msra.mxu0 %v4732_v37  ;;  %5558 = vmatpush3.msra.mxu1 %v4748_v46  ;;  %v4786_v37 = vld [vmem:[%s7280_s5 + $0x160] sm:$0xff] }
  0xac   :  { %5515 = vmatprep.subr.mxu0 %v4731_v38  ;;  %5559 = vmatprep.subr.mxu1 %v4747_v47 }
  0xad   :  { %5516 = vmatpush3.msra.mxu0 %v4731_v38  ;;  %5560 = vmatpush3.msra.mxu1 %v4747_v47  ;;  %v4783_v47 = vld [vmem:[%s7280_s5 + $0x148] sm:$0xff] }
  0xae   :  { %5517 = vmatprep.subr.mxu0 %v4730_v40  ;;  %5561 = vmatprep.subr.mxu1 %v4746_v48 }
  0xaf   :  { %5518 = vmatpush3.msra.mxu0 %v4730_v40  ;;  %5562 = vmatpush3.msra.mxu1 %v4746_v48 }
  0xb0   :  { %5525 = vmatprep.subr.mxu0 %v909_v42  ;;  %5591 = vmatprep.subr.mxu1 %v4777_v49 }
 0x13f   :  { %v5429_v50 = vpop.f32.mrf.mxu1  ;;  %v5415_v52 = vpop.f32.mrf.mxu0 }
 0x141   :  { %v373_v51 = vpop.f32.mrf.mxu1  ;;  %v271_v55 = vpop.f32.mrf.mxu0 }
 0x142   :  { %5519 = vmatprep.mubr.msk.f32.mxu0 %vm919_vm1, %v373_v51 }
 0x143   :  { %5520 = vmatmul.mubr.msk.f32.vlgmr.msra.gmra.mxu0 %vm919_vm1, %v5429_v50  ;;  %v5432_v54 = vpop.f32.mrf.mxu1 }
 0x144   :  { %5526 = vmatpush3.msra.mxu0 %v909_v42  ;;  %v5418_v58 = vpop.f32.mrf.mxu0  ;;  %v4795_v42 = vld [vmem:[%s7280_s5 + $0x188] sm:$0xff] }
 0x145   :  { %5527 = vmatprep.subr.mxu0 %v908_v53  ;;  %v383_v57 = vpop.f32.mrf.mxu1 }
 0x146   :  { %5528 = vmatpush3.msra.mxu0 %v908_v53  ;;  %5522 = vmatprep.mubr.msk.f32.mxu0 %vm919_vm1, %v383_v57  ;;  %v281_v60 = vpop.f32.mrf.mxu0  ;;  %v4819_v53 = vld [vmem:[%s7304_s25 + $0x40] sm:$0xff] }
 0x147   :  { %5529 = vmatprep.subr.mxu0 %v907_v56  ;;  %5523 = vmatmul.mubr.msk.f32.gmra.mxu0 %vm919_vm1, %v5432_v54 }
 0x148   :  { %5530 = vmatpush3.msra.mxu0 %v907_v56  ;;  %5541 = vmatprep.mubr.msk.f32.mxu0 %vm919_vm1, %v271_v55  ;;  %v5443_v62 = vpop.f32.mrf.mxu0 }
 0x149   :  { %5531 = vmatprep.subr.mxu0 %v906_v59 }
 0x14a   :  { %5532 = vmatpush3.msra.mxu0 %v906_v59  ;;  %v475_v0 = vpop.f32.mrf.mxu0 }
 0x14b   :  { %5533 = vmatprep.subr.mxu0 %v905_v61  ;;  %5563 = vmatprep.mubr.msk.f32.mxu1 %vm919_vm1, %v475_v0 }
 0x14c   :  { %5534 = vmatpush3.msra.mxu0 %v905_v61  ;;  %5564 = vmatmul.mubr.msk.f32.vlgmr.msra.gmra.mxu1 %vm919_vm1, %v5443_v62  ;;  %v5446_v6 = vpop.f32.mrf.mxu0 }
 0x14d   :  { %5535 = vmatprep.subr.mxu0 %v904_v63  ;;  %5592 = vmatpush3.msra.mxu1 %v4777_v49  ;;  %v4782_v49 = vld [vmem:[%s7280_s5 + $0x140] sm:$0xff] }
 0x14e   :  { %5536 = vmatpush3.msra.mxu0 %v904_v63  ;;  %5593 = vmatprep.subr.mxu1 %v4776_v2  ;;  %v485_v10 = vpop.f32.mrf.mxu0 }
 0x14f   :  { %5537 = vmatprep.subr.mxu0 %v903_v1  ;;  %5594 = vmatpush3.msra.mxu1 %v4776_v2 }
 0x150   :  { %5538 = vmatpush3.msra.mxu0 %v903_v1  ;;  %5595 = vmatprep.subr.mxu1 %v4775_v4 }
 0x151   :  { %5539 = vmatprep.subr.mxu0 %v902_v3  ;;  %5596 = vmatpush3.msra.mxu1 %v4775_v4  ;;  %v5471_v16 = vpop.f32.mrf.mxu0  ;;  %v5457_v17 = vpop.f32.mrf.mxu1 }
 0x152   :  { %5540 = vmatpush3.msra.mxu0 %v902_v3  ;;  %5597 = vmatprep.subr.mxu1 %v4774_v8 }
 0x153   :  { %5542 = vmatmul.mubr.msk.f32.vlgmr.msra.gmra.mxu0 %vm919_vm1, %v5415_v52  ;;  %5569 = vmatprep.subr.mxu0 %v4765_v5  ;;  %v679_v21 = vpop.f32.mrf.mxu0  ;;  %v577_v22 = vpop.f32.mrf.mxu1  ;;  %v1675_v52 = vld [vmem:[%s7304_s25] sm:$0xff] }
 0x154   :  { %5544 = vmatprep.mubr.msk.f32.mxu0 %vm919_vm1, %v281_v60  ;;  %5570 = vmatpush3.msra.mxu0 %v4765_v5 }
 0x155   :  { %5571 = vmatprep.subr.mxu0 %v4764_v7  ;;  %5598 = vmatpush3.msra.mxu1 %v4774_v8  ;;  %v5460_v26 = vpop.f32.mrf.mxu1  ;;  %v5474_v27 = vpop.f32.mrf.mxu0 }
 0x156   :  { %5572 = vmatpush3.msra.mxu0 %v4764_v7  ;;  %5566 = vmatprep.mubr.msk.f32.mxu1 %vm919_vm1, %v485_v10 }
 0x157   :  { %5545 = vmatmul.mubr.msk.f32.gmra.mxu0 %vm919_vm1, %v5418_v58  ;;  %5573 = vmatprep.subr.mxu0 %v4763_v9  ;;  %v587_v31 = vpop.f32.mrf.mxu1  ;;  %v689_v32 = vpop.f32.mrf.mxu0 }
 0x158   :  { %5574 = vmatpush3.msra.mxu0 %v4763_v9  ;;  %5599 = vmatprep.subr.mxu1 %v4773_v11 }
 0x159   :  { %5567 = vmatmul.mubr.msk.f32.gmra.mxu1 %vm919_vm1, %v5446_v6  ;;  %5575 = vmatprep.subr.mxu0 %v4762_v12 }
 0x15a   :  { %5600 = vmatpush3.msra.mxu1 %v4773_v11  ;;  %5576 = vmatpush3.msra.mxu0 %v4762_v12 }
 0x15b   :  { %5601 = vmatprep.subr.mxu1 %v4772_v13  ;;  %5577 = vmatprep.subr.mxu0 %v4761_v14 }
 0x15c   :  { %5602 = vmatpush3.msra.mxu1 %v4772_v13  ;;  %5578 = vmatpush3.msra.mxu0 %v4761_v14 }
 0x15d   :  { %5603 = vmatprep.subr.mxu1 %v4771_v15  ;;  %5579 = vmatprep.subr.mxu0 %v4760_v18  ;;  %v5499_v35 = vpop.f32.mrf.mxu0  ;;  %v5485_v38 = vpop.f32.mrf.mxu1 }
 0x15e   :  { %5604 = vmatpush3.msra.mxu1 %v4771_v15  ;;  %5580 = vmatpush3.msra.mxu0 %v4760_v18 }
 0x15f   :  { %5605 = vmatprep.subr.mxu1 %v4770_v19  ;;  %5581 = vmatprep.subr.mxu0 %v4759_v20  ;;  %v883_v40 = vpop.f32.mrf.mxu0  ;;  %v781_v44 = vpop.f32.mrf.mxu1 }
 0x160   :  { %5606 = vmatpush3.msra.mxu1 %v4770_v19  ;;  %5582 = vmatpush3.msra.mxu0 %v4759_v20 }
 0x161   :  { %5607 = vmatprep.mubr.msk.f32.mxu1 %vm919_vm1, %v679_v21  ;;  %5635 = vmatprep.subr.mxu1 %v4801_v23  ;;  %v5502_v46 = vpop.f32.mrf.mxu0  ;;  %v5488_v48 = vpop.f32.mrf.mxu1 }
 0x162   :  { %5583 = vmatprep.subr.mxu0 %v4758_v24  ;;  %5585 = vmatprep.mubr.msk.f32.mxu0 %vm919_vm1, %v577_v22 }
 0x163   :  { %5608 = vmatmul.mubr.msk.f32.vlgmr.msra.gmra.mxu1 %vm919_vm1, %v5471_v16  ;;  %5584 = vmatpush3.msra.mxu0 %v4758_v24  ;;  %v893_v50 = vpop.f32.mrf.mxu0  ;;  %v791_v51 = vpop.f32.mrf.mxu1 }
 0x164   :  { %5636 = vmatpush3.msra.mxu1 %v4801_v23  ;;  %5586 = vmatmul.mubr.msk.f32.vlgmr.msra.gmra.mxu0 %vm919_vm1, %v5457_v17 }
 0x165   :  { %5637 = vmatprep.subr.mxu1 %v4800_v25  ;;  %5613 = vmatprep.subr.mxu0 %v4789_v28 }
 0x166   :  { %5638 = vmatpush3.msra.mxu1 %v4800_v25  ;;  %5614 = vmatpush3.msra.mxu0 %v4789_v28 }
 0x167   :  { %5639 = vmatprep.subr.mxu1 %v4799_v29  ;;  %5615 = vmatprep.subr.mxu0 %v4788_v30 }
 0x168   :  { %5640 = vmatpush3.msra.mxu1 %v4799_v29  ;;  %5588 = vmatprep.mubr.msk.f32.mxu0 %vm919_vm1, %v587_v31 }
 0x169   :  { %5616 = vmatpush3.msra.mxu0 %v4788_v30  ;;  %5641 = vmatprep.subr.mxu1 %v4798_v33 }
 0x16a   :  { %5589 = vmatmul.mubr.msk.f32.gmra.mxu0 %vm919_vm1, %v5460_v26  ;;  %5617 = vmatprep.subr.mxu0 %v4787_v34 }
 0x16b   :  { %5642 = vmatpush3.msra.mxu1 %v4798_v33  ;;  %5610 = vmatprep.mubr.msk.f32.mxu1 %vm919_vm1, %v689_v32 }
 0x16c   :  { %5618 = vmatpush3.msra.mxu0 %v4787_v34  ;;  %5643 = vmatprep.subr.mxu1 %v4797_v36 }
 0x16d   :  { %5611 = vmatmul.mubr.msk.f32.gmra.mxu1 %vm919_vm1, %v5474_v27  ;;  %5619 = vmatprep.subr.mxu0 %v4786_v37 }
 0x16e   :  { %5644 = vmatpush3.msra.mxu1 %v4797_v36  ;;  %5620 = vmatpush3.msra.mxu0 %v4786_v37 }
 0x16f   :  { %5645 = vmatprep.subr.mxu1 %v4796_v39  ;;  %5621 = vmatprep.subr.mxu0 %v4785_v41 }
 0x170   :  { %5646 = vmatpush3.msra.mxu1 %v4796_v39  ;;  %5622 = vmatpush3.msra.mxu0 %v4785_v41 }
 0x171   :  { %5647 = vmatprep.subr.mxu1 %v4795_v42  ;;  %5623 = vmatprep.subr.mxu0 %v4784_v43 }
 0x172   :  { %5648 = vmatpush3.msra.mxu1 %v4795_v42  ;;  %5624 = vmatpush3.msra.mxu0 %v4784_v43 }
 0x173   :  { %5649 = vmatprep.subr.mxu1 %v4794_v45  ;;  %5625 = vmatprep.subr.mxu0 %v4783_v47 }
 0x174   :  { %5650 = vmatpush3.msra.mxu1 %v4794_v45  ;;  %5651 = vmatprep.mubr.msk.f32.mxu1 %vm919_vm1, %v883_v40 }
 0x175   :  { %5626 = vmatpush3.msra.mxu0 %v4783_v47  ;;  %5629 = vmatprep.mubr.msk.f32.mxu0 %vm919_vm1, %v781_v44  ;;  %v1676_v47 = vld [vmem:[%s7304_s25 + $0x8] sm:$0xff] }
 0x176   :  { %5652 = vmatmul.mubr.msk.f32.vlgmr.msra.gmra.mxu1 %vm919_vm1, %v5499_v35  ;;  %5627 = vmatprep.subr.mxu0 %v4782_v49 }
 0x177   :  { %5654 = vmatprep.mubr.msk.f32.mxu1 %vm919_vm1, %v893_v50  ;;  %5628 = vmatpush3.msra.mxu0 %v4782_v49  ;;  %v4820_v49 = vld [vmem:[%s7304_s25 + $0x48] sm:$0xff]  ;;  %v4821_v50 = vld [vmem:[%s7304_s25 + $0x50] sm:$0xff] }
 0x178   :  { %5630 = vmatmul.mubr.msk.f32.vlgmr.msra.gmra.mxu0 %vm919_vm1, %v5485_v38  ;;  %v4806_v38 = vld [vmem:[%s7281_s6] ss:$0 sm:$0xff] }
 0x179   :  { %5632 = vmatprep.mubr.msk.f32.mxu0 %vm919_vm1, %v791_v51  ;;  %v1678_v51 = vld [vmem:[%s7304_s25 + $0x18] sm:$0xff] }
 0x17a   :  { %5655 = vmatmul.mubr.msk.f32.gmra.mxu1 %vm919_vm1, %v5502_v46 }
 0x17b   :  { %5693 = vmatprep.mubr.msk.f32.mxu1 %vm192_vm0, %v4819_v53  ;;  %v4822_v53 = vld [vmem:[%s7304_s25 + $0x58] sm:$0xff] }
 0x17c   :  { %5633 = vmatmul.mubr.msk.f32.gmra.mxu0 %vm919_vm1, %v5488_v48  ;;  %v1677_v48 = vld [vmem:[%s7304_s25 + $0x10] sm:$0xff] }
 0x17d   :  { %5665 = vmatprep.mubr.msk.f32.mxu0 %vm192_vm0, %v1675_v52  ;;  %v4811_v52 = vld [vmem:[%s7304_s25 + $0x20] sm:$0xff] }
 0x203   :  { %v5521_v54 = vpop.f32.mrf.mxu0 }
 0x205   :  { %v998_v55 = vpop.f32.mrf.mxu0 }
 0x207   :  { %v5524_v56 = vpop.f32.mrf.mxu0 }
 0x209   :  { %v1008_v57 = vpop.f32.mrf.mxu0 }
 0x20c   :  { %v5565_v59 = vpop.f32.mrf.mxu1 }
 0x20e   :  { %v1201_v61 = vpop.f32.mrf.mxu1 }
 0x213   :  { %v5543_v58 = vpop.f32.mrf.mxu0 }
 0x214   :  { %v1101_v7 = vadd.f32 %v5543_v58, %v5521_v54  ;;  %v1995_v54 = vld [vmem:[#allocation7 + $0x78] sm:$0xff] }
 0x215   :  { %v1095_v60 = vpop.f32.mrf.mxu0  ;;  %v2012_v58 = vld [vmem:[#allocation7 + $0xf8] sm:$0xff] }
 0x216   :  { %v1096_v10 = vadd.f32 %v1095_v60, %v998_v55  ;;  %v1221_v14 = vadd.f32 %v5565_v59, %v1101_v7  ;;  %v4812_v55 = vld [vmem:[%s7304_s25 + $0x28] sm:$0xff]  ;;  %v4814_v60 = vld [vmem:[%s7304_s25 + $0x38] sm:$0xff] }
 0x217   :  { %v5546_v63 = vpop.f32.mrf.mxu0  ;;  %v1993_v59 = vld [vmem:[#allocation7 + $0x68] sm:$0xff]  ;;  %v1987_v7 = vld [vmem:[#allocation7 + $0x38] sm:$0xff] }
 0x218   :  { %v1111_v8 = vadd.f32 %v5546_v63, %v5524_v56  ;;  %v1220_v19 = vadd.f32 %v1201_v61, %v1096_v10  ;;  %v4813_v56 = vld [vmem:[%s7304_s25 + $0x30] sm:$0xff]  ;;  %v1992_v61 = vld [vmem:[#allocation7 + $0x60] sm:$0xff]  ;;  %v1991_v63 = vld [vmem:[#allocation7 + $0x58] sm:$0xff] }
 0x219   :  { %v5568_v62 = vpop.f32.mrf.mxu1  ;;  %v1105_v1 = vpop.f32.mrf.mxu0  ;;  %v2005_v10 = vld [vmem:[#allocation7 + $0xc0] sm:$0xff] }
 0x21a   :  { %v1106_v11 = vadd.f32 %v1105_v1, %v1008_v57  ;;  %v1223_v13 = vadd.f32 %v5568_v62, %v1111_v8  ;;  %v1994_v57 = vld [vmem:[#allocation7 + $0x70] sm:$0xff]  ;;  %v2006_v8 = vld [vmem:[#allocation7 + $0xc8] sm:$0xff] }
 0x21b   :  { %v1211_v0 = vpop.f32.mrf.mxu1  ;;  %v2011_v62 = vld [vmem:[#allocation7 + $0xf0] sm:$0xff] }
 0x21c   :  { %v1222_v17 = vadd.f32 %v1211_v0, %v1106_v11  ;;  %v2010_v0 = vld [vmem:[#allocation7 + $0xe8] sm:$0xff]  ;;  %v1990_v1 = vld [vmem:[#allocation7 + $0x50] sm:$0xff] }
 0x21d   :  { %v1985_v11 = vld [vmem:[#allocation7 + $0x28] sm:$0xff] }
 0x223   :  { %v5609_v2 = vpop.f32.mrf.mxu1 }
 0x224   :  { %v5587_v3 = vpop.f32.mrf.mxu0 }
 0x225   :  { %v1421_v4 = vpop.f32.mrf.mxu1  ;;  %v1331_v18 = vadd.f32 %v5587_v3, %v1221_v14  ;;  %v1989_v3 = vld [vmem:[#allocation7 + $0x48] sm:$0xff]  ;;  %v2003_v14 = vld [vmem:[#allocation7 + $0xb0] sm:$0xff] }
 0x226   :  { %v1311_v5 = vpop.f32.mrf.mxu0 }
 0x227   :  { %v1330_v23 = vadd.f32 %v1311_v5, %v1220_v19  ;;  %v1441_v27 = vadd.f32 %v5609_v2, %v1331_v18  ;;  %v2009_v2 = vld [vmem:[#allocation7 + $0xe0] sm:$0xff]  ;;  %v1981_v18 = vld [vmem:[#allocation7 + $0x8] sm:$0xff] }
 0x228   :  { %v1988_v5 = vld [vmem:[#allocation7 + $0x40] sm:$0xff] }
 0x229   :  { %v1440_v32 = vadd.f32 %v1421_v4, %v1330_v23  ;;  %v2008_v4 = vld [vmem:[#allocation7 + $0xd8] sm:$0xff]  ;;  %v2001_v19 = vld [vmem:[#allocation7 + $0xa0] sm:$0xff]  ;;  %v1998_v23 = vld [vmem:[#allocation7 + $0x88] sm:$0xff] }
 0x22a   :  { %v5590_v9 = vpop.f32.mrf.mxu0 }
 0x22b   :  { %v1333_v20 = vadd.f32 %v5590_v9, %v1223_v13  ;;  %v1986_v9 = vld [vmem:[#allocation7 + $0x30] sm:$0xff]  ;;  %v1984_v13 = vld [vmem:[#allocation7 + $0x20] sm:$0xff] }
 0x22c   :  { %v1321_v16 = vpop.f32.mrf.mxu0 }
 0x22d   :  { %v5612_v6 = vpop.f32.mrf.mxu1  ;;  %v1332_v24 = vadd.f32 %v1321_v16, %v1222_v17  ;;  %v2002_v16 = vld [vmem:[#allocation7 + $0xa8] sm:$0xff]  ;;  %v1982_v17 = vld [vmem:[#allocation7 + $0x10] sm:$0xff] }
 0x22e   :  { %v1443_v26 = vadd.f32 %v5612_v6, %v1333_v20  ;;  %v2007_v6 = vld [vmem:[#allocation7 + $0xd0] sm:$0xff]  ;;  %v1980_v20 = vld [vmem:[#allocation7] sm:$0xff] }
 0x22f   :  { %v1431_v12 = vpop.f32.mrf.mxu1 }
 0x230   :  { %v1442_v30 = vadd.f32 %v1431_v12, %v1332_v24  ;;  %v2004_v12 = vld [vmem:[#allocation7 + $0xb8] sm:$0xff]  ;;  %v1997_v24 = vld [vmem:[#allocation7 + $0x80] sm:$0xff] }
 0x236   :  { %v5653_v15 = vpop.f32.mrf.mxu1 }
 0x238   :  { %v1641_v21 = vpop.f32.mrf.mxu1  ;;  %v5631_v22 = vpop.f32.mrf.mxu0 }
 0x239   :  { %v1551_v31 = vadd.f32 %v5631_v22, %v1441_v27  ;;  %v1999_v22 = vld [vmem:[#allocation7 + $0x90] sm:$0xff] }
 0x23a   :  { %v1531_v25 = vpop.f32.mrf.mxu0  ;;  %v5656_v28 = vpop.f32.mrf.mxu1 }
 0x23b   :  { %v1550_v35 = vadd.f32 %v1531_v25, %v1440_v32  ;;  %v1661_v40 = vadd.f32 %v5653_v15, %v1551_v31  ;;  %v1983_v15 = vld [vmem:[#allocation7 + $0x18] sm:$0xff] }
 0x23c   :  { %v5634_v29 = vpop.f32.mrf.mxu0  ;;  %v1651_v39 = vpop.f32.mrf.mxu1  ;;  %v2199_v25 = vld [vmem:[#allocation7 + $0x178] sm:$0xff] }
 0x23d   :  { %v1553_v33 = vadd.f32 %v5634_v29, %v1443_v26  ;;  %v1660_v43 = vadd.f32 %v1641_v21, %v1550_v35  ;;  %v1672_v45 = vadd.f32 %v4806_v38, %v1661_v40  ;;  %v2000_v21 = vld [vmem:[#allocation7 + $0x98] sm:$0xff]  ;;  %v2197_v35 = vld [vmem:[#allocation7 + $0x168] sm:$0xff]  ;;  %v2194_v40 = vld [vmem:[#allocation7 + $0x150] sm:$0xff] }
 0x23e   :  { %v1541_v34 = vpop.f32.mrf.mxu0 }
 0x23f   :  { %v1663_v36 = vadd.f32 %v5656_v28, %v1553_v33  ;;  %v1552_v37 = vadd.f32 %v1541_v34, %v1442_v30  ;;  %v1671_v46 = vadd.f32 %v4806_v38, %v1660_v43  ;;  %v2198_v33 = vld [vmem:[#allocation7 + $0x170] sm:$0xff]  ;;  %v2191_v43 = vld [vmem:[#allocation7 + $0x138] sm:$0xff] }
 0x241   :  { %v1674_v41 = vadd.f32 %v4806_v38, %v1663_v36  ;;  %v1662_v42 = vadd.f32 %v1651_v39, %v1552_v37  ;;  %v2195_v39 = vld [vmem:[#allocation7 + $0x158] sm:$0xff] }
 0x243   :  { %v1673_v44 = vadd.f32 %v4806_v38, %v1662_v42  ;;  %5657 = vmatprep.subr.mxu0 %v1674_v41  ;;  %5685 = vmatprep.subr.mxu1 %v1674_v41  ;;  %v2196_v38 = vld [vmem:[#allocation7 + $0x160] sm:$0xff] }
 0x244   :  { %5658 = vmatpush3.msra.mxu0 %v1674_v41  ;;  %5686 = vmatpush3.msra.mxu1 %v1674_v41  ;;  %v2192_v42 = vld [vmem:[#allocation7 + $0x140] sm:$0xff] }
 0x245   :  { %5659 = vmatprep.subr.mxu0 %v1673_v44  ;;  %5687 = vmatprep.subr.mxu1 %v1673_v44 }
 0x246   :  { %5660 = vmatpush3.msra.mxu0 %v1673_v44  ;;  %5688 = vmatpush3.msra.mxu1 %v1673_v44 }
 0x247   :  { %5661 = vmatprep.subr.mxu0 %v1672_v45  ;;  %5689 = vmatprep.subr.mxu1 %v1672_v45 }
 0x248   :  { %5662 = vmatpush3.msra.mxu0 %v1672_v45  ;;  %5690 = vmatpush3.msra.mxu1 %v1672_v45 }
 0x249   :  { %5663 = vmatprep.subr.mxu0 %v1671_v46  ;;  %5691 = vmatprep.subr.mxu1 %v1671_v46 }
 0x24a   :  { %5664 = vmatpush3.msra.mxu0 %v1671_v46  ;;  %5692 = vmatpush3.msra.mxu1 %v1671_v46 }
 0x24b   :  { %5666 = vmatmul.mubr.msk.f32.vlgmr.msra.gmra.mxu0 %vm192_vm0, %v1676_v47  ;;  %5671 = vmatprep.subr.mxu0 %v1674_v41  ;;  %v2187_v47 = vld [vmem:[#allocation7 + $0x118] sm:$0xff] }
 0x24c   :  { %5672 = vmatpush3.msra.mxu0 %v1674_v41  ;;  %5668 = vmatprep.mubr.msk.f32.mxu0 %vm192_vm0, %v1677_v48  ;;  %v2193_v41 = vld [vmem:[#allocation7 + $0x148] sm:$0xff]  ;;  %v2186_v48 = vld [vmem:[#allocation7 + $0x110] sm:$0xff] }
 0x24d   :  { %5673 = vmatprep.subr.mxu0 %v1673_v44  ;;  %5694 = vmatmul.mubr.msk.f32.vlgmr.msra.gmra.mxu1 %vm192_vm0, %v4820_v49  ;;  %v2185_v49 = vld [vmem:[#allocation7 + $0x108] sm:$0xff] }
 0x24e   :  { %5674 = vmatpush3.msra.mxu0 %v1673_v44  ;;  %5696 = vmatprep.mubr.msk.f32.mxu1 %vm192_vm0, %v4821_v50  ;;  %v2190_v44 = vld [vmem:[#allocation7 + $0x130] sm:$0xff] }
 0x24f   :  { %5669 = vmatmul.mubr.msk.f32.gmra.mxu0 %vm192_vm0, %v1678_v51  ;;  %5675 = vmatprep.subr.mxu0 %v1672_v45  ;;  %v2184_v51 = vld [vmem:[#allocation7 + $0x100] sm:$0xff] }
 0x250   :  { %5676 = vmatpush3.msra.mxu0 %v1672_v45  ;;  %5679 = vmatprep.mubr.msk.f32.mxu0 %vm192_vm0, %v4811_v52  ;;  %v2189_v45 = vld [vmem:[#allocation7 + $0x128] sm:$0xff] }
 0x251   :  { %5677 = vmatprep.subr.mxu0 %v1671_v46  ;;  %5697 = vmatmul.mubr.msk.f32.gmra.mxu1 %vm192_vm0, %v4822_v53  ;;  %v2300_v53 = vld [vmem:[#allocation4] sm:$0xff] }
 0x252   :  { %5678 = vmatpush3.msra.mxu0 %v1671_v46  ;;  %5737 = vmatprep.subr.mxu1 %v1995_v54  ;;  %v2188_v46 = vld [vmem:[#allocation7 + $0x120] sm:$0xff] }
 0x253   :  { %5680 = vmatmul.mubr.msk.f32.vlgmr.msra.gmra.mxu0 %vm192_vm0, %v4812_v55  ;;  %5738 = vmatpush3.msra.mxu1 %v1995_v54  ;;  %v2566_v54 = vld [vmem:[#allocation9 + $0x78] sm:$0xff]  ;;  %v2565_v55 = vld [vmem:[#allocation9 + $0x70] sm:$0xff] }
 0x254   :  { %5682 = vmatprep.mubr.msk.f32.mxu0 %vm192_vm0, %v4813_v56  ;;  %5739 = vmatprep.subr.mxu1 %v1994_v57  ;;  %v2564_v56 = vld [vmem:[#allocation9 + $0x68] sm:$0xff] }
 0x255   :  { %5740 = vmatpush3.msra.mxu1 %v1994_v57  ;;  %5699 = vmatprep.subr.mxu0 %v2012_v58  ;;  %v2563_v57 = vld [vmem:[#allocation9 + $0x60] sm:$0xff] }
 0x256   :  { %5741 = vmatprep.subr.mxu1 %v1993_v59  ;;  %5700 = vmatpush3.msra.mxu0 %v2012_v58  ;;  %v2562_v58 = vld [vmem:[#allocation9 + $0x58] sm:$0xff] }
 0x257   :  { %5683 = vmatmul.mubr.msk.f32.gmra.mxu0 %vm192_vm0, %v4814_v60  ;;  %5742 = vmatpush3.msra.mxu1 %v1993_v59  ;;  %v2561_v59 = vld [vmem:[#allocation9 + $0x50] sm:$0xff]  ;;  %v2560_v60 = vld [vmem:[#allocation9 + $0x48] sm:$0xff] }
 0x258   :  { %5743 = vmatprep.subr.mxu1 %v1992_v61  ;;  %5701 = vmatprep.subr.mxu0 %v2011_v62 }
 0x259   :  { %5744 = vmatpush3.msra.mxu1 %v1992_v61  ;;  %5702 = vmatpush3.msra.mxu0 %v2011_v62  ;;  %v2559_v61 = vld [vmem:[#allocation9 + $0x40] sm:$0xff]  ;;  %v2558_v62 = vld [vmem:[#allocation9 + $0x38] sm:$0xff] }
 0x25a   :  { %5745 = vmatprep.subr.mxu1 %v1991_v63  ;;  %5703 = vmatprep.subr.mxu0 %v2010_v0 }
 0x25b   :  { %5746 = vmatpush3.msra.mxu1 %v1991_v63  ;;  %5704 = vmatpush3.msra.mxu0 %v2010_v0  ;;  %v2557_v63 = vld [vmem:[#allocation9 + $0x30] sm:$0xff]  ;;  %v2556_v0 = vld [vmem:[#allocation9 + $0x28] sm:$0xff] }
 0x25c   :  { %5747 = vmatprep.subr.mxu1 %v1990_v1  ;;  %5705 = vmatprep.subr.mxu0 %v2009_v2 }
 0x25d   :  { %5748 = vmatpush3.msra.mxu1 %v1990_v1  ;;  %5706 = vmatpush3.msra.mxu0 %v2009_v2  ;;  %v2555_v1 = vld [vmem:[#allocation9 + $0x20] sm:$0xff]  ;;  %v2554_v2 = vld [vmem:[#allocation9 + $0x18] sm:$0xff] }
 0x25e   :  { %5749 = vmatprep.subr.mxu1 %v1989_v3  ;;  %5707 = vmatprep.subr.mxu0 %v2008_v4 }
 0x25f   :  { %5750 = vmatpush3.msra.mxu1 %v1989_v3  ;;  %5708 = vmatpush3.msra.mxu0 %v2008_v4  ;;  %v2553_v3 = vld [vmem:[#allocation9 + $0x10] sm:$0xff]  ;;  %v2552_v4 = vld [vmem:[#allocation9 + $0x8] sm:$0xff] }
 0x260   :  { %5751 = vmatprep.subr.mxu1 %v1988_v5  ;;  %5709 = vmatprep.subr.mxu0 %v2007_v6 }
 0x261   :  { %5752 = vmatpush3.msra.mxu1 %v1988_v5  ;;  %5710 = vmatpush3.msra.mxu0 %v2007_v6 }
 0x262   :  { %5753 = vmatprep.subr.mxu1 %v1987_v7  ;;  %5711 = vmatprep.subr.mxu0 %v2006_v8 }
 0x263   :  { %5754 = vmatpush3.msra.mxu1 %v1987_v7  ;;  %5712 = vmatpush3.msra.mxu0 %v2006_v8 }
 0x264   :  { %5755 = vmatprep.subr.mxu1 %v1986_v9  ;;  %5713 = vmatprep.subr.mxu0 %v2005_v10 }
 0x265   :  { %5756 = vmatpush3.msra.mxu1 %v1986_v9  ;;  %5714 = vmatpush3.msra.mxu0 %v2005_v10 }
 0x266   :  { %5757 = vmatprep.subr.mxu1 %v1985_v11  ;;  %5715 = vmatprep.subr.mxu0 %v2004_v12 }
 0x267   :  { %5758 = vmatpush3.msra.mxu1 %v1985_v11  ;;  %5716 = vmatpush3.msra.mxu0 %v2004_v12 }
 0x268   :  { %5759 = vmatprep.subr.mxu1 %v1984_v13  ;;  %5717 = vmatprep.subr.mxu0 %v2003_v14 }
 0x269   :  { %5760 = vmatpush3.msra.mxu1 %v1984_v13  ;;  %5718 = vmatpush3.msra.mxu0 %v2003_v14 }
 0x26a   :  { %5761 = vmatprep.subr.mxu1 %v1983_v15  ;;  %5719 = vmatprep.subr.mxu0 %v2002_v16 }
 0x26b   :  { %5762 = vmatpush3.msra.mxu1 %v1983_v15  ;;  %5720 = vmatpush3.msra.mxu0 %v2002_v16 }
 0x26c   :  { %5763 = vmatprep.subr.mxu1 %v1982_v17  ;;  %5721 = vmatprep.subr.mxu0 %v2001_v19 }
 0x26d   :  { %5764 = vmatpush3.msra.mxu1 %v1982_v17  ;;  %5722 = vmatpush3.msra.mxu0 %v2001_v19 }
 0x26e   :  { %5765 = vmatprep.subr.mxu1 %v1981_v18  ;;  %5723 = vmatprep.subr.mxu0 %v2000_v21 }
 0x26f   :  { %5766 = vmatpush3.msra.mxu1 %v1981_v18  ;;  %5724 = vmatpush3.msra.mxu0 %v2000_v21 }
 0x270   :  { %5767 = vmatprep.subr.mxu1 %v1980_v20  ;;  %5725 = vmatprep.subr.mxu0 %v1999_v22 }
 0x271   :  { %5768 = vmatpush3.msra.mxu1 %v1980_v20  ;;  %5726 = vmatpush3.msra.mxu0 %v1999_v22  ;;  %v4827_v20 = vld [vmem:[%s7283_s8] ss:$0 sm:$0xff] }
 0x272   :  { %5727 = vmatprep.subr.mxu0 %v1998_v23 }
 0x273   :  { %5728 = vmatpush3.msra.mxu0 %v1998_v23 }
 0x274   :  { %5729 = vmatprep.subr.mxu0 %v1997_v24 }
 0x275   :  { %5730 = vmatpush3.msra.mxu0 %v1997_v24 }
 0x276   :  { %5775 = vmatprep.subr.mxu0 %v2199_v25 }
 0x30b   :  { %v5667_v26 = vpop.f32.mrf.mxu0 }
 0x30d   :  { %v1757_v27 = vpop.f32.mrf.mxu0  ;;  %v5695_v32 = vpop.f32.mrf.mxu1 }
 0x30e   :  { %5769 = vmatprep.mubr.f32.mxu1 %v1757_v27 }
 0x30f   :  { %v5670_v28 = vpop.f32.mrf.mxu0  ;;  %5770 = vmatmul.mubr.f32.vlgmr.msra.gmra.mxu1 %v5667_v26  ;;  %v1961_v37 = vpop.f32.mrf.mxu1 }
 0x311   :  { %v1767_v29 = vpop.f32.mrf.mxu0  ;;  %v5698_v50 = vpop.f32.mrf.mxu1 }
 0x312   :  { %5772 = vmatprep.mubr.f32.mxu1 %v1767_v29 }
 0x313   :  { %v5681_v30 = vpop.f32.mrf.mxu0  ;;  %5773 = vmatmul.mubr.f32.gmra.mxu1 %v5670_v28  ;;  %v1971_v52 = vpop.f32.mrf.mxu1 }
 0x314   :  { %5821 = vmatprep.mubr.msk.f32.mxu1 %vm192_vm0, %v2300_v53  ;;  %v2750_v53 = vld [vmem:[#allocation9 + $0x178] sm:$0xff] }
 0x315   :  { %v1859_v31 = vpop.f32.mrf.mxu0 }
 0x316   :  { %5731 = vmatprep.mubr.f32.mxu0 %v1859_v31  ;;  %v2384_v31 = vld [vmem:[#allocation4 + $0x10] sm:$0xff] }
 0x317   :  { %v5684_v34 = vpop.f32.mrf.mxu0  ;;  %5732 = vmatmul.mubr.f32.vlgmr.msra.gmra.mxu0 %v5681_v30  ;;  %v2301_v30 = vld [vmem:[#allocation4 + $0x8] sm:$0xff] }
 0x318   :  { %5776 = vmatpush3.msra.mxu0 %v2199_v25 }
 0x319   :  { %5777 = vmatprep.subr.mxu0 %v2198_v33  ;;  %v1869_v36 = vpop.f32.mrf.mxu0 }
 0x31a   :  { %5778 = vmatpush3.msra.mxu0 %v2198_v33  ;;  %5734 = vmatprep.mubr.f32.mxu0 %v1869_v36  ;;  %v2468_v33 = vld [vmem:[#allocation4 + $0x20] sm:$0xff]  ;;  %v2582_v36 = vld [vmem:[#allocation9 + $0xf0] sm:$0xff] }
 0x31b   :  { %5779 = vmatprep.subr.mxu0 %v2197_v35  ;;  %5735 = vmatmul.mubr.f32.gmra.mxu0 %v5684_v34  ;;  %v2469_v34 = vld [vmem:[#allocation4 + $0x28] sm:$0xff] }
 0x31c   :  { %5780 = vmatpush3.msra.mxu0 %v2197_v35  ;;  %5807 = vmatprep.mubr.f32.mxu0 %v1961_v37  ;;  %v2583_v35 = vld [vmem:[#allocation9 + $0xf8] sm:$0xff]  ;;  %v2581_v37 = vld [vmem:[#allocation9 + $0xe8] sm:$0xff] }
 0x31d   :  { %5781 = vmatprep.subr.mxu0 %v2196_v38 }
 0x31e   :  { %5782 = vmatpush3.msra.mxu0 %v2196_v38  ;;  %v2580_v38 = vld [vmem:[#allocation9 + $0xe0] sm:$0xff] }
 0x31f   :  { %5783 = vmatprep.subr.mxu0 %v2195_v39 }
 0x320   :  { %5784 = vmatpush3.msra.mxu0 %v2195_v39  ;;  %v2579_v39 = vld [vmem:[#allocation9 + $0xd8] sm:$0xff] }
 0x321   :  { %5785 = vmatprep.subr.mxu0 %v2194_v40 }
 0x322   :  { %5786 = vmatpush3.msra.mxu0 %v2194_v40  ;;  %v2578_v40 = vld [vmem:[#allocation9 + $0xd0] sm:$0xff] }
 0x323   :  { %5787 = vmatprep.subr.mxu0 %v2193_v41 }
 0x324   :  { %5788 = vmatpush3.msra.mxu0 %v2193_v41  ;;  %v2577_v41 = vld [vmem:[#allocation9 + $0xc8] sm:$0xff] }
 0x325   :  { %5789 = vmatprep.subr.mxu0 %v2192_v42 }
 0x326   :  { %5790 = vmatpush3.msra.mxu0 %v2192_v42  ;;  %v2576_v42 = vld [vmem:[#allocation9 + $0xc0] sm:$0xff] }
 0x327   :  { %5791 = vmatprep.subr.mxu0 %v2191_v43 }
 0x328   :  { %5792 = vmatpush3.msra.mxu0 %v2191_v43  ;;  %v2575_v43 = vld [vmem:[#allocation9 + $0xb8] sm:$0xff] }
 0x329   :  { %5793 = vmatprep.subr.mxu0 %v2190_v44 }
 0x32a   :  { %5794 = vmatpush3.msra.mxu0 %v2190_v44  ;;  %v2574_v44 = vld [vmem:[#allocation9 + $0xb0] sm:$0xff] }
 0x32b   :  { %5795 = vmatprep.subr.mxu0 %v2189_v45 }
 0x32c   :  { %5796 = vmatpush3.msra.mxu0 %v2189_v45  ;;  %v2573_v45 = vld [vmem:[#allocation9 + $0xa8] sm:$0xff] }
 0x32d   :  { %5797 = vmatprep.subr.mxu0 %v2188_v46 }
 0x32e   :  { %5798 = vmatpush3.msra.mxu0 %v2188_v46  ;;  %v2572_v46 = vld [vmem:[#allocation9 + $0xa0] sm:$0xff] }
 0x32f   :  { %5799 = vmatprep.subr.mxu0 %v2187_v47 }
 0x330   :  { %5800 = vmatpush3.msra.mxu0 %v2187_v47  ;;  %v2551_v47 = vld [vmem:[#allocation9] sm:$0xff] }
 0x331   :  { %5801 = vmatprep.subr.mxu0 %v2186_v48 }
 0x332   :  { %5802 = vmatpush3.msra.mxu0 %v2186_v48  ;;  %v2571_v48 = vld [vmem:[#allocation9 + $0x98] sm:$0xff] }
 0x333   :  { %5803 = vmatprep.subr.mxu0 %v2185_v49 }
 0x334   :  { %5804 = vmatpush3.msra.mxu0 %v2185_v49  ;;  %v2871_v49 = vld [vmem:[#allocation10 + $0xf8] sm:$0xff] }
 0x335   :  { %5805 = vmatprep.subr.mxu0 %v2184_v51 }
 0x336   :  { %5806 = vmatpush3.msra.mxu0 %v2184_v51  ;;  %v2569_v51 = vld [vmem:[#allocation9 + $0x88] sm:$0xff] }
 0x337   :  { %5808 = vmatmul.mubr.f32.vlgmr.msra.gmra.mxu0 %v5695_v32  ;;  %5881 = vmatprep.subr.mxu0 %v2566_v54  ;;  %v2385_v32 = vld [vmem:[#allocation4 + $0x18] sm:$0xff] }
 0x338   :  { %5810 = vmatprep.mubr.f32.mxu0 %v1971_v52  ;;  %5882 = vmatpush3.msra.mxu0 %v2566_v54  ;;  %v2568_v52 = vld [vmem:[#allocation9 + $0x80] sm:$0xff] }
 0x339   :  { %5883 = vmatprep.subr.mxu0 %v2565_v55 }
 0x33a   :  { %5884 = vmatpush3.msra.mxu0 %v2565_v55 }
 0x33b   :  { %5811 = vmatmul.mubr.f32.gmra.mxu0 %v5698_v50  ;;  %5885 = vmatprep.subr.mxu0 %v2564_v56  ;;  %v2570_v50 = vld [vmem:[#allocation9 + $0x90] sm:$0xff] }
 0x33c   :  { %5886 = vmatpush3.msra.mxu0 %v2564_v56  ;;  %v2870_v56 = vld [vmem:[#allocation10 + $0xf0] sm:$0xff] }
 0x33d   :  { %5887 = vmatprep.subr.mxu0 %v2563_v57 }
 0x33e   :  { %5888 = vmatpush3.msra.mxu0 %v2563_v57  ;;  %v2869_v57 = vld [vmem:[#allocation10 + $0xe8] sm:$0xff] }
 0x33f   :  { %5889 = vmatprep.subr.mxu0 %v2562_v58 }
 0x340   :  { %5890 = vmatpush3.msra.mxu0 %v2562_v58  ;;  %v2868_v58 = vld [vmem:[#allocation10 + $0xe0] sm:$0xff] }
 0x341   :  { %5891 = vmatprep.subr.mxu0 %v2561_v59 }
 0x342   :  { %5892 = vmatpush3.msra.mxu0 %v2561_v59 }
 0x343   :  { %5893 = vmatprep.subr.mxu0 %v2560_v60 }
 0x344   :  { %5894 = vmatpush3.msra.mxu0 %v2560_v60  ;;  %v2867_v60 = vld [vmem:[#allocation10 + $0xd8] sm:$0xff] }
 0x345   :  { %5895 = vmatprep.subr.mxu0 %v2559_v61 }
 0x346   :  { %5896 = vmatpush3.msra.mxu0 %v2559_v61 }
 0x347   :  { %5897 = vmatprep.subr.mxu0 %v2558_v62 }
 0x348   :  { %5898 = vmatpush3.msra.mxu0 %v2558_v62  ;;  %v2866_v62 = vld [vmem:[#allocation10 + $0xd0] sm:$0xff] }
 0x349   :  { %5899 = vmatprep.subr.mxu0 %v2557_v63 }
 0x34a   :  { %5900 = vmatpush3.msra.mxu0 %v2557_v63  ;;  %v2749_v63 = vld [vmem:[#allocation9 + $0x170] sm:$0xff] }
 0x34b   :  { %5901 = vmatprep.subr.mxu0 %v2556_v0 }
 0x34c   :  { %5902 = vmatpush3.msra.mxu0 %v2556_v0  ;;  %v2865_v0 = vld [vmem:[#allocation10 + $0xc8] sm:$0xff] }
 0x34d   :  { %5903 = vmatprep.subr.mxu0 %v2555_v1 }
 0x34e   :  { %5904 = vmatpush3.msra.mxu0 %v2555_v1  ;;  %v2748_v1 = vld [vmem:[#allocation9 + $0x168] sm:$0xff] }
 0x34f   :  { %5905 = vmatprep.subr.mxu0 %v2554_v2 }
 0x350   :  { %5906 = vmatpush3.msra.mxu0 %v2554_v2  ;;  %v2864_v2 = vld [vmem:[#allocation10 + $0xc0] sm:$0xff] }
 0x351   :  { %5907 = vmatprep.subr.mxu0 %v2553_v3 }
 0x352   :  { %5908 = vmatpush3.msra.mxu0 %v2553_v3  ;;  %v2747_v3 = vld [vmem:[#allocation9 + $0x160] sm:$0xff] }
 0x353   :  { %5909 = vmatprep.subr.mxu0 %v2552_v4 }
 0x354   :  { %5910 = vmatpush3.msra.mxu0 %v2552_v4  ;;  %v2863_v4 = vld [vmem:[#allocation10 + $0xb8] sm:$0xff] }
 0x355   :  { %5911 = vmatprep.subr.mxu0 %v2551_v47 }
 0x356   :  { %5912 = vmatpush3.msra.mxu0 %v2551_v47  ;;  %v3026_v47 = vld [vmem:[#allocation10 + $0x118] sm:$0xff] }
 0x357   :  { %5951 = vmatprep.subr.mxu0 %v2871_v49 }
 0x3cf   :  { %v5771_v7 = vpop.f32.mrf.mxu1 }
 0x3d1   :  { %v2164_v9 = vpop.f32.mrf.mxu1 }
 0x3d3   :  { %v5774_v11 = vpop.f32.mrf.mxu1 }
 0x3d5   :  { %v2174_v15 = vpop.f32.mrf.mxu1 }
 0x3d7   :  { %v5733_v5 = vpop.f32.mrf.mxu0 }
 0x3d8   :  { %v2170_v17 = vadd.f32 %v5771_v7, %v5733_v5  ;;  %v2746_v5 = vld [vmem:[#allocation9 + $0x158] sm:$0xff]  ;;  %v2745_v7 = vld [vmem:[#allocation9 + $0x150] sm:$0xff] }
 0x3d9   :  { %v2079_v6 = vpop.f32.mrf.mxu0 }
 0x3da   :  { %v2165_v22 = vadd.f32 %v2164_v9, %v2079_v6  ;;  %v2862_v6 = vld [vmem:[#allocation10 + $0xb0] sm:$0xff]  ;;  %v2744_v9 = vld [vmem:[#allocation9 + $0x148] sm:$0xff] }
 0x3db   :  { %v5736_v8 = vpop.f32.mrf.mxu0 }
 0x3dc   :  { %v2180_v14 = vadd.f32 %v5774_v11, %v5736_v8  ;;  %v2861_v8 = vld [vmem:[#allocation10 + $0xa8] sm:$0xff]  ;;  %v2743_v11 = vld [vmem:[#allocation9 + $0x140] sm:$0xff] }
 0x3dd   :  { %v2089_v10 = vpop.f32.mrf.mxu0 }
 0x3de   :  { %v2175_v18 = vadd.f32 %v2174_v15, %v2089_v10  ;;  %v2860_v10 = vld [vmem:[#allocation10 + $0xa0] sm:$0xff]  ;;  %v2741_v15 = vld [vmem:[#allocation9 + $0x130] sm:$0xff] }
 0x3f7   :  { %v5809_v12 = vpop.f32.mrf.mxu0 }
 0x3f8   :  { %v2286_v23 = vadd.f32 %v5809_v12, %v2170_v17  ;;  %v2859_v12 = vld [vmem:[#allocation10 + $0x98] sm:$0xff]  ;;  %v2740_v17 = vld [vmem:[#allocation9 + $0x128] sm:$0xff] }
 0x3f9   :  { %v2266_v13 = vpop.f32.mrf.mxu0 }
 0x3fa   :  { %v2285_v26 = vadd.f32 %v2266_v13, %v2165_v22  ;;  %v2297_v28 = vadd.f32 %v4827_v20, %v2286_v23  ;;  %v2742_v13 = vld [vmem:[#allocation9 + $0x138] sm:$0xff]  ;;  %v2737_v23 = vld [vmem:[#allocation9 + $0x110] sm:$0xff] }
 0x3fb   :  { %v5812_v16 = vpop.f32.mrf.mxu0 }
 0x3fc   :  { %v2288_v19 = vadd.f32 %v5812_v16, %v2180_v14  ;;  %v2296_v29 = vadd.f32 %v4827_v20, %v2285_v26  ;;  %v2858_v14 = vld [vmem:[#allocation10 + $0x90] sm:$0xff]  ;;  %v2857_v16 = vld [vmem:[#allocation10 + $0x88] sm:$0xff] }
 0x3fd   :  { %v2276_v21 = vpop.f32.mrf.mxu0  ;;  %v3036_v26 = vld [vmem:[#allocation10 + $0x168] sm:$0xff] }
 0x3fe   :  { %v2299_v24 = vadd.f32 %v4827_v20, %v2288_v19  ;;  %v2287_v25 = vadd.f32 %v2276_v21, %v2175_v18  ;;  %v2856_v18 = vld [vmem:[#allocation10 + $0x80] sm:$0xff]  ;;  %v3038_v21 = vld [vmem:[#allocation10 + $0x178] sm:$0xff] }
 0x3ff   :  { %v2739_v19 = vld [vmem:[#allocation9 + $0x120] sm:$0xff] }
 0x400   :  { %v2298_v27 = vadd.f32 %v4827_v20, %v2287_v25  ;;  %5813 = vmatprep.subr.mxu1 %v2299_v24  ;;  %v2738_v20 = vld [vmem:[#allocation9 + $0x118] sm:$0xff]  ;;  %v2736_v25 = vld [vmem:[#allocation9 + $0x108] sm:$0xff] }
 0x401   :  { %5814 = vmatpush3.msra.mxu1 %v2299_v24 }
 0x402   :  { %5815 = vmatprep.subr.mxu1 %v2298_v27 }
 0x403   :  { %5816 = vmatpush3.msra.mxu1 %v2298_v27 }
 0x404   :  { %5817 = vmatprep.subr.mxu1 %v2297_v28 }
 0x405   :  { %5818 = vmatpush3.msra.mxu1 %v2297_v28 }
 0x406   :  { %5819 = vmatprep.subr.mxu1 %v2296_v29 }
 0x407   :  { %5820 = vmatpush3.msra.mxu1 %v2296_v29 }
 0x408   :  { %5822 = vmatmul.mubr.msk.f32.vlgmr.msra.gmra.mxu1 %vm192_vm0, %v2301_v30  ;;  %5824 = vmatprep.subr.mxu1 %v2299_v24  ;;  %v2854_v30 = vld [vmem:[#allocation10 + $0x78] sm:$0xff] }
 0x409   :  { %5825 = vmatpush3.msra.mxu1 %v2299_v24  ;;  %5832 = vmatprep.mubr.msk.f32.mxu1 %vm192_vm0, %v2384_v31  ;;  %v3034_v31 = vld [vmem:[#allocation10 + $0x158] sm:$0xff] }
 0x40a   :  { %5826 = vmatprep.subr.mxu1 %v2298_v27 }
 0x40b   :  { %5827 = vmatpush3.msra.mxu1 %v2298_v27 }
 0x40c   :  { %5828 = vmatprep.subr.mxu1 %v2297_v28 }
 0x40d   :  { %5829 = vmatpush3.msra.mxu1 %v2297_v28 }
 0x40e   :  { %5830 = vmatprep.subr.mxu1 %v2296_v29 }
 0x40f   :  { %5831 = vmatpush3.msra.mxu1 %v2296_v29 }
 0x410   :  { %5833 = vmatmul.mubr.msk.f32.vlgmr.msra.gmra.mxu1 %vm192_vm0, %v2385_v32  ;;  %5835 = vmatprep.subr.mxu1 %v2299_v24  ;;  %v2853_v32 = vld [vmem:[#allocation10 + $0x70] sm:$0xff] }
 0x411   :  { %5836 = vmatpush3.msra.mxu1 %v2299_v24  ;;  %5843 = vmatprep.mubr.msk.f32.mxu1 %vm192_vm0, %v2468_v33  ;;  %v3037_v24 = vld [vmem:[#allocation10 + $0x170] sm:$0xff] }
 0x412   :  { %5837 = vmatprep.subr.mxu1 %v2298_v27  ;;  %v3033_v33 = vld [vmem:[#allocation10 + $0x150] sm:$0xff] }
 0x413   :  { %5838 = vmatpush3.msra.mxu1 %v2298_v27 }
 0x414   :  { %5839 = vmatprep.subr.mxu1 %v2297_v28 }
 0x415   :  { %5840 = vmatpush3.msra.mxu1 %v2297_v28  ;;  %v2735_v28 = vld [vmem:[#allocation9 + $0x100] sm:$0xff] }
 0x416   :  { %5841 = vmatprep.subr.mxu1 %v2296_v29 }
 0x417   :  { %5842 = vmatpush3.msra.mxu1 %v2296_v29  ;;  %v3035_v29 = vld [vmem:[#allocation10 + $0x160] sm:$0xff] }
 0x418   :  { %5844 = vmatmul.mubr.msk.f32.vlgmr.msra.gmra.mxu1 %vm192_vm0, %v2469_v34  ;;  %5846 = vmatprep.subr.mxu1 %v2583_v35  ;;  %v2852_v34 = vld [vmem:[#allocation10 + $0x68] sm:$0xff] }
 0x419   :  { %5847 = vmatpush3.msra.mxu1 %v2583_v35  ;;  %v3032_v35 = vld [vmem:[#allocation10 + $0x148] sm:$0xff] }
 0x41a   :  { %5848 = vmatprep.subr.mxu1 %v2582_v36 }
 0x41b   :  { %5849 = vmatpush3.msra.mxu1 %v2582_v36  ;;  %v2851_v36 = vld [vmem:[#allocation10 + $0x60] sm:$0xff] }
 0x41c   :  { %5850 = vmatprep.subr.mxu1 %v2581_v37 }
 0x41d   :  { %5851 = vmatpush3.msra.mxu1 %v2581_v37  ;;  %v3031_v37 = vld [vmem:[#allocation10 + $0x140] sm:$0xff] }
 0x41e   :  { %5852 = vmatprep.subr.mxu1 %v2580_v38 }
 0x41f   :  { %5853 = vmatpush3.msra.mxu1 %v2580_v38  ;;  %v2850_v38 = vld [vmem:[#allocation10 + $0x58] sm:$0xff] }
 0x420   :  { %5854 = vmatprep.subr.mxu1 %v2579_v39 }
 0x421   :  { %5855 = vmatpush3.msra.mxu1 %v2579_v39  ;;  %v3030_v39 = vld [vmem:[#allocation10 + $0x138] sm:$0xff] }
 0x422   :  { %5856 = vmatprep.subr.mxu1 %v2578_v40 }
 0x423   :  { %5857 = vmatpush3.msra.mxu1 %v2578_v40  ;;  %v2849_v40 = vld [vmem:[#allocation10 + $0x50] sm:$0xff] }
 0x424   :  { %5858 = vmatprep.subr.mxu1 %v2577_v41 }
 0x425   :  { %5859 = vmatpush3.msra.mxu1 %v2577_v41  ;;  %v3029_v41 = vld [vmem:[#allocation10 + $0x130] sm:$0xff] }
 0x426   :  { %5860 = vmatprep.subr.mxu1 %v2576_v42 }
 0x427   :  { %5861 = vmatpush3.msra.mxu1 %v2576_v42  ;;  %v2848_v42 = vld [vmem:[#allocation10 + $0x48] sm:$0xff] }
 0x428   :  { %5862 = vmatprep.subr.mxu1 %v2575_v43 }
 0x429   :  { %5863 = vmatpush3.msra.mxu1 %v2575_v43  ;;  %v3028_v43 = vld [vmem:[#allocation10 + $0x128] sm:$0xff] }
 0x42a   :  { %5864 = vmatprep.subr.mxu1 %v2574_v44 }
 0x42b   :  { %5865 = vmatpush3.msra.mxu1 %v2574_v44  ;;  %v2847_v44 = vld [vmem:[#allocation10 + $0x40] sm:$0xff] }
 0x42c   :  { %5866 = vmatprep.subr.mxu1 %v2573_v45 }
 0x42d   :  { %5867 = vmatpush3.msra.mxu1 %v2573_v45  ;;  %v3027_v45 = vld [vmem:[#allocation10 + $0x120] sm:$0xff] }
 0x42e   :  { %5868 = vmatprep.subr.mxu1 %v2572_v46 }
 0x42f   :  { %5869 = vmatpush3.msra.mxu1 %v2572_v46  ;;  %v2846_v46 = vld [vmem:[#allocation10 + $0x38] sm:$0xff] }
 0x430   :  { %5870 = vmatprep.subr.mxu1 %v2571_v48 }
 0x431   :  { %5871 = vmatpush3.msra.mxu1 %v2571_v48  ;;  %v2845_v48 = vld [vmem:[#allocation10 + $0x30] sm:$0xff] }
 0x432   :  { %5872 = vmatprep.subr.mxu1 %v2570_v50 }
 0x433   :  { %5873 = vmatpush3.msra.mxu1 %v2570_v50  ;;  %v2844_v50 = vld [vmem:[#allocation10 + $0x28] sm:$0xff] }
 0x434   :  { %5874 = vmatprep.subr.mxu1 %v2569_v51 }
 0x435   :  { %5875 = vmatpush3.msra.mxu1 %v2569_v51  ;;  %v3024_v51 = vld [vmem:[#allocation10 + $0x108] sm:$0xff] }
 0x436   :  { %5876 = vmatprep.subr.mxu1 %v2568_v52 }
 0x437   :  { %5877 = vmatpush3.msra.mxu1 %v2568_v52  ;;  %v2843_v52 = vld [vmem:[#allocation10 + $0x20] sm:$0xff] }
 0x438   :  { %5916 = vmatprep.subr.mxu1 %v2750_v53 }
 0x4c8   :  { %v7160_v54 = vpop.f32.mrf.mxu1 }
 0x4ca   :  { %v7162_v55 = vpop.f32.mrf.mxu1 }
 0x4cb   :  { %5913 = vmatprep.mubr.f32.mxu0 %v7162_v55 }
 0x4cc   :  { %5914 = vmatmul.mubr.f32.vlgmr.msra.gmra.mxu0 %v7160_v54 }
 0x4cd   :  { %5952 = vmatpush3.msra.mxu0 %v2871_v49  ;;  %v3025_v49 = vld [vmem:[#allocation10 + $0x110] sm:$0xff] }
 0x4ce   :  { %5953 = vmatprep.subr.mxu0 %v2870_v56 }
 0x4cf   :  { %5954 = vmatpush3.msra.mxu0 %v2870_v56  ;;  %v2841_v56 = vld [vmem:[#allocation10 + $0x10] sm:$0xff] }
 0x4d0   :  { %5955 = vmatprep.subr.mxu0 %v2869_v57  ;;  %v7166_v59 = vpop.f32.mrf.mxu1 }
 0x4d1   :  { %5956 = vmatpush3.msra.mxu0 %v2869_v57  ;;  %v2840_v57 = vld [vmem:[#allocation10 + $0x8] sm:$0xff] }
 0x4d2   :  { %5957 = vmatprep.subr.mxu0 %v2868_v58  ;;  %v2458_v61 = vpop.f32.mrf.mxu1 }
 0x4d3   :  { %5958 = vmatpush3.msra.mxu0 %v2868_v58  ;;  %5878 = vmatprep.mubr.f32.mxu1 %v2458_v61  ;;  %v2839_v58 = vld [vmem:[#allocation10] sm:$0xff] }
 0x4d4   :  { %5959 = vmatprep.subr.mxu0 %v2867_v60  ;;  %5983 = vmatprep.mubr.f32.mxu0 %v2458_v61 }
 0x4d5   :  { %5879 = vmatmul.mubr.f32.vlgmr.msra.gmra.mxu1 %v7166_v59  ;;  %5960 = vmatpush3.msra.mxu0 %v2867_v60  ;;  %v7180_v60 = vld [vmem:[#allocation6 + $0x20] sm:$0xff] }
 0x4d6   :  { %5917 = vmatpush3.msra.mxu1 %v2750_v53  ;;  %5961 = vmatprep.subr.mxu0 %v2866_v62  ;;  %v3023_v53 = vld [vmem:[#allocation10 + $0x100] sm:$0xff] }
 0x4d7   :  { %5918 = vmatprep.subr.mxu1 %v2749_v63  ;;  %5962 = vmatpush3.msra.mxu0 %v2866_v62 }
 0x4d8   :  { %5919 = vmatpush3.msra.mxu1 %v2749_v63  ;;  %5963 = vmatprep.subr.mxu0 %v2865_v0  ;;  %v7169_v22 = vpop.f32.mrf.mxu1 }
 0x4d9   :  { %5920 = vmatprep.subr.mxu1 %v2748_v1  ;;  %5964 = vmatpush3.msra.mxu0 %v2865_v0 }
 0x4da   :  { %5921 = vmatpush3.msra.mxu1 %v2748_v1  ;;  %5965 = vmatprep.subr.mxu0 %v2864_v2  ;;  %v2542_v27 = vpop.f32.mrf.mxu1 }
 0x4db   :  { %5922 = vmatprep.subr.mxu1 %v2747_v3  ;;  %5966 = vmatpush3.msra.mxu0 %v2864_v2 }
 0x4dc   :  { %5923 = vmatpush3.msra.mxu1 %v2747_v3  ;;  %5967 = vmatprep.subr.mxu0 %v2863_v4 }
 0x4dd   :  { %5924 = vmatprep.subr.mxu1 %v2746_v5  ;;  %5968 = vmatpush3.msra.mxu0 %v2863_v4 }
 0x4de   :  { %5925 = vmatpush3.msra.mxu1 %v2746_v5  ;;  %5969 = vmatprep.subr.mxu0 %v2862_v6 }
 0x4df   :  { %5926 = vmatprep.subr.mxu1 %v2745_v7  ;;  %5970 = vmatpush3.msra.mxu0 %v2862_v6 }
 0x4e0   :  { %5927 = vmatpush3.msra.mxu1 %v2745_v7  ;;  %5971 = vmatprep.subr.mxu0 %v2861_v8 }
 0x4e1   :  { %5928 = vmatprep.subr.mxu1 %v2744_v9  ;;  %5972 = vmatpush3.msra.mxu0 %v2861_v8 }
 0x4e2   :  { %5929 = vmatpush3.msra.mxu1 %v2744_v9  ;;  %5973 = vmatprep.subr.mxu0 %v2860_v10 }
 0x4e3   :  { %5930 = vmatprep.subr.mxu1 %v2743_v11  ;;  %5974 = vmatpush3.msra.mxu0 %v2860_v10 }
 0x4e4   :  { %5931 = vmatpush3.msra.mxu1 %v2743_v11  ;;  %5975 = vmatprep.subr.mxu0 %v2859_v12  ;;  %v7187_v11 = vld [vmem:[#allocation6 + $0x8] sm:$0xff] }
 0x4e5   :  { %5932 = vmatprep.subr.mxu1 %v2742_v13  ;;  %5976 = vmatpush3.msra.mxu0 %v2859_v12  ;;  %v7189_v12 = vld [vmem:[#allocation6 + $0x10] sm:$0xff] }
 0x4e6   :  { %5933 = vmatpush3.msra.mxu1 %v2742_v13  ;;  %5977 = vmatprep.subr.mxu0 %v2858_v14  ;;  %v7191_v13 = vld [vmem:[#allocation6 + $0x28] sm:$0xff] }
 0x4e7   :  { %5934 = vmatprep.subr.mxu1 %v2741_v15  ;;  %5978 = vmatpush3.msra.mxu0 %v2858_v14  ;;  %v3392_v14 = vld [vmem:[#allocation12 + $0x78] sm:$0xff] }
 0x4e8   :  { %5935 = vmatpush3.msra.mxu1 %v2741_v15  ;;  %5979 = vmatprep.subr.mxu0 %v2857_v16  ;;  %v7197_v15 = vld [vmem:[#allocation6 + $0x18] sm:$0xff] }
 0x4e9   :  { %5936 = vmatprep.subr.mxu1 %v2740_v17  ;;  %5980 = vmatpush3.msra.mxu0 %v2857_v16  ;;  %v3391_v16 = vld [vmem:[#allocation12 + $0x70] sm:$0xff] }
 0x4ea   :  { %5937 = vmatpush3.msra.mxu1 %v2740_v17  ;;  %5981 = vmatprep.subr.mxu0 %v2856_v18  ;;  %v3409_v17 = vld [vmem:[#allocation12 + $0xf8] sm:$0xff] }
 0x4eb   :  { %5938 = vmatprep.subr.mxu1 %v2739_v19  ;;  %5982 = vmatpush3.msra.mxu0 %v2856_v18  ;;  %v3390_v18 = vld [vmem:[#allocation12 + $0x68] sm:$0xff] }
 0x4ec   :  { %5939 = vmatpush3.msra.mxu1 %v2739_v19  ;;  %5984 = vmatmul.mubr.f32.vlgmr.msra.gmra.mxu0 %v7166_v59  ;;  %v7176_v59 = vld [vmem:[#allocation6] sm:$0xff] }
 0x4ed   :  { %5940 = vmatprep.subr.mxu1 %v2738_v20  ;;  %6021 = vmatprep.subr.mxu0 %v3038_v21  ;;  %v3408_v19 = vld [vmem:[#allocation12 + $0xf0] sm:$0xff] }
 0x4ee   :  { %5941 = vmatpush3.msra.mxu1 %v2738_v20  ;;  %6022 = vmatpush3.msra.mxu0 %v3038_v21  ;;  %v3389_v20 = vld [vmem:[#allocation12 + $0x60] sm:$0xff]  ;;  %v3407_v21 = vld [vmem:[#allocation12 + $0xe8] sm:$0xff] }
 0x4ef   :  { %5942 = vmatprep.subr.mxu1 %v2737_v23  ;;  %6023 = vmatprep.subr.mxu0 %v3037_v24 }
 0x4f0   :  { %5943 = vmatpush3.msra.mxu1 %v2737_v23  ;;  %6024 = vmatpush3.msra.mxu0 %v3037_v24  ;;  %v3406_v23 = vld [vmem:[#allocation12 + $0xe0] sm:$0xff]  ;;  %v3387_v24 = vld [vmem:[#allocation12 + $0x50] sm:$0xff] }
 0x4f1   :  { %5944 = vmatprep.subr.mxu1 %v2736_v25  ;;  %6025 = vmatprep.subr.mxu0 %v3036_v26 }
 0x4f2   :  { %5945 = vmatpush3.msra.mxu1 %v2736_v25  ;;  %5948 = vmatprep.mubr.f32.mxu1 %v2542_v27  ;;  %v3405_v25 = vld [vmem:[#allocation12 + $0xd8] sm:$0xff] }
 0x4f3   :  { %6026 = vmatpush3.msra.mxu0 %v3036_v26  ;;  %6053 = vmatprep.mubr.f32.mxu0 %v2542_v27  ;;  %v3386_v26 = vld [vmem:[#allocation12 + $0x48] sm:$0xff]  ;;  %v3404_v27 = vld [vmem:[#allocation12 + $0xd0] sm:$0xff] }
 0x4f4   :  { %5946 = vmatprep.subr.mxu1 %v2735_v28  ;;  %6027 = vmatprep.subr.mxu0 %v3035_v29 }
 0x4f5   :  { %5947 = vmatpush3.msra.mxu1 %v2735_v28  ;;  %6028 = vmatpush3.msra.mxu0 %v3035_v29  ;;  %v3385_v28 = vld [vmem:[#allocation12 + $0x40] sm:$0xff]  ;;  %v3403_v29 = vld [vmem:[#allocation12 + $0xc8] sm:$0xff] }
 0x4f6   :  { %5949 = vmatmul.mubr.f32.vlgmr.msra.gmra.mxu1 %v7169_v22  ;;  %5986 = vmatprep.subr.mxu1 %v2854_v30 }
 0x4f7   :  { %6029 = vmatprep.subr.mxu0 %v3034_v31  ;;  %5987 = vmatpush3.msra.mxu1 %v2854_v30  ;;  %v3384_v30 = vld [vmem:[#allocation12 + $0x38] sm:$0xff] }
 0x4f8   :  { %6018 = vmatprep.mubr.f32.mxu1 %v7162_v55  ;;  %6030 = vmatpush3.msra.mxu0 %v3034_v31  ;;  %v2842_v55 = vld [vmem:[#allocation10 + $0x18] sm:$0xff]  ;;  %v3402_v31 = vld [vmem:[#allocation12 + $0xc0] sm:$0xff] }
 0x4f9   :  { %5988 = vmatprep.subr.mxu1 %v2853_v32  ;;  %6031 = vmatprep.subr.mxu0 %v3033_v33 }
 0x4fa   :  { %5989 = vmatpush3.msra.mxu1 %v2853_v32  ;;  %6032 = vmatpush3.msra.mxu0 %v3033_v33  ;;  %v3383_v33 = vld [vmem:[#allocation12 + $0x30] sm:$0xff] }
 0x4fb   :  { %5990 = vmatprep.subr.mxu1 %v2852_v34  ;;  %6033 = vmatprep.subr.mxu0 %v3032_v35 }
 0x4fc   :  { %5991 = vmatpush3.msra.mxu1 %v2852_v34  ;;  %6034 = vmatpush3.msra.mxu0 %v3032_v35  ;;  %v3401_v34 = vld [vmem:[#allocation12 + $0xb8] sm:$0xff]  ;;  %v3382_v35 = vld [vmem:[#allocation12 + $0x28] sm:$0xff] }
 0x4fd   :  { %5992 = vmatprep.subr.mxu1 %v2851_v36  ;;  %6035 = vmatprep.subr.mxu0 %v3031_v37 }
 0x4fe   :  { %5993 = vmatpush3.msra.mxu1 %v2851_v36  ;;  %6036 = vmatpush3.msra.mxu0 %v3031_v37  ;;  %v3400_v36 = vld [vmem:[#allocation12 + $0xb0] sm:$0xff] }
 0x4ff   :  { %5994 = vmatprep.subr.mxu1 %v2850_v38  ;;  %6037 = vmatprep.subr.mxu0 %v3030_v39 }
 0x500   :  { %5995 = vmatpush3.msra.mxu1 %v2850_v38  ;;  %6038 = vmatpush3.msra.mxu0 %v3030_v39  ;;  %v3381_v39 = vld [vmem:[#allocation12 + $0x20] sm:$0xff] }
 0x501   :  { %5996 = vmatprep.subr.mxu1 %v2849_v40  ;;  %6039 = vmatprep.subr.mxu0 %v3029_v41 }
 0x502   :  { %5997 = vmatpush3.msra.mxu1 %v2849_v40  ;;  %6040 = vmatpush3.msra.mxu0 %v3029_v41  ;;  %v3399_v40 = vld [vmem:[#allocation12 + $0xa8] sm:$0xff] }
 0x503   :  { %5998 = vmatprep.subr.mxu1 %v2848_v42  ;;  %6041 = vmatprep.subr.mxu0 %v3028_v43 }
 0x504   :  { %5999 = vmatpush3.msra.mxu1 %v2848_v42  ;;  %6042 = vmatpush3.msra.mxu0 %v3028_v43  ;;  %v3380_v43 = vld [vmem:[#allocation12 + $0x18] sm:$0xff] }
 0x505   :  { %6000 = vmatprep.subr.mxu1 %v2847_v44  ;;  %6043 = vmatprep.subr.mxu0 %v3027_v45 }
 0x506   :  { %6001 = vmatpush3.msra.mxu1 %v2847_v44  ;;  %6044 = vmatpush3.msra.mxu0 %v3027_v45  ;;  %v3398_v44 = vld [vmem:[#allocation12 + $0xa0] sm:$0xff] }
 0x507   :  { %6002 = vmatprep.subr.mxu1 %v2846_v46  ;;  %6045 = vmatprep.subr.mxu0 %v3026_v47 }
 0x508   :  { %6003 = vmatpush3.msra.mxu1 %v2846_v46  ;;  %6046 = vmatpush3.msra.mxu0 %v3026_v47  ;;  %v3379_v46 = vld [vmem:[#allocation12 + $0x10] sm:$0xff]  ;;  %v3397_v47 = vld [vmem:[#allocation12 + $0x98] sm:$0xff] }
 0x509   :  { %6004 = vmatprep.subr.mxu1 %v2845_v48  ;;  %6047 = vmatprep.subr.mxu0 %v3025_v49 }
 0x50a   :  { %6005 = vmatpush3.msra.mxu1 %v2845_v48  ;;  %6048 = vmatpush3.msra.mxu0 %v3025_v49  ;;  %v3378_v48 = vld [vmem:[#allocation12 + $0x8] sm:$0xff]  ;;  %v3396_v49 = vld [vmem:[#allocation12 + $0x90] sm:$0xff] }
 0x50b   :  { %6006 = vmatprep.subr.mxu1 %v2844_v50  ;;  %6049 = vmatprep.subr.mxu0 %v3024_v51 }
 0x50c   :  { %6007 = vmatpush3.msra.mxu1 %v2844_v50  ;;  %6050 = vmatpush3.msra.mxu0 %v3024_v51  ;;  %v3377_v50 = vld [vmem:[#allocation12] sm:$0xff]  ;;  %v3395_v51 = vld [vmem:[#allocation12 + $0x88] sm:$0xff] }
 0x50d   :  { %6008 = vmatprep.subr.mxu1 %v2843_v52  ;;  %6051 = vmatprep.subr.mxu0 %v3023_v53 }
 0x50e   :  { %6009 = vmatpush3.msra.mxu1 %v2843_v52  ;;  %6052 = vmatpush3.msra.mxu0 %v3023_v53  ;;  %v3394_v52 = vld [vmem:[#allocation12 + $0x80] sm:$0xff]  ;;  %v3576_v53 = vld [vmem:[#allocation12 + $0x178] sm:$0xff] }
 0x50f   :  { %6010 = vmatprep.subr.mxu1 %v2842_v55  ;;  %6054 = vmatmul.mubr.f32.vlgmr.msra.gmra.mxu0 %v7169_v22  ;;  %v3388_v22 = vld [vmem:[#allocation12 + $0x58] sm:$0xff] }
 0x510   :  { %6011 = vmatpush3.msra.mxu1 %v2842_v55  ;;  %6074 = vmatprep.mubr.msk.f32.mxu0 %vm3127_vm2, %v7180_v60 }
 0x511   :  { %6012 = vmatprep.subr.mxu1 %v2841_v56 }
 0x512   :  { %6013 = vmatpush3.msra.mxu1 %v2841_v56 }
 0x513   :  { %6014 = vmatprep.subr.mxu1 %v2840_v57 }
 0x514   :  { %6015 = vmatpush3.msra.mxu1 %v2840_v57 }
 0x515   :  { %6016 = vmatprep.subr.mxu1 %v2839_v58 }
 0x516   :  { %6017 = vmatpush3.msra.mxu1 %v2839_v58 }
 0x517   :  { %6019 = vmatmul.mubr.f32.vlgmr.msra.gmra.mxu1 %v7160_v54  ;;  %v4834_v54 = vld [vmem:[%s7285_s10] ss:$0 sm:$0xff] }
 0x518   :  { %6060 = vmatprep.mubr.msk.f32.mxu1 %vm3127_vm2, %v7176_v59 }
 0x58c   :  { %v5915_v62 = vpop.f32.mrf.mxu0 }
 0x58e   :  { %v2725_v1 = vpop.f32.mrf.mxu0 }
 0x595   :  { %v5880_v61 = vpop.f32.mrf.mxu1 }
 0x596   :  { %v2731_v0 = vadd.f32 %v5915_v62, %v5880_v61 }
 0x597   :  { %v2650_v63 = vpop.f32.mrf.mxu1 }
 0x598   :  { %v2726_v3 = vadd.f32 %v2725_v1, %v2650_v63  ;;  %v3575_v1 = vld [vmem:[#allocation12 + $0x170] sm:$0xff] }
 0x5ac   :  { %v5985_v32 = vpop.f32.mrf.mxu0 }
 0x5ae   :  { %v7203_v37 = vpop.f32.mrf.mxu0 }
 0x5b6   :  { %v5950_v2 = vpop.f32.mrf.mxu1 }
 0x5b7   :  { %v2827_v4 = vadd.f32 %v5950_v2, %v2731_v0  ;;  %v3574_v2 = vld [vmem:[#allocation12 + $0x168] sm:$0xff] }
 0x5b8   :  { %v2817_v5 = vpop.f32.mrf.mxu1 }
 0x5b9   :  { %v2836_v6 = vadd.f32 %v4834_v54, %v2827_v4  ;;  %v2826_v7 = vadd.f32 %v2817_v5, %v2726_v3  ;;  %v3572_v3 = vld [vmem:[#allocation12 + $0x158] sm:$0xff]  ;;  %v3571_v4 = vld [vmem:[#allocation12 + $0x150] sm:$0xff]  ;;  %v3570_v5 = vld [vmem:[#allocation12 + $0x148] sm:$0xff] }
 0x5bb   :  { %v2838_v8 = vmax.f32 %v2836_v6, 0.0  ;;  %v2835_v9 = vadd.f32 %v4834_v54, %v2826_v7  ;;  %v3573_v54 = vld [vmem:[#allocation12 + $0x160] sm:$0xff]  ;;  %v3568_v7 = vld [vmem:[#allocation12 + $0x138] sm:$0xff] }
 0x5bc   :  { %v3569_v6 = vld [vmem:[#allocation12 + $0x140] sm:$0xff] }
 0x5bd   :  { %v2837_v10 = vmax.f32 %v2835_v9, 0.0  ;;  %6056 = vmatprep.subr.mxu1 %v2838_v8  ;;  %6070 = vmatprep.subr.mxu0 %v2838_v8  ;;  %v3566_v9 = vld [vmem:[#allocation12 + $0x128] sm:$0xff] }
 0x5be   :  { %6057 = vmatpush3.msra.mxu1 %v2838_v8  ;;  %6071 = vmatpush3.msra.mxu0 %v2838_v8 }
 0x5bf   :  { %6058 = vmatprep.subr.mxu1 %v2837_v10  ;;  %6072 = vmatprep.subr.mxu0 %v2837_v10 }
 0x5c0   :  { %6059 = vmatpush3.msra.mxu1 %v2837_v10  ;;  %6073 = vmatpush3.msra.mxu0 %v2837_v10 }
 0x5c1   :  { %6061 = vmatmul.mubr.msk.f32.vlgmr.msra.gmra.mxu1 %vm3127_vm2, %v7187_v11  ;;  %6063 = vmatprep.subr.mxu1 %v2838_v8 }
 0x5c2   :  { %6064 = vmatpush3.msra.mxu1 %v2838_v8  ;;  %6067 = vmatprep.mubr.msk.f32.mxu1 %vm3127_vm2, %v7189_v12  ;;  %v3567_v8 = vld [vmem:[#allocation12 + $0x130] sm:$0xff] }
 0x5c3   :  { %6065 = vmatprep.subr.mxu1 %v2837_v10  ;;  %6075 = vmatmul.mubr.msk.f32.vlgmr.msra.gmra.mxu0 %vm3127_vm2, %v7191_v13 }
 0x5c4   :  { %6066 = vmatpush3.msra.mxu1 %v2837_v10  ;;  %6112 = vmatprep.subr.mxu0 %v3392_v14  ;;  %v3565_v10 = vld [vmem:[#allocation12 + $0x120] sm:$0xff] }
 0x5c5   :  { %6068 = vmatmul.mubr.msk.f32.vlgmr.msra.gmra.mxu1 %vm3127_vm2, %v7197_v15  ;;  %6113 = vmatpush3.msra.mxu0 %v3392_v14  ;;  %v3564_v14 = vld [vmem:[#allocation12 + $0x118] sm:$0xff] }
 0x5c6   :  { %6114 = vmatprep.subr.mxu0 %v3391_v16  ;;  %6077 = vmatprep.subr.mxu1 %v3409_v17 }
 0x5c7   :  { %6115 = vmatpush3.msra.mxu0 %v3391_v16  ;;  %6078 = vmatpush3.msra.mxu1 %v3409_v17  ;;  %v3563_v16 = vld [vmem:[#allocation12 + $0x110] sm:$0xff]  ;;  %v3562_v17 = vld [vmem:[#allocation12 + $0x108] sm:$0xff] }
 0x5c8   :  { %6116 = vmatprep.subr.mxu0 %v3390_v18  ;;  %6079 = vmatprep.subr.mxu1 %v3408_v19 }
 0x5c9   :  { %6117 = vmatpush3.msra.mxu0 %v3390_v18  ;;  %6080 = vmatpush3.msra.mxu1 %v3408_v19  ;;  %v3561_v18 = vld [vmem:[#allocation12 + $0x100] sm:$0xff]  ;;  %v3905_v19 = vld [vmem:[#allocation13 + $0x78] sm:$0xff] }
 0x5ca   :  { %6118 = vmatprep.subr.mxu0 %v3389_v20  ;;  %6081 = vmatprep.subr.mxu1 %v3407_v21 }
 0x5cb   :  { %6119 = vmatpush3.msra.mxu0 %v3389_v20  ;;  %6082 = vmatpush3.msra.mxu1 %v3407_v21  ;;  %v3904_v20 = vld [vmem:[#allocation13 + $0x70] sm:$0xff]  ;;  %v3903_v21 = vld [vmem:[#allocation13 + $0x68] sm:$0xff] }
 0x5cc   :  { %6120 = vmatprep.subr.mxu0 %v3388_v22  ;;  %6083 = vmatprep.subr.mxu1 %v3406_v23 }
 0x5cd   :  { %6121 = vmatpush3.msra.mxu0 %v3388_v22  ;;  %6084 = vmatpush3.msra.mxu1 %v3406_v23  ;;  %v3902_v22 = vld [vmem:[#allocation13 + $0x60] sm:$0xff]  ;;  %v3901_v23 = vld [vmem:[#allocation13 + $0x58] sm:$0xff] }
 0x5ce   :  { %6122 = vmatprep.subr.mxu0 %v3387_v24  ;;  %6085 = vmatprep.subr.mxu1 %v3405_v25 }
 0x5cf   :  { %6123 = vmatpush3.msra.mxu0 %v3387_v24  ;;  %6086 = vmatpush3.msra.mxu1 %v3405_v25  ;;  %v6055_v42 = vpop.f32.mrf.mxu0  ;;  %v3900_v24 = vld [vmem:[#allocation13 + $0x50] sm:$0xff]  ;;  %v3899_v25 = vld [vmem:[#allocation13 + $0x48] sm:$0xff] }
 0x5d0   :  { %6124 = vmatprep.subr.mxu0 %v3386_v26  ;;  %6087 = vmatprep.subr.mxu1 %v3404_v27 }
 0x5d1   :  { %6125 = vmatpush3.msra.mxu0 %v3386_v26  ;;  %6088 = vmatpush3.msra.mxu1 %v3404_v27  ;;  %v7209_v56 = vpop.f32.mrf.mxu0  ;;  %v3898_v26 = vld [vmem:[#allocation13 + $0x40] sm:$0xff]  ;;  %v3897_v27 = vld [vmem:[#allocation13 + $0x38] sm:$0xff] }
 0x5d2   :  { %6126 = vmatprep.subr.mxu0 %v3385_v28  ;;  %6089 = vmatprep.subr.mxu1 %v3403_v29 }
 0x5d3   :  { %6127 = vmatpush3.msra.mxu0 %v3385_v28  ;;  %6090 = vmatpush3.msra.mxu1 %v3403_v29  ;;  %v3896_v28 = vld [vmem:[#allocation13 + $0x30] sm:$0xff]  ;;  %v3895_v29 = vld [vmem:[#allocation13 + $0x28] sm:$0xff] }
 0x5d4   :  { %6128 = vmatprep.subr.mxu0 %v3384_v30  ;;  %6091 = vmatprep.subr.mxu1 %v3402_v31 }
 0x5d5   :  { %6129 = vmatpush3.msra.mxu0 %v3384_v30  ;;  %6092 = vmatpush3.msra.mxu1 %v3402_v31  ;;  %v3894_v30 = vld [vmem:[#allocation13 + $0x20] sm:$0xff]  ;;  %v3893_v31 = vld [vmem:[#allocation13 + $0x18] sm:$0xff] }
 0x5d6   :  { %6130 = vmatprep.subr.mxu0 %v3383_v33  ;;  %6093 = vmatprep.subr.mxu1 %v3401_v34 }
 0x5d7   :  { %v6020_v38 = vpop.f32.mrf.mxu1  ;;  %6131 = vmatpush3.msra.mxu0 %v3383_v33  ;;  %6094 = vmatpush3.msra.mxu1 %v3401_v34 }
 0x5d8   :  { %v3019_v41 = vadd.f32 %v6020_v38, %v5985_v32  ;;  %6132 = vmatprep.subr.mxu0 %v3382_v35  ;;  %6095 = vmatprep.subr.mxu1 %v3400_v36  ;;  %v3892_v32 = vld [vmem:[#allocation13 + $0x10] sm:$0xff] }
 0x5d9   :  { %6133 = vmatpush3.msra.mxu0 %v3382_v35  ;;  %6096 = vmatpush3.msra.mxu1 %v3400_v36  ;;  %v7207_v55 = vpop.f32.mrf.mxu1 }
 0x5da   :  { %v7205_v45 = vadd.f32 %v6055_v42, %v3019_v41  ;;  %6134 = vmatprep.subr.mxu0 %v3381_v39  ;;  %6097 = vmatprep.subr.mxu1 %v3399_v40  ;;  %v3014_v35 = vadd.f32 %v7207_v55, %v7203_v37  ;;  %v4842_v42 = vld [vmem:[%s7289_s14] ss:$0 sm:$0xff]  ;;  %v3921_v55 = vld [vmem:[#allocation13 + $0xf0] sm:$0xff] }
 0x5db   :  { %6135 = vmatpush3.msra.mxu0 %v3381_v39  ;;  %6098 = vmatpush3.msra.mxu1 %v3399_v40  ;;  %v4835_v39 = vld [vmem:[%s7287_s12] ss:$0 sm:$0xff] }
 0x5dc   :  { %6136 = vmatprep.subr.mxu0 %v3380_v43  ;;  %6099 = vmatprep.subr.mxu1 %v3398_v44 }
 0x5dd   :  { %6137 = vmatpush3.msra.mxu0 %v3380_v43  ;;  %6100 = vmatpush3.msra.mxu1 %v3398_v44  ;;  %v3114_v43 = vadd.f32 %v7209_v56, %v3014_v35  ;;  %v3920_v56 = vld [vmem:[#allocation13 + $0xe8] sm:$0xff]  ;;  %v4417_v35 = vld [vmem:[#allocation15 + $0x70] sm:$0xff] }
 0x5de   :  { %6138 = vmatprep.subr.mxu0 %v3379_v46  ;;  %6101 = vmatprep.subr.mxu1 %v3397_v47 }
 0x5df   :  { %6139 = vmatpush3.msra.mxu0 %v3379_v46  ;;  %6102 = vmatpush3.msra.mxu1 %v3397_v47 }
 0x5e0   :  { %6140 = vmatprep.subr.mxu0 %v3378_v48  ;;  %6103 = vmatprep.subr.mxu1 %v3396_v49 }
 0x5e1   :  { %6141 = vmatpush3.msra.mxu0 %v3378_v48  ;;  %6104 = vmatpush3.msra.mxu1 %v3396_v49  ;;  %v3124_v48 = vadd.f32 %v4835_v39, %v7205_v45  ;;  %v3922_v45 = vld [vmem:[#allocation13 + $0xf8] sm:$0xff] }
 0x5e2   :  { %6142 = vmatprep.subr.mxu0 %v3377_v50  ;;  %6105 = vmatprep.subr.mxu1 %v3395_v51 }
 0x5e3   :  { %6143 = vmatpush3.msra.mxu0 %v3377_v50  ;;  %6106 = vmatpush3.msra.mxu1 %v3395_v51  ;;  %v3123_v50 = vadd.f32 %v4835_v39, %v3114_v43  ;;  %v4414_v39 = vld [vmem:[#allocation15 + $0x58] sm:$0xff] }
 0x5e4   :  { %6107 = vmatprep.subr.mxu1 %v3394_v52  ;;  %v4410_v43 = vld [vmem:[#allocation15 + $0x38] sm:$0xff] }
 0x5e5   :  { %6108 = vmatpush3.msra.mxu1 %v3394_v52 }
 0x5e6   :  { %6147 = vmatprep.subr.mxu1 %v3576_v53 }
 0x681   :  { %v6062_v57 = vpop.f32.mrf.mxu1 }
 0x683   :  { %v3200_v58 = vpop.f32.mrf.mxu1  ;;  %v6076_v61 = vpop.f32.mrf.mxu0 }
 0x684   :  { %6144 = vmatprep.mubr.f32.mxu0 %v3200_v58  ;;  %v3918_v58 = vld [vmem:[#allocation13 + $0xd8] sm:$0xff] }
 0x685   :  { %v6069_v62 = vpop.f32.mrf.mxu1  ;;  %6145 = vmatmul.mubr.f32.vlgmr.msra.gmra.mxu0 %v6062_v57  ;;  %v3368_v0 = vpop.f32.mrf.mxu0  ;;  %v3919_v57 = vld [vmem:[#allocation13 + $0xe0] sm:$0xff] }
 0x686   :  { %6186 = vmatprep.mubr.msk.f32.mxu0 %vm3127_vm2, %v7176_v59 }
 0x687   :  { %v3284_v63 = vpop.f32.mrf.mxu1 }
 0x688   :  { %6109 = vmatprep.mubr.f32.mxu1 %v3284_v63  ;;  %v3915_v63 = vld [vmem:[#allocation13 + $0xc0] sm:$0xff] }
 0x689   :  { %6110 = vmatmul.mubr.f32.vlgmr.msra.gmra.mxu1 %v6069_v62  ;;  %v3916_v62 = vld [vmem:[#allocation13 + $0xc8] sm:$0xff] }
 0x68a   :  { %6148 = vmatpush3.msra.mxu1 %v3576_v53  ;;  %6179 = vmatprep.mubr.f32.mxu1 %v3368_v0  ;;  %v3914_v0 = vld [vmem:[#allocation13 + $0xb8] sm:$0xff] }
 0x68b   :  { %6149 = vmatprep.subr.mxu1 %v3575_v1 }
 0x68c   :  { %6150 = vmatpush3.msra.mxu1 %v3575_v1  ;;  %v3913_v1 = vld [vmem:[#allocation13 + $0xb0] sm:$0xff] }
 0x68d   :  { %6151 = vmatprep.subr.mxu1 %v3574_v2 }
 0x68e   :  { %6152 = vmatpush3.msra.mxu1 %v3574_v2  ;;  %v3912_v2 = vld [vmem:[#allocation13 + $0xa8] sm:$0xff] }
 0x68f   :  { %6153 = vmatprep.subr.mxu1 %v3573_v54 }
 0x690   :  { %6154 = vmatpush3.msra.mxu1 %v3573_v54  ;;  %v3911_v54 = vld [vmem:[#allocation13 + $0xa0] sm:$0xff] }
 0x691   :  { %6155 = vmatprep.subr.mxu1 %v3572_v3 }
 0x692   :  { %6156 = vmatpush3.msra.mxu1 %v3572_v3  ;;  %v3910_v3 = vld [vmem:[#allocation13 + $0x98] sm:$0xff] }
 0x693   :  { %6157 = vmatprep.subr.mxu1 %v3571_v4 }
 0x694   :  { %6158 = vmatpush3.msra.mxu1 %v3571_v4  ;;  %v3891_v4 = vld [vmem:[#allocation13 + $0x8] sm:$0xff] }
 0x695   :  { %6159 = vmatprep.subr.mxu1 %v3570_v5 }
 0x696   :  { %6160 = vmatpush3.msra.mxu1 %v3570_v5  ;;  %v3909_v5 = vld [vmem:[#allocation13 + $0x90] sm:$0xff] }
 0x697   :  { %6161 = vmatprep.subr.mxu1 %v3569_v6 }
 0x698   :  { %6162 = vmatpush3.msra.mxu1 %v3569_v6  ;;  %v3890_v6 = vld [vmem:[#allocation13] sm:$0xff] }
 0x699   :  { %6163 = vmatprep.subr.mxu1 %v3568_v7 }
 0x69a   :  { %6164 = vmatpush3.msra.mxu1 %v3568_v7  ;;  %v3908_v7 = vld [vmem:[#allocation13 + $0x88] sm:$0xff] }
 0x69b   :  { %6165 = vmatprep.subr.mxu1 %v3567_v8 }
 0x69c   :  { %6166 = vmatpush3.msra.mxu1 %v3567_v8  ;;  %v3907_v8 = vld [vmem:[#allocation13 + $0x80] sm:$0xff] }
 0x69d   :  { %6167 = vmatprep.subr.mxu1 %v3566_v9 }
 0x69e   :  { %6168 = vmatpush3.msra.mxu1 %v3566_v9  ;;  %v4089_v9 = vld [vmem:[#allocation13 + $0x178] sm:$0xff] }
 0x69f   :  { %6169 = vmatprep.subr.mxu1 %v3565_v10 }
 0x6a0   :  { %6170 = vmatpush3.msra.mxu1 %v3565_v10 }
 0x6a1   :  { %6171 = vmatprep.subr.mxu1 %v3564_v14 }
 0x6a2   :  { %6172 = vmatpush3.msra.mxu1 %v3564_v14 }
 0x6a3   :  { %6173 = vmatprep.subr.mxu1 %v3563_v16 }
 0x6a4   :  { %6174 = vmatpush3.msra.mxu1 %v3563_v16 }
 0x6a5   :  { %6175 = vmatprep.subr.mxu1 %v3562_v17 }
 0x6a6   :  { %6176 = vmatpush3.msra.mxu1 %v3562_v17 }
 0x6a7   :  { %6177 = vmatprep.subr.mxu1 %v3561_v18 }
 0x6a8   :  { %6178 = vmatpush3.msra.mxu1 %v3561_v18  ;;  %v4088_v18 = vld [vmem:[#allocation13 + $0x170] sm:$0xff] }
 0x6a9   :  { %6180 = vmatmul.mubr.f32.vlgmr.msra.gmra.mxu1 %v6076_v61  ;;  %6238 = vmatprep.subr.mxu1 %v3905_v19  ;;  %v3917_v61 = vld [vmem:[#allocation13 + $0xd0] sm:$0xff] }
 0x6aa   :  { %6239 = vmatpush3.msra.mxu1 %v3905_v19 }
 0x6ab   :  { %6240 = vmatprep.subr.mxu1 %v3904_v20 }
 0x6ac   :  { %6241 = vmatpush3.msra.mxu1 %v3904_v20  ;;  %v4087_v20 = vld [vmem:[#allocation13 + $0x168] sm:$0xff] }
 0x6ad   :  { %6242 = vmatprep.subr.mxu1 %v3903_v21 }
 0x6ae   :  { %6243 = vmatpush3.msra.mxu1 %v3903_v21 }
 0x6af   :  { %6244 = vmatprep.subr.mxu1 %v3902_v22 }
 0x6b0   :  { %6245 = vmatpush3.msra.mxu1 %v3902_v22  ;;  %v4086_v22 = vld [vmem:[#allocation13 + $0x160] sm:$0xff] }
 0x6b1   :  { %6246 = vmatprep.subr.mxu1 %v3901_v23 }
 0x6b2   :  { %6247 = vmatpush3.msra.mxu1 %v3901_v23  ;;  %v4085_v23 = vld [vmem:[#allocation13 + $0x158] sm:$0xff] }
 0x6b3   :  { %6248 = vmatprep.subr.mxu1 %v3900_v24 }
 0x6b4   :  { %6249 = vmatpush3.msra.mxu1 %v3900_v24  ;;  %v4084_v24 = vld [vmem:[#allocation13 + $0x150] sm:$0xff] }
 0x6b5   :  { %6250 = vmatprep.subr.mxu1 %v3899_v25 }
 0x6b6   :  { %6251 = vmatpush3.msra.mxu1 %v3899_v25  ;;  %v4082_v25 = vld [vmem:[#allocation13 + $0x140] sm:$0xff] }
 0x6b7   :  { %6252 = vmatprep.subr.mxu1 %v3898_v26 }
 0x6b8   :  { %6253 = vmatpush3.msra.mxu1 %v3898_v26  ;;  %v4081_v26 = vld [vmem:[#allocation13 + $0x138] sm:$0xff] }
 0x6b9   :  { %6254 = vmatprep.subr.mxu1 %v3897_v27 }
 0x6ba   :  { %6255 = vmatpush3.msra.mxu1 %v3897_v27  ;;  %v4080_v27 = vld [vmem:[#allocation13 + $0x130] sm:$0xff] }
 0x6bb   :  { %6256 = vmatprep.subr.mxu1 %v3896_v28 }
 0x6bc   :  { %6257 = vmatpush3.msra.mxu1 %v3896_v28  ;;  %v4079_v28 = vld [vmem:[#allocation13 + $0x128] sm:$0xff] }
 0x6bd   :  { %6258 = vmatprep.subr.mxu1 %v3895_v29 }
 0x6be   :  { %6259 = vmatpush3.msra.mxu1 %v3895_v29  ;;  %v4078_v29 = vld [vmem:[#allocation13 + $0x120] sm:$0xff] }
 0x6bf   :  { %6260 = vmatprep.subr.mxu1 %v3894_v30 }
 0x6c0   :  { %6261 = vmatpush3.msra.mxu1 %v3894_v30  ;;  %v4077_v30 = vld [vmem:[#allocation13 + $0x118] sm:$0xff] }
 0x6c1   :  { %6262 = vmatprep.subr.mxu1 %v3893_v31 }
 0x6c2   :  { %6263 = vmatpush3.msra.mxu1 %v3893_v31  ;;  %v4076_v31 = vld [vmem:[#allocation13 + $0x110] sm:$0xff] }
 0x6c3   :  { %6264 = vmatprep.subr.mxu1 %v3892_v32 }
 0x6c4   :  { %6265 = vmatpush3.msra.mxu1 %v3892_v32  ;;  %v4075_v32 = vld [vmem:[#allocation13 + $0x108] sm:$0xff] }
 0x6c5   :  { %6266 = vmatprep.subr.mxu1 %v3891_v4 }
 0x6c6   :  { %6267 = vmatpush3.msra.mxu1 %v3891_v4  ;;  %v4434_v4 = vld [vmem:[#allocation15 + $0xf0] sm:$0xff] }
 0x6c7   :  { %6268 = vmatprep.subr.mxu1 %v3890_v6 }
 0x6c8   :  { %6269 = vmatpush3.msra.mxu1 %v3890_v6  ;;  %v4428_v6 = vld [vmem:[#allocation15 + $0xc0] sm:$0xff] }
 0x745   :  { %v6146_v34 = vpop.f32.mrf.mxu0 }
 0x747   :  { %v3551_v40 = vpop.f32.mrf.mxu0 }
 0x749   :  { %v6111_v33 = vpop.f32.mrf.mxu1 }
 0x74a   :  { %v3557_v38 = vadd.f32 %v6146_v34, %v6111_v33  ;;  %v4074_v33 = vld [vmem:[#allocation13 + $0x100] sm:$0xff]  ;;  %v4418_v34 = vld [vmem:[#allocation15 + $0x78] sm:$0xff] }
 0x74b   :  { %v3476_v36 = vpop.f32.mrf.mxu1 }
 0x74c   :  { %v3552_v44 = vadd.f32 %v3551_v40, %v3476_v36  ;;  %v4416_v36 = vld [vmem:[#allocation15 + $0x68] sm:$0xff]  ;;  %v4413_v40 = vld [vmem:[#allocation15 + $0x50] sm:$0xff] }
 0x769   :  { %v6181_v41 = vpop.f32.mrf.mxu1 }
 0x76a   :  { %v3653_v46 = vadd.f32 %v6181_v41, %v3557_v38  ;;  %v4415_v38 = vld [vmem:[#allocation15 + $0x60] sm:$0xff]  ;;  %v4412_v41 = vld [vmem:[#allocation15 + $0x48] sm:$0xff] }
 0x76b   :  { %v3643_v47 = vpop.f32.mrf.mxu1 }
 0x76c   :  { %v3662_v37 = vadd.f32 %v4842_v42, %v3653_v46  ;;  %v3652_v49 = vadd.f32 %v3643_v47, %v3552_v44  ;;  %v4409_v44 = vld [vmem:[#allocation15 + $0x30] sm:$0xff]  ;;  %v4408_v46 = vld [vmem:[#allocation15 + $0x28] sm:$0xff]  ;;  %v4407_v47 = vld [vmem:[#allocation15 + $0x20] sm:$0xff] }
 0x76e   :  { %v7223_v51 = vadd.f32 %v3662_v37, %v3124_v48  ;;  %v3661_v52 = vadd.f32 %v4842_v42, %v3652_v49  ;;  %v4411_v42 = vld [vmem:[#allocation15 + $0x40] sm:$0xff]  ;;  %v4406_v48 = vld [vmem:[#allocation15 + $0x18] sm:$0xff]  ;;  %v4405_v37 = vld [vmem:[#allocation15 + $0x10] sm:$0xff] }
 0x770   :  { %v7225_v53 = vadd.f32 %v3661_v52, %v3123_v50  ;;  %6182 = vmatprep.subr.mxu0 %v7223_v51 }
 0x771   :  { %6183 = vmatpush3.msra.mxu0 %v7223_v51 }
 0x772   :  { %6184 = vmatprep.subr.mxu0 %v7225_v53 }
 0x773   :  { %6185 = vmatpush3.msra.mxu0 %v7225_v53 }
 0x774   :  { %6187 = vmatmul.mubr.msk.f32.vlgmr.msra.gmra.mxu0 %vm3127_vm2, %v7187_v11  ;;  %6189 = vmatprep.subr.mxu0 %v7223_v51 }
 0x775   :  { %6190 = vmatpush3.msra.mxu0 %v7223_v51  ;;  %6193 = vmatprep.mubr.msk.f32.mxu0 %vm3127_vm2, %v7189_v12 }
 0x776   :  { %6191 = vmatprep.subr.mxu0 %v7225_v53 }
 0x777   :  { %6192 = vmatpush3.msra.mxu0 %v7225_v53 }
 0x778   :  { %6194 = vmatmul.mubr.msk.f32.vlgmr.msra.gmra.mxu0 %vm3127_vm2, %v7197_v15  ;;  %6196 = vmatprep.subr.mxu0 %v7223_v51 }
 0x779   :  { %6197 = vmatpush3.msra.mxu0 %v7223_v51  ;;  %6200 = vmatprep.mubr.msk.f32.mxu0 %vm3127_vm2, %v7180_v60 }
 0x77a   :  { %6198 = vmatprep.subr.mxu0 %v7225_v53 }
 0x77b   :  { %6199 = vmatpush3.msra.mxu0 %v7225_v53 }
 0x77c   :  { %6201 = vmatmul.mubr.msk.f32.vlgmr.msra.gmra.mxu0 %vm3127_vm2, %v7191_v13  ;;  %6203 = vmatprep.subr.mxu0 %v3922_v45 }
 0x77d   :  { %6204 = vmatpush3.msra.mxu0 %v3922_v45 }
 0x77e   :  { %6205 = vmatprep.subr.mxu0 %v3921_v55 }
 0x77f   :  { %6206 = vmatpush3.msra.mxu0 %v3921_v55 }
 0x780   :  { %6207 = vmatprep.subr.mxu0 %v3920_v56 }
 0x781   :  { %6208 = vmatpush3.msra.mxu0 %v3920_v56 }
 0x782   :  { %6209 = vmatprep.subr.mxu0 %v3919_v57 }
 0x783   :  { %6210 = vmatpush3.msra.mxu0 %v3919_v57  ;;  %v4849_v57 = vld [vmem:[%s7291_s16] ss:$0 sm:$0xff] }
 0x784   :  { %6211 = vmatprep.subr.mxu0 %v3918_v58 }
 0x785   :  { %6212 = vmatpush3.msra.mxu0 %v3918_v58 }
 0x786   :  { %6213 = vmatprep.subr.mxu0 %v3917_v61 }
 0x787   :  { %6214 = vmatpush3.msra.mxu0 %v3917_v61 }
 0x788   :  { %6215 = vmatprep.subr.mxu0 %v3916_v62 }
 0x789   :  { %6216 = vmatpush3.msra.mxu0 %v3916_v62 }
 0x78a   :  { %6217 = vmatprep.subr.mxu0 %v3915_v63 }
 0x78b   :  { %6218 = vmatpush3.msra.mxu0 %v3915_v63 }
 0x78c   :  { %6219 = vmatprep.subr.mxu0 %v3914_v0 }
 0x78d   :  { %6220 = vmatpush3.msra.mxu0 %v3914_v0 }
 0x78e   :  { %6221 = vmatprep.subr.mxu0 %v3913_v1 }
 0x78f   :  { %6222 = vmatpush3.msra.mxu0 %v3913_v1 }
 0x790   :  { %6223 = vmatprep.subr.mxu0 %v3912_v2 }
 0x791   :  { %6224 = vmatpush3.msra.mxu0 %v3912_v2 }
 0x792   :  { %6225 = vmatprep.subr.mxu0 %v3911_v54 }
 0x793   :  { %6226 = vmatpush3.msra.mxu0 %v3911_v54 }
 0x794   :  { %6227 = vmatprep.subr.mxu0 %v3910_v3 }
 0x795   :  { %6228 = vmatpush3.msra.mxu0 %v3910_v3  ;;  %v4435_v3 = vld [vmem:[#allocation15 + $0xf8] sm:$0xff] }
 0x796   :  { %6229 = vmatprep.subr.mxu0 %v3909_v5 }
 0x797   :  { %6230 = vmatpush3.msra.mxu0 %v3909_v5  ;;  %v4430_v5 = vld [vmem:[#allocation15 + $0xd0] sm:$0xff] }
 0x798   :  { %6231 = vmatprep.subr.mxu0 %v3908_v7 }
 0x799   :  { %6232 = vmatpush3.msra.mxu0 %v3908_v7  ;;  %v4426_v7 = vld [vmem:[#allocation15 + $0xb0] sm:$0xff] }
 0x79a   :  { %6233 = vmatprep.subr.mxu0 %v3907_v8 }
 0x79b   :  { %6234 = vmatpush3.msra.mxu0 %v3907_v8  ;;  %v4425_v8 = vld [vmem:[#allocation15 + $0xa8] sm:$0xff] }
 0x79c   :  { %6273 = vmatprep.subr.mxu0 %v4089_v9 }
 0x834   :  { %v6188_v10 = vpop.f32.mrf.mxu0 }
 0x836   :  { %v3731_v14 = vpop.f32.mrf.mxu0 }
 0x837   :  { %6270 = vmatprep.mubr.f32.mxu1 %v3731_v14  ;;  %v4404_v14 = vld [vmem:[#allocation15 + $0x8] sm:$0xff] }
 0x838   :  { %v6195_v16 = vpop.f32.mrf.mxu0  ;;  %6271 = vmatmul.mubr.f32.vlgmr.msra.gmra.mxu1 %v6188_v10  ;;  %v4423_v10 = vld [vmem:[#allocation15 + $0x98] sm:$0xff] }
 0x839   :  { %6312 = vmatprep.mubr.msk.f32.mxu1 %vm3127_vm2, %v7176_v59  ;;  %v4083_v59 = vld [vmem:[#allocation13 + $0x148] sm:$0xff] }
 0x83a   :  { %v3806_v17 = vpop.f32.mrf.mxu0 }
 0x83b   :  { %6235 = vmatprep.mubr.f32.mxu0 %v3806_v17  ;;  %v4403_v17 = vld [vmem:[#allocation15] sm:$0xff] }
 0x83c   :  { %6236 = vmatmul.mubr.f32.vlgmr.msra.gmra.mxu0 %v6195_v16  ;;  %v6202_v19 = vpop.f32.mrf.mxu0  ;;  %v4422_v16 = vld [vmem:[#allocation15 + $0x90] sm:$0xff] }
 0x83d   :  { %6274 = vmatpush3.msra.mxu0 %v4089_v9  ;;  %v4424_v9 = vld [vmem:[#allocation15 + $0xa0] sm:$0xff] }
 0x83e   :  { %6275 = vmatprep.subr.mxu0 %v4088_v18  ;;  %v3881_v21 = vpop.f32.mrf.mxu0 }
 0x83f   :  { %6276 = vmatpush3.msra.mxu0 %v4088_v18  ;;  %6305 = vmatprep.mubr.f32.mxu0 %v3881_v21  ;;  %v4421_v18 = vld [vmem:[#allocation15 + $0x88] sm:$0xff] }
 0x840   :  { %6277 = vmatprep.subr.mxu0 %v4087_v20 }
 0x841   :  { %6278 = vmatpush3.msra.mxu0 %v4087_v20  ;;  %v4602_v20 = vld [vmem:[#allocation15 + $0x178] sm:$0xff] }
 0x842   :  { %6279 = vmatprep.subr.mxu0 %v4086_v22 }
 0x843   :  { %6280 = vmatpush3.msra.mxu0 %v4086_v22 }
 0x844   :  { %6281 = vmatprep.subr.mxu0 %v4085_v23 }
 0x845   :  { %6282 = vmatpush3.msra.mxu0 %v4085_v23 }
 0x846   :  { %6283 = vmatprep.subr.mxu0 %v4084_v24 }
 0x847   :  { %6284 = vmatpush3.msra.mxu0 %v4084_v24 }
 0x848   :  { %6285 = vmatprep.subr.mxu0 %v4083_v59 }
 0x849   :  { %6286 = vmatpush3.msra.mxu0 %v4083_v59  ;;  %v4601_v59 = vld [vmem:[#allocation15 + $0x170] sm:$0xff] }
 0x84a   :  { %6287 = vmatprep.subr.mxu0 %v4082_v25 }
 0x84b   :  { %6288 = vmatpush3.msra.mxu0 %v4082_v25 }
 0x84c   :  { %6289 = vmatprep.subr.mxu0 %v4081_v26 }
 0x84d   :  { %6290 = vmatpush3.msra.mxu0 %v4081_v26  ;;  %v4600_v26 = vld [vmem:[#allocation15 + $0x168] sm:$0xff] }
 0x84e   :  { %6291 = vmatprep.subr.mxu0 %v4080_v27 }
 0x84f   :  { %6292 = vmatpush3.msra.mxu0 %v4080_v27 }
 0x850   :  { %6293 = vmatprep.subr.mxu0 %v4079_v28 }
 0x851   :  { %6294 = vmatpush3.msra.mxu0 %v4079_v28  ;;  %v4599_v28 = vld [vmem:[#allocation15 + $0x160] sm:$0xff] }
 0x852   :  { %6295 = vmatprep.subr.mxu0 %v4078_v29 }
 0x853   :  { %6296 = vmatpush3.msra.mxu0 %v4078_v29  ;;  %v4598_v29 = vld [vmem:[#allocation15 + $0x158] sm:$0xff] }
 0x854   :  { %6297 = vmatprep.subr.mxu0 %v4077_v30 }
 0x855   :  { %6298 = vmatpush3.msra.mxu0 %v4077_v30  ;;  %v4597_v30 = vld [vmem:[#allocation15 + $0x150] sm:$0xff] }
 0x856   :  { %6299 = vmatprep.subr.mxu0 %v4076_v31 }
 0x857   :  { %6300 = vmatpush3.msra.mxu0 %v4076_v31  ;;  %v4596_v31 = vld [vmem:[#allocation15 + $0x148] sm:$0xff] }
 0x858   :  { %6301 = vmatprep.subr.mxu0 %v4075_v32 }
 0x859   :  { %6302 = vmatpush3.msra.mxu0 %v4075_v32  ;;  %v4595_v32 = vld [vmem:[#allocation15 + $0x140] sm:$0xff] }
 0x85a   :  { %6303 = vmatprep.subr.mxu0 %v4074_v33 }
 0x85b   :  { %6304 = vmatpush3.msra.mxu0 %v4074_v33  ;;  %v4594_v33 = vld [vmem:[#allocation15 + $0x138] sm:$0xff] }
 0x85c   :  { %6306 = vmatmul.mubr.f32.vlgmr.msra.gmra.mxu0 %v6202_v19  ;;  %6364 = vmatprep.subr.mxu0 %v4418_v34  ;;  %v4420_v19 = vld [vmem:[#allocation15 + $0x80] sm:$0xff] }
 0x85d   :  { %6365 = vmatpush3.msra.mxu0 %v4418_v34  ;;  %v4593_v34 = vld [vmem:[#allocation15 + $0x130] sm:$0xff] }
 0x85e   :  { %6366 = vmatprep.subr.mxu0 %v4417_v35 }
 0x85f   :  { %6367 = vmatpush3.msra.mxu0 %v4417_v35  ;;  %v4592_v35 = vld [vmem:[#allocation15 + $0x128] sm:$0xff] }
 0x860   :  { %6368 = vmatprep.subr.mxu0 %v4416_v36 }
 0x861   :  { %6369 = vmatpush3.msra.mxu0 %v4416_v36  ;;  %v4591_v36 = vld [vmem:[#allocation15 + $0x120] sm:$0xff] }
 0x862   :  { %6370 = vmatprep.subr.mxu0 %v4415_v38 }
 0x863   :  { %6371 = vmatpush3.msra.mxu0 %v4415_v38  ;;  %v4590_v38 = vld [vmem:[#allocation15 + $0x118] sm:$0xff] }
 0x864   :  { %6372 = vmatprep.subr.mxu0 %v4414_v39 }
 0x865   :  { %6373 = vmatpush3.msra.mxu0 %v4414_v39  ;;  %v4589_v39 = vld [vmem:[#allocation15 + $0x110] sm:$0xff] }
 0x866   :  { %6374 = vmatprep.subr.mxu0 %v4413_v40 }
 0x867   :  { %6375 = vmatpush3.msra.mxu0 %v4413_v40  ;;  %v4588_v40 = vld [vmem:[#allocation15 + $0x108] sm:$0xff] }
 0x868   :  { %6376 = vmatprep.subr.mxu0 %v4412_v41 }
 0x869   :  { %6377 = vmatpush3.msra.mxu0 %v4412_v41  ;;  %v4587_v41 = vld [vmem:[#allocation15 + $0x100] sm:$0xff] }
 0x86a   :  { %6378 = vmatprep.subr.mxu0 %v4411_v42 }
 0x86b   :  { %6379 = vmatpush3.msra.mxu0 %v4411_v42 }
 0x86c   :  { %6380 = vmatprep.subr.mxu0 %v4410_v43 }
 0x86d   :  { %6381 = vmatpush3.msra.mxu0 %v4410_v43 }
 0x86e   :  { %6382 = vmatprep.subr.mxu0 %v4409_v44 }
 0x86f   :  { %6383 = vmatpush3.msra.mxu0 %v4409_v44 }
 0x870   :  { %6384 = vmatprep.subr.mxu0 %v4408_v46 }
 0x871   :  { %6385 = vmatpush3.msra.mxu0 %v4408_v46 }
 0x872   :  { %6386 = vmatprep.subr.mxu0 %v4407_v47 }
 0x873   :  { %6387 = vmatpush3.msra.mxu0 %v4407_v47 }
 0x874   :  { %6388 = vmatprep.subr.mxu0 %v4406_v48 }
 0x875   :  { %6389 = vmatpush3.msra.mxu0 %v4406_v48 }
 0x876   :  { %6390 = vmatprep.subr.mxu0 %v4405_v37 }
 0x877   :  { %6391 = vmatpush3.msra.mxu0 %v4405_v37  ;;  %v4856_v37 = vld [vmem:[%s7293_s18] ss:$0 sm:$0xff] }
 0x878   :  { %6392 = vmatprep.subr.mxu0 %v4404_v14 }
 0x879   :  { %6393 = vmatpush3.msra.mxu0 %v4404_v14 }
 0x87a   :  { %6394 = vmatprep.subr.mxu0 %v4403_v17 }
 0x87b   :  { %6395 = vmatpush3.msra.mxu0 %v4403_v17 }
 0x8f8   :  { %v6272_v50 = vpop.f32.mrf.mxu1 }
 0x8fa   :  { %v4064_v55 = vpop.f32.mrf.mxu1 }
 0x8fc   :  { %v6237_v49 = vpop.f32.mrf.mxu0 }
 0x8fd   :  { %v4070_v45 = vadd.f32 %v6272_v50, %v6237_v49 }
 0x8fe   :  { %v3989_v52 = vpop.f32.mrf.mxu0 }
 0x8ff   :  { %v4065_v58 = vadd.f32 %v4064_v55, %v3989_v52 }
 0x91c   :  { %v6307_v56 = vpop.f32.mrf.mxu0 }
 0x91d   :  { %v4166_v61 = vadd.f32 %v6307_v56, %v4070_v45 }
 0x91e   :  { %v4156_v62 = vpop.f32.mrf.mxu0 }
 0x91f   :  { %v4175_v63 = vadd.f32 %v4849_v57, %v4166_v61  ;;  %v4165_v0 = vadd.f32 %v4156_v62, %v4065_v58 }
 0x921   :  { %v4177_v1 = vmax.f32 %v4175_v63, 0.0  ;;  %v4174_v2 = vadd.f32 %v4849_v57, %v4165_v0 }
 0x923   :  { %v4176_v54 = vmax.f32 %v4174_v2, 0.0  ;;  %6308 = vmatprep.subr.mxu1 %v4177_v1 }
 0x924   :  { %6309 = vmatpush3.msra.mxu1 %v4177_v1 }
 0x925   :  { %6310 = vmatprep.subr.mxu1 %v4176_v54 }
 0x926   :  { %6311 = vmatpush3.msra.mxu1 %v4176_v54 }
 0x927   :  { %6313 = vmatmul.mubr.msk.f32.vlgmr.msra.gmra.mxu1 %vm3127_vm2, %v7187_v11  ;;  %6315 = vmatprep.subr.mxu1 %v4177_v1  ;;  %v4433_v11 = vld [vmem:[#allocation15 + $0xe8] sm:$0xff] }
 0x928   :  { %6316 = vmatpush3.msra.mxu1 %v4177_v1  ;;  %6319 = vmatprep.mubr.msk.f32.mxu1 %vm3127_vm2, %v7189_v12  ;;  %v4432_v12 = vld [vmem:[#allocation15 + $0xe0] sm:$0xff] }
 0x929   :  { %6317 = vmatprep.subr.mxu1 %v4176_v54 }
 0x92a   :  { %6318 = vmatpush3.msra.mxu1 %v4176_v54 }
 0x92b   :  { %6320 = vmatmul.mubr.msk.f32.vlgmr.msra.gmra.mxu1 %vm3127_vm2, %v7197_v15  ;;  %6322 = vmatprep.subr.mxu1 %v4177_v1  ;;  %v4431_v15 = vld [vmem:[#allocation15 + $0xd8] sm:$0xff] }
 0x92c   :  { %6323 = vmatpush3.msra.mxu1 %v4177_v1  ;;  %6326 = vmatprep.mubr.msk.f32.mxu1 %vm3127_vm2, %v7180_v60  ;;  %v4429_v60 = vld [vmem:[#allocation15 + $0xc8] sm:$0xff] }
 0x92d   :  { %6324 = vmatprep.subr.mxu1 %v4176_v54 }
 0x92e   :  { %6325 = vmatpush3.msra.mxu1 %v4176_v54 }
 0x92f   :  { %6327 = vmatmul.mubr.msk.f32.vlgmr.msra.gmra.mxu1 %vm3127_vm2, %v7191_v13  ;;  %6329 = vmatprep.subr.mxu1 %v4435_v3  ;;  %v4427_v13 = vld [vmem:[#allocation15 + $0xb8] sm:$0xff] }
 0x930   :  { %6330 = vmatpush3.msra.mxu1 %v4435_v3 }
 0x931   :  { %6331 = vmatprep.subr.mxu1 %v4434_v4 }
 0x932   :  { %6332 = vmatpush3.msra.mxu1 %v4434_v4 }
 0x933   :  { %6333 = vmatprep.subr.mxu1 %v4433_v11 }
 0x934   :  { %6334 = vmatpush3.msra.mxu1 %v4433_v11 }
 0x935   :  { %6335 = vmatprep.subr.mxu1 %v4432_v12 }
 0x936   :  { %6336 = vmatpush3.msra.mxu1 %v4432_v12 }
 0x937   :  { %6337 = vmatprep.subr.mxu1 %v4431_v15 }
 0x938   :  { %6338 = vmatpush3.msra.mxu1 %v4431_v15 }
 0x939   :  { %6339 = vmatprep.subr.mxu1 %v4430_v5 }
 0x93a   :  { %6340 = vmatpush3.msra.mxu1 %v4430_v5 }
 0x93b   :  { %6341 = vmatprep.subr.mxu1 %v4429_v60 }
 0x93c   :  { %6342 = vmatpush3.msra.mxu1 %v4429_v60 }
 0x93d   :  { %6343 = vmatprep.subr.mxu1 %v4428_v6 }
 0x93e   :  { %6344 = vmatpush3.msra.mxu1 %v4428_v6 }
 0x93f   :  { %6345 = vmatprep.subr.mxu1 %v4427_v13 }
 0x940   :  { %6346 = vmatpush3.msra.mxu1 %v4427_v13 }
 0x941   :  { %6347 = vmatprep.subr.mxu1 %v4426_v7 }
 0x942   :  { %6348 = vmatpush3.msra.mxu1 %v4426_v7 }
 0x943   :  { %6349 = vmatprep.subr.mxu1 %v4425_v8 }
 0x944   :  { %6350 = vmatpush3.msra.mxu1 %v4425_v8 }
 0x945   :  { %6351 = vmatprep.subr.mxu1 %v4424_v9 }
 0x946   :  { %6352 = vmatpush3.msra.mxu1 %v4424_v9 }
 0x947   :  { %6353 = vmatprep.subr.mxu1 %v4423_v10 }
 0x948   :  { %6354 = vmatpush3.msra.mxu1 %v4423_v10 }
 0x949   :  { %6355 = vmatprep.subr.mxu1 %v4422_v16 }
 0x94a   :  { %6356 = vmatpush3.msra.mxu1 %v4422_v16 }
 0x94b   :  { %6357 = vmatprep.subr.mxu1 %v4421_v18 }
 0x94c   :  { %6358 = vmatpush3.msra.mxu1 %v4421_v18 }
 0x94d   :  { %6359 = vmatprep.subr.mxu1 %v4420_v19 }
 0x94e   :  { %6360 = vmatpush3.msra.mxu1 %v4420_v19 }
 0x94f   :  { %6399 = vmatprep.subr.mxu1 %v4602_v20 }
 0x9e7   :  { %v6314_v21 = vpop.f32.mrf.mxu1 }
 0x9e9   :  { %v4244_v22 = vpop.f32.mrf.mxu1 }
 0x9ea   :  { %6396 = vmatprep.mubr.f32.mxu0 %v4244_v22 }
 0x9eb   :  { %v6321_v23 = vpop.f32.mrf.mxu1  ;;  %6397 = vmatmul.mubr.f32.vlgmr.msra.gmra.mxu0 %v6314_v21 }
 0x9ed   :  { %v4319_v24 = vpop.f32.mrf.mxu1 }
 0x9ee   :  { %6361 = vmatprep.mubr.f32.mxu1 %v4319_v24 }
 0x9ef   :  { %6362 = vmatmul.mubr.f32.vlgmr.msra.gmra.mxu1 %v6321_v23  ;;  %v6328_v25 = vpop.f32.mrf.mxu1 }
 0x9f0   :  { %6400 = vmatpush3.msra.mxu1 %v4602_v20 }
 0x9f1   :  { %6401 = vmatprep.subr.mxu1 %v4601_v59  ;;  %v4394_v27 = vpop.f32.mrf.mxu1 }
 0x9f2   :  { %6402 = vmatpush3.msra.mxu1 %v4601_v59  ;;  %6431 = vmatprep.mubr.f32.mxu1 %v4394_v27 }
 0x9f3   :  { %6403 = vmatprep.subr.mxu1 %v4600_v26 }
 0x9f4   :  { %6404 = vmatpush3.msra.mxu1 %v4600_v26 }
 0x9f5   :  { %6405 = vmatprep.subr.mxu1 %v4599_v28 }
 0x9f6   :  { %6406 = vmatpush3.msra.mxu1 %v4599_v28 }
 0x9f7   :  { %6407 = vmatprep.subr.mxu1 %v4598_v29 }
 0x9f8   :  { %6408 = vmatpush3.msra.mxu1 %v4598_v29 }
 0x9f9   :  { %6409 = vmatprep.subr.mxu1 %v4597_v30 }
 0x9fa   :  { %6410 = vmatpush3.msra.mxu1 %v4597_v30 }
 0x9fb   :  { %6411 = vmatprep.subr.mxu1 %v4596_v31 }
 0x9fc   :  { %6412 = vmatpush3.msra.mxu1 %v4596_v31 }
 0x9fd   :  { %6413 = vmatprep.subr.mxu1 %v4595_v32 }
 0x9fe   :  { %6414 = vmatpush3.msra.mxu1 %v4595_v32 }
 0x9ff   :  { %6415 = vmatprep.subr.mxu1 %v4594_v33 }
 0xa00   :  { %6416 = vmatpush3.msra.mxu1 %v4594_v33 }
 0xa01   :  { %6417 = vmatprep.subr.mxu1 %v4593_v34 }
 0xa02   :  { %6418 = vmatpush3.msra.mxu1 %v4593_v34 }
 0xa03   :  { %6419 = vmatprep.subr.mxu1 %v4592_v35 }
 0xa04   :  { %6420 = vmatpush3.msra.mxu1 %v4592_v35 }
 0xa05   :  { %6421 = vmatprep.subr.mxu1 %v4591_v36 }
 0xa06   :  { %6422 = vmatpush3.msra.mxu1 %v4591_v36 }
 0xa07   :  { %6423 = vmatprep.subr.mxu1 %v4590_v38 }
 0xa08   :  { %6424 = vmatpush3.msra.mxu1 %v4590_v38 }
 0xa09   :  { %6425 = vmatprep.subr.mxu1 %v4589_v39 }
 0xa0a   :  { %6426 = vmatpush3.msra.mxu1 %v4589_v39 }
 0xa0b   :  { %6427 = vmatprep.subr.mxu1 %v4588_v40 }
 0xa0c   :  { %6428 = vmatpush3.msra.mxu1 %v4588_v40 }
 0xa0d   :  { %6429 = vmatprep.subr.mxu1 %v4587_v41 }
 0xa0e   :  { %6430 = vmatpush3.msra.mxu1 %v4587_v41 }
 0xa0f   :  { %6432 = vmatmul.mubr.f32.vlgmr.msra.gmra.mxu1 %v6328_v25 }
 0xaab   :  { %v6398_v43 = vpop.f32.mrf.mxu0 }
 0xaad   :  { %v4577_v47 = vpop.f32.mrf.mxu0 }
 0xaaf   :  { %v6363_v42 = vpop.f32.mrf.mxu1 }
 0xab0   :  { %v4583_v46 = vadd.f32 %v6398_v43, %v6363_v42 }
 0xab1   :  { %v4502_v44 = vpop.f32.mrf.mxu1 }
 0xab2   :  { %v4578_v49 = vadd.f32 %v4577_v47, %v4502_v44 }
 0xacf   :  { %v6433_v48 = vpop.f32.mrf.mxu1 }
 0xad0   :  { %v4679_v50 = vadd.f32 %v6433_v48, %v4583_v46 }
 0xad1   :  { %v4669_v52 = vpop.f32.mrf.mxu1 }
 0xad2   :  { %v4688_v45 = vadd.f32 %v4856_v37, %v4679_v50  ;;  %v4678_v55 = vadd.f32 %v4669_v52, %v4578_v49 }
 0xad4   :  { %v4690_v56 = vadd.f32 %v4688_v45, %v7223_v51  ;;  %v4687_v57 = vadd.f32 %v4856_v37, %v4678_v55 }
 0xad6   :  { %4692 = vst [vmem:[%s7294_s19 + $0x8] sm:$0xff] %v4690_v56  ;;  %v4689_v58 = vadd.f32 %v4687_v57, %v7225_v53 }
 0xad8   :  { %4691 = vst [vmem:[%s7294_s19] sm:$0xff] %v4689_v58 }
 0xad9   :  { %4697 = vsyncpa [#allocation3], 1 }
 0xada   :  { %4698 = vsyncpa [#allocation5], 1 }
 0xadb   :  { %4699 = vsyncpa [#allocation8], 1 }
 0xadc   :  { %4700 = vsyncpa [#allocation11], 1 }
 0xadd   :  { %4701 = vsyncpa [#allocation14], 1 }

</bundles_post_ra>
